<compile_context>
chip_gen: v5e
topology: v5e:2x2
jax: 0.10.0
libtpu: 0.0.40
codegen_flags: <defaults>
</compile_context>

<pallas_src>
import functools

import jax
import jax.numpy as jnp
from jax.experimental import pallas as pl
from jax.experimental.pallas import tpu as pltpu


# ---------------------------------------------------------------------------
# Fused conv (+BN +ReLU): in-kernel im2col scratch + single long-K MXU matmul.
# ---------------------------------------------------------------------------

def _conv_kernel(ph_ref, w_ref, s_ref, b_ref, o_ref, col_ref, *,
                 taps, m_pad, bt, act):
    # Build the (bt*m_pad, kh*kw*cin) im2col slab once per batch-tile; it is
    # reused across the Cout-tile ("arbitrary") grid axis.
    @pl.when(pl.program_id(1) == 0)
    def _build():
        for b in range(bt):
            # taps are ordered by koff, so lane-concatenation reproduces the
            # (kh, kw, cin) weight-row layout exactly.
            row = jnp.concatenate(
                [ph_ref[pi, b, shift:shift + m_pad, :] for (pi, shift, _) in taps],
                axis=1)                                   # (m_pad, K) bf16
            col_ref[b * m_pad:(b + 1) * m_pad, :] = row   # 16-row aligned store

    y = jnp.dot(col_ref[...], w_ref[...],
                preferred_element_type=jnp.float32)        # (bt*m_pad, tn) f32
    y = y * s_ref[...] + b_ref[...]                        # folded-BN epilogue
    if act == "relu":
        y = jnp.maximum(y, 0.0)
    o_ref[...] = y.astype(o_ref.dtype)


def _prep_phases(x, kh, kw, stride, pad):
    """Pad spatially and split into stride-phases flattened to (P, B, Hq*Wq, C)."""
    B, H, W, C = x.shape
    Hd, Wd = H + 2 * pad, W + 2 * pad
    eh = (-Hd) % stride
    ew = (-Wd) % stride
    xp = jnp.pad(x, ((0, 0), (pad, pad + eh), (pad, pad + ew), (0, 0)))
    Hd += eh
    Wd += ew
    Hq, Wq = Hd // stride, Wd // stride
    phase_ids = []
    taps = []
    for di in range(kh):
        for dj in range(kw):
            pid = (di % stride, dj % stride)
            if pid not in phase_ids:
                phase_ids.append(pid)
            taps.append((phase_ids.index(pid),
                         (di // stride) * Wq + (dj // stride),
                         (di * kw + dj) * C))
    # koff strictly increasing in list order -> lane concat == weight row order.
    assert all(taps[i][2] < taps[i + 1][2] for i in range(len(taps) - 1))
    phases = jnp.stack(
        [xp[:, a::stride, b::stride, :].reshape(B, Hq * Wq, C)
         for (a, b) in phase_ids], axis=0)                 # (P, B, Hq*Wq, C)
    return phases.astype(jnp.bfloat16), tuple(taps), Hq, Wq


def conv_bn(x, w2d, scale, bias, kh, kw, stride, act=None):
    """Conv(k, pad=(k-1)//2, stride) + folded BN (+ optional ReLU). NHWC in/out."""
    B, H, W, C = x.shape
    cout = w2d.shape[1]
    K = kh * kw * C
    pad = (kh - 1) // 2
    Ho = (H + 2 * pad - kh) // stride + 1
    Wo = (W + 2 * pad - kw) // stride + 1
    phases, taps, Hq, Wq = _prep_phases(x, kh, kw, stride, pad)
    P, _, Mq, _ = phases.shape

    m_ext = (Ho - 1) * Wq + Wo                 # valid flat rows (garbage cols kept)
    m_pad = ((m_ext + 15) // 16) * 16          # 16-row align (bf16 sublane pack)
    max_shift = max(t[1] for t in taps)
    need = max_shift + m_pad
    if need > Mq:                              # loud, explicit bound handling
        phases = jnp.pad(phases, ((0, 0), (0, 0), (0, need - Mq), (0, 0)))
        Mq = need
    assert max_shift + m_pad <= Mq

    # Fold batch into M: bt images per grid step.
    bt = min(B, 4)
    n_bt = pl.cdiv(B, bt)
    B_p = n_bt * bt
    if B_p > B:
        phases = jnp.pad(phases, ((0, 0), (0, B_p - B), (0, 0), (0, 0)))

    tn = min(cout, 512)                        # single Cout tile for this model
    assert cout % tn == 0
    n_n = cout // tn

    kern = functools.partial(_conv_kernel, taps=taps, m_pad=m_pad, bt=bt, act=act)
    y = pl.pallas_call(
        kern,
        out_shape=jax.ShapeDtypeStruct((B_p * m_pad, cout), jnp.bfloat16),
        grid=(n_bt, n_n),
        in_specs=[
            pl.BlockSpec((P, bt, Mq, C), lambda bi, n: (0, bi, 0, 0)),
            pl.BlockSpec((K, tn), lambda bi, n: (0, n)),
            pl.BlockSpec((1, tn), lambda bi, n: (0, n)),
            pl.BlockSpec((1, tn), lambda bi, n: (0, n)),
        ],
        out_specs=pl.BlockSpec((bt * m_pad, tn), lambda bi, n: (bi, n)),
        scratch_shapes=[pltpu.VMEM((bt * m_pad, K), jnp.bfloat16)],
        compiler_params=pltpu.CompilerParams(
            dimension_semantics=("parallel", "arbitrary")),
    )(phases, w2d, scale, bias)

    # Recover NHWC: keep m_ext valid rows per image, drop garbage columns.
    y = y.reshape(B_p, m_pad, cout)[:B, :m_ext]
    y = jnp.pad(y, ((0, 0), (0, Ho * Wq - m_ext), (0, 0)))
    y = y.reshape(B, Ho, Wq, cout)[:, :, :Wo, :]
    return y


# ---------------------------------------------------------------------------
# Fused TripletAttention + residual add + ReLU kernel (one call per block).
# ---------------------------------------------------------------------------

def _attn_kernel(gp_ref, x_ref, sc_ref, o_ref, *, k, H, W, C):
    p = (k - 1) // 2
    f32 = jnp.float32
    x = x_ref[0].astype(f32)                               # (H, W, C), cast once

    # Z-pool (max, mean) over each of the three axes, all from the same buffer.
    maps_hw = (jnp.max(x, axis=2), jnp.mean(x, axis=2))    # (H, W)  pool over C
    maps_wc = (jnp.max(x, axis=0), jnp.mean(x, axis=0))    # (W, C)  pool over H
    maps_hc = (jnp.max(x, axis=1), jnp.mean(x, axis=1))    # (H, C)  pool over W

    nw = 2 * k * k
    L = nw + 2

    def pad2d(m2d):
        if p == 0:
            return m2d
        R, S = m2d.shape
        zr = jnp.zeros((p, S), f32)
        m2d = jnp.concatenate([zr, m2d, zr], axis=0)
        zc = jnp.zeros((R + 2 * p, p), f32)
        return jnp.concatenate([zc, m2d, zc], axis=1)

    def gate(maps, base, R, S, offs):
        acc = jnp.zeros((R, S), f32)
        for ch in range(2):                                 # 0: max map, 1: mean map
            mpp = pad2d(maps[ch])                           # tiny in-VMEM zero pad
            for a in range(k):
                for b in range(k):
                    wv = gp_ref[base + (ch * k + a) * k + b]   # scalar from SMEM
                    r0, c0 = offs(a, b)
                    acc = acc + wv * mpp[r0:r0 + R, c0:c0 + S]
        return jax.nn.sigmoid(acc * gp_ref[base + nw] + gp_ref[base + nw + 1])

    g_hw = gate(maps_hw, 0, H, W, lambda a, b: (a, b))      # gate over (h, w)
    g_wc = gate(maps_wc, L, W, C, lambda a, b: (b, a))      # gate over (w, c)
    g_hc = gate(maps_hc, 2 * L, H, C, lambda a, b: (a, b))  # gate over (h, c)

    gt = (g_hw[:, :, None] + g_wc[None, :, :] + g_hc[:, None, :]) * (1.0 / 3.0)
    y = jnp.maximum(x * gt + sc_ref[0].astype(f32), 0.0)
    o_ref[...] = y.astype(o_ref.dtype)[None]


def attention_residual(x, sc, gate_vec, k):
    """y = relu(TripletAttention(x) + sc), fused; no XLA-level padding pass."""
    B, H, W, C = x.shape
    kern = functools.partial(_attn_kernel, k=k, H=H, W=W, C=C)
    return pl.pallas_call(
        kern,
        out_shape=jax.ShapeDtypeStruct((B, H, W, C), jnp.bfloat16),
        grid=(B,),
        in_specs=[
            pl.BlockSpec(memory_space=pltpu.MemorySpace.SMEM),       # gate scalars
            pl.BlockSpec((1, H, W, C), lambda b: (b, 0, 0, 0)),
            pl.BlockSpec((1, H, W, C), lambda b: (b, 0, 0, 0)),
        ],
        out_specs=pl.BlockSpec((1, H, W, C), lambda b: (b, 0, 0, 0)),
        compiler_params=pltpu.CompilerParams(dimension_semantics=("parallel",)),
    )(gate_vec, x, sc)


# ---------------------------------------------------------------------------
# Fused global-average-pool + Linear head (fc lane-padded to 128).
# ---------------------------------------------------------------------------

def _head_kernel(x_ref, w_ref, b_ref, o_ref):
    x = x_ref[...].astype(jnp.float32)               # (B, H*W, C)
    feat = jnp.mean(x, axis=1)                       # (B, C)
    y = jnp.dot(feat, w_ref[...], preferred_element_type=jnp.float32)
    o_ref[...] = y + b_ref[...]


def head(x, fc_w, fc_b, class_num):
    B, H, W, C = x.shape
    npad = fc_w.shape[1]
    x2 = x.reshape(B, H * W, C)
    y = pl.pallas_call(
        _head_kernel,
        out_shape=jax.ShapeDtypeStruct((B, npad), jnp.float32),
        grid=(1,),
        in_specs=[
            pl.BlockSpec((B, H * W, C), lambda i: (0, 0, 0)),
            pl.BlockSpec((C, npad), lambda i: (0, 0)),
            pl.BlockSpec((1, npad), lambda i: (0, 0)),
        ],
        out_specs=pl.BlockSpec((B, npad), lambda i: (0, 0)),
    )(x2, fc_w, fc_b)
    return y[:, :class_num]


# ---------------------------------------------------------------------------
# Parameters (random, BN folded to inference-mode scale/bias).
# ---------------------------------------------------------------------------

class ParamGen:
    def __init__(self, seed=0):
        self.key = jax.random.PRNGKey(seed)

    def normal(self, shape, std=0.05):
        self.key, sub = jax.random.split(self.key)
        return std * jax.random.normal(sub, shape, dtype=jnp.float32)


def make_bn(pg, c, eps=1e-5):
    gamma = 1.0 + pg.normal((c,))
    beta = pg.normal((c,))
    mean = pg.normal((c,))
    var = 1.0 + jnp.abs(pg.normal((c,)))
    scale = gamma / jnp.sqrt(var + eps)
    bias = beta - mean * scale
    return scale.reshape(1, c), bias.reshape(1, c)


def make_conv_w(pg, kh, kw, cin, cout):
    # Pre-reshape to (kh*kw*cin, cout) and pre-cast to bf16 once at init.
    w = pg.normal((kh, kw, cin, cout))
    return w.reshape(kh * kw * cin, cout).astype(jnp.bfloat16)


def make_block(pg, in_c, out_c, stride, k):
    p = {"stride": stride, "k": k}
    p["w1"] = make_conv_w(pg, 3, 3, in_c, out_c)
    p["s1"], p["b1"] = make_bn(pg, out_c)
    p["w2"] = make_conv_w(pg, 3, 3, out_c, out_c)
    p["s2"], p["b2"] = make_bn(pg, out_c)
    gate = []
    for _ in range(3):                       # hw, cw, hc branches
        gate.append(pg.normal((2 * k * k,)))             # conv taps (max/mean)
        gs, gb = make_bn(pg, 1)
        gate.append(gs.reshape(1))
        gate.append(gb.reshape(1))
    p["gate"] = jnp.concatenate(gate, axis=0)            # (3*(2k^2+2),) f32 SMEM table
    if stride != 1 or in_c != out_c:
        p["sc_w"] = make_conv_w(pg, 1, 1, in_c, out_c)
        p["sc_s"], p["sc_b"] = make_bn(pg, out_c)
    else:
        p["sc_w"] = None
    return p


def init_params(seed=0, class_num=10, block_num=(1, 1, 1, 1), k_size=(3, 3, 3, 3)):
    pg = ParamGen(seed)
    params = {"class_num": class_num}
    # pre: Conv2d(3,64,3,pad=1,bias=True) + BN(64) + ReLU (conv bias folded thru BN)
    params["pre_w"] = make_conv_w(pg, 3, 3, 3, 64)
    pre_cb = pg.normal((64,))
    s, b = make_bn(pg, 64)
    params["pre_s"] = s
    params["pre_b"] = b + pre_cb.reshape(1, 64) * s
    in_c = 64
    blocks = []
    for out_c, stride, k, n in zip((64, 128, 256, 512), (1, 2, 2, 2), k_size, block_num):
        for bi in range(int(n)):
            st = stride if bi == 0 else 1
            blocks.append(make_block(pg, in_c, out_c, st, int(k)))
            in_c = out_c                                   # block.expansion == 1
    params["blocks"] = blocks
    npad = ((class_num + 127) // 128) * 128
    fc_w = pg.normal((in_c, class_num))
    params["fc_w"] = jnp.pad(fc_w, ((0, 0), (0, npad - class_num)))
    fc_b = pg.normal((class_num,))
    params["fc_b"] = jnp.pad(fc_b, (0, npad - class_num)).reshape(1, npad)
    return params


# ---------------------------------------------------------------------------
# Forward pass.
# ---------------------------------------------------------------------------

def block_forward(x, p):
    st, k = p["stride"], p["k"]
    out = conv_bn(x, p["w1"], p["s1"], p["b1"], 3, 3, st, act="relu")
    out = conv_bn(out, p["w2"], p["s2"], p["b2"], 3, 3, 1, act=None)
    if p["sc_w"] is not None:
        sc = conv_bn(x, p["sc_w"], p["sc_s"], p["sc_b"], 1, 1, st, act=None)
    else:
        sc = x
    return attention_residual(out, sc, p["gate"], k)


def tripletresnet_forward(x_nchw, params):
    x = jnp.transpose(x_nchw, (0, 2, 3, 1)).astype(jnp.bfloat16)   # NCHW -> NHWC bf16
    x = conv_bn(x, params["pre_w"], params["pre_s"], params["pre_b"], 3, 3, 1, act="relu")
    for blk in params["blocks"]:
        x = block_forward(x, blk)
    return head(x, params["fc_w"], params["fc_b"], params["class_num"])   # (B, class_num)


if __name__ == "__main__":
    key = jax.random.PRNGKey(0)
    # small CIFAR-like input, NCHW like PyTorch: (batch=2, channels=3, 16, 16)
    x = jax.random.normal(key, (2, 3, 16, 16), dtype=jnp.float32)
    params = init_params(seed=0, class_num=10, block_num=(1, 1, 1, 1),
                         k_size=(3, 3, 3, 3))
    out = tripletresnet_forward(x, params)
    jax.block_until_ready(out)
    assert out.shape == (2, 10), out.shape
    assert bool(jnp.all(jnp.isfinite(out)))
    print("KERNEL_OK")
</pallas_src>

<mosaic_0001>
module attributes {stable_mosaic.version = 11 : i64} {
  func.func @_conv_kernel(%arg0: i32, %arg1: i32, %arg2: memref<1x2x326x3xbf16, #tpu.memory_space<vmem>>, %arg3: memref<27x64xbf16, #tpu.memory_space<vmem>>, %arg4: memref<1x64xf32, #tpu.memory_space<vmem>>, %arg5: memref<1x64xf32, #tpu.memory_space<vmem>>, %arg6: memref<576x64xbf16, #tpu.memory_space<vmem>>, %arg7: memref<576x27xbf16, #tpu.memory_space<vmem>>) attributes {dimension_semantics = [#tpu.dimension_semantics<parallel>, #tpu.dimension_semantics<arbitrary>], iteration_bounds = array<i64: 1, 1>, scalar_prefetch = 0 : i64, scratch_operands = 1 : i64, tpu.core_type = #tpu.core_type<tc>, window_params = [{transform_indices = @transform_0, window_bounds = array<i64: 1, 2, 326, 3>}, {transform_indices = @transform_1, window_bounds = array<i64: 27, 64>}, {transform_indices = @transform_2, window_bounds = array<i64: 1, 64>}, {transform_indices = @transform_3, window_bounds = array<i64: 1, 64>}, {transform_indices = @transform_4, window_bounds = array<i64: 576, 64>}]} {
    %c0_i32 = arith.constant 0 : i32
    %0 = arith.cmpi eq, %arg1, %c0_i32 : i32
    %1 = arith.extui %0 : i1 to i32
    %c0_i32_0 = arith.constant 0 : i32
    %2 = arith.cmpi ne, %1, %c0_i32_0 : i32
    scf.if %2 {
      %c0_11 = arith.constant 0 : index
      %c0_12 = arith.constant 0 : index
      %c0_13 = arith.constant 0 : index
      %c0_14 = arith.constant 0 : index
      %16 = vector.load %arg2[%c0_11, %c0_12, %c0_13, %c0_14] : memref<1x2x326x3xbf16, #tpu.memory_space<vmem>>, vector<1x1x288x3xbf16>
      %17 = vector.shape_cast %16 : vector<1x1x288x3xbf16> to vector<288x3xbf16>
      %c0_15 = arith.constant 0 : index
      %c0_16 = arith.constant 0 : index
      %c1 = arith.constant 1 : index
      %c0_17 = arith.constant 0 : index
      %18 = vector.load %arg2[%c0_15, %c0_16, %c1, %c0_17] : memref<1x2x326x3xbf16, #tpu.memory_space<vmem>>, vector<1x1x288x3xbf16>
      %19 = vector.shape_cast %18 : vector<1x1x288x3xbf16> to vector<288x3xbf16>
      %c0_18 = arith.constant 0 : index
      %c0_19 = arith.constant 0 : index
      %c2 = arith.constant 2 : index
      %c0_20 = arith.constant 0 : index
      %20 = vector.load %arg2[%c0_18, %c0_19, %c2, %c0_20] : memref<1x2x326x3xbf16, #tpu.memory_space<vmem>>, vector<1x1x288x3xbf16>
      %21 = vector.shape_cast %20 : vector<1x1x288x3xbf16> to vector<288x3xbf16>
      %c0_21 = arith.constant 0 : index
      %c0_22 = arith.constant 0 : index
      %c18 = arith.constant 18 : index
      %c0_23 = arith.constant 0 : index
      %22 = vector.load %arg2[%c0_21, %c0_22, %c18, %c0_23] : memref<1x2x326x3xbf16, #tpu.memory_space<vmem>>, vector<1x1x288x3xbf16>
      %23 = vector.shape_cast %22 : vector<1x1x288x3xbf16> to vector<288x3xbf16>
      %c0_24 = arith.constant 0 : index
      %c0_25 = arith.constant 0 : index
      %c19 = arith.constant 19 : index
      %c0_26 = arith.constant 0 : index
      %24 = vector.load %arg2[%c0_24, %c0_25, %c19, %c0_26] : memref<1x2x326x3xbf16, #tpu.memory_space<vmem>>, vector<1x1x288x3xbf16>
      %25 = vector.shape_cast %24 : vector<1x1x288x3xbf16> to vector<288x3xbf16>
      %c0_27 = arith.constant 0 : index
      %c0_28 = arith.constant 0 : index
      %c20 = arith.constant 20 : index
      %c0_29 = arith.constant 0 : index
      %26 = vector.load %arg2[%c0_27, %c0_28, %c20, %c0_29] : memref<1x2x326x3xbf16, #tpu.memory_space<vmem>>, vector<1x1x288x3xbf16>
      %27 = vector.shape_cast %26 : vector<1x1x288x3xbf16> to vector<288x3xbf16>
      %c0_30 = arith.constant 0 : index
      %c0_31 = arith.constant 0 : index
      %c36 = arith.constant 36 : index
      %c0_32 = arith.constant 0 : index
      %28 = vector.load %arg2[%c0_30, %c0_31, %c36, %c0_32] : memref<1x2x326x3xbf16, #tpu.memory_space<vmem>>, vector<1x1x288x3xbf16>
      %29 = vector.shape_cast %28 : vector<1x1x288x3xbf16> to vector<288x3xbf16>
      %c0_33 = arith.constant 0 : index
      %c0_34 = arith.constant 0 : index
      %c37 = arith.constant 37 : index
      %c0_35 = arith.constant 0 : index
      %30 = vector.load %arg2[%c0_33, %c0_34, %c37, %c0_35] : memref<1x2x326x3xbf16, #tpu.memory_space<vmem>>, vector<1x1x288x3xbf16>
      %31 = vector.shape_cast %30 : vector<1x1x288x3xbf16> to vector<288x3xbf16>
      %c0_36 = arith.constant 0 : index
      %c0_37 = arith.constant 0 : index
      %c38 = arith.constant 38 : index
      %c0_38 = arith.constant 0 : index
      %32 = vector.load %arg2[%c0_36, %c0_37, %c38, %c0_38] : memref<1x2x326x3xbf16, #tpu.memory_space<vmem>>, vector<1x1x288x3xbf16>
      %33 = vector.shape_cast %32 : vector<1x1x288x3xbf16> to vector<288x3xbf16>
      %34 = tpu.concatenate %17, %19, %21, %23, %25, %27, %29, %31, %33 in 1 : vector<288x3xbf16>, vector<288x3xbf16>, vector<288x3xbf16>, vector<288x3xbf16>, vector<288x3xbf16>, vector<288x3xbf16>, vector<288x3xbf16>, vector<288x3xbf16>, vector<288x3xbf16> -> vector<288x27xbf16>
      %c0_39 = arith.constant 0 : index
      %c0_40 = arith.constant 0 : index
      %35 = vector.load %arg7[%c0_39, %c0_40] : memref<576x27xbf16, #tpu.memory_space<vmem>>, vector<288x27xbf16>
      tpu.vector_store %arg7[%c0_39, %c0_40], %34 {strides = array<i32>} : memref<576x27xbf16, #tpu.memory_space<vmem>>, vector<288x27xbf16>,
      %c0_41 = arith.constant 0 : index
      %c1_42 = arith.constant 1 : index
      %c0_43 = arith.constant 0 : index
      %c0_44 = arith.constant 0 : index
      %36 = vector.load %arg2[%c0_41, %c1_42, %c0_43, %c0_44] : memref<1x2x326x3xbf16, #tpu.memory_space<vmem>>, vector<1x1x288x3xbf16>
      %37 = vector.shape_cast %36 : vector<1x1x288x3xbf16> to vector<288x3xbf16>
      %c0_45 = arith.constant 0 : index
      %c1_46 = arith.constant 1 : index
      %c1_47 = arith.constant 1 : index
      %c0_48 = arith.constant 0 : index
      %38 = vector.load %arg2[%c0_45, %c1_46, %c1_47, %c0_48] : memref<1x2x326x3xbf16, #tpu.memory_space<vmem>>, vector<1x1x288x3xbf16>
      %39 = vector.shape_cast %38 : vector<1x1x288x3xbf16> to vector<288x3xbf16>
      %c0_49 = arith.constant 0 : index
      %c1_50 = arith.constant 1 : index
      %c2_51 = arith.constant 2 : index
      %c0_52 = arith.constant 0 : index
      %40 = vector.load %arg2[%c0_49, %c1_50, %c2_51, %c0_52] : memref<1x2x326x3xbf16, #tpu.memory_space<vmem>>, vector<1x1x288x3xbf16>
      %41 = vector.shape_cast %40 : vector<1x1x288x3xbf16> to vector<288x3xbf16>
      %c0_53 = arith.constant 0 : index
      %c1_54 = arith.constant 1 : index
      %c18_55 = arith.constant 18 : index
      %c0_56 = arith.constant 0 : index
      %42 = vector.load %arg2[%c0_53, %c1_54, %c18_55, %c0_56] : memref<1x2x326x3xbf16, #tpu.memory_space<vmem>>, vector<1x1x288x3xbf16>
      %43 = vector.shape_cast %42 : vector<1x1x288x3xbf16> to vector<288x3xbf16>
      %c0_57 = arith.constant 0 : index
      %c1_58 = arith.constant 1 : index
      %c19_59 = arith.constant 19 : index
      %c0_60 = arith.constant 0 : index
      %44 = vector.load %arg2[%c0_57, %c1_58, %c19_59, %c0_60] : memref<1x2x326x3xbf16, #tpu.memory_space<vmem>>, vector<1x1x288x3xbf16>
      %45 = vector.shape_cast %44 : vector<1x1x288x3xbf16> to vector<288x3xbf16>
      %c0_61 = arith.constant 0 : index
      %c1_62 = arith.constant 1 : index
      %c20_63 = arith.constant 20 : index
      %c0_64 = arith.constant 0 : index
      %46 = vector.load %arg2[%c0_61, %c1_62, %c20_63, %c0_64] : memref<1x2x326x3xbf16, #tpu.memory_space<vmem>>, vector<1x1x288x3xbf16>
      %47 = vector.shape_cast %46 : vector<1x1x288x3xbf16> to vector<288x3xbf16>
      %c0_65 = arith.constant 0 : index
      %c1_66 = arith.constant 1 : index
      %c36_67 = arith.constant 36 : index
      %c0_68 = arith.constant 0 : index
      %48 = vector.load %arg2[%c0_65, %c1_66, %c36_67, %c0_68] : memref<1x2x326x3xbf16, #tpu.memory_space<vmem>>, vector<1x1x288x3xbf16>
      %49 = vector.shape_cast %48 : vector<1x1x288x3xbf16> to vector<288x3xbf16>
      %c0_69 = arith.constant 0 : index
      %c1_70 = arith.constant 1 : index
      %c37_71 = arith.constant 37 : index
      %c0_72 = arith.constant 0 : index
      %50 = vector.load %arg2[%c0_69, %c1_70, %c37_71, %c0_72] : memref<1x2x326x3xbf16, #tpu.memory_space<vmem>>, vector<1x1x288x3xbf16>
      %51 = vector.shape_cast %50 : vector<1x1x288x3xbf16> to vector<288x3xbf16>
      %c0_73 = arith.constant 0 : index
      %c1_74 = arith.constant 1 : index
      %c38_75 = arith.constant 38 : index
      %c0_76 = arith.constant 0 : index
      %52 = vector.load %arg2[%c0_73, %c1_74, %c38_75, %c0_76] : memref<1x2x326x3xbf16, #tpu.memory_space<vmem>>, vector<1x1x288x3xbf16>
      %53 = vector.shape_cast %52 : vector<1x1x288x3xbf16> to vector<288x3xbf16>
      %54 = tpu.concatenate %37, %39, %41, %43, %45, %47, %49, %51, %53 in 1 : vector<288x3xbf16>, vector<288x3xbf16>, vector<288x3xbf16>, vector<288x3xbf16>, vector<288x3xbf16>, vector<288x3xbf16>, vector<288x3xbf16>, vector<288x3xbf16>, vector<288x3xbf16> -> vector<288x27xbf16>
      %c288 = arith.constant 288 : index
      %c0_77 = arith.constant 0 : index
      %55 = vector.load %arg7[%c288, %c0_77] : memref<576x27xbf16, #tpu.memory_space<vmem>>, vector<288x27xbf16>
      tpu.vector_store %arg7[%c288, %c0_77], %54 {strides = array<i32>} : memref<576x27xbf16, #tpu.memory_space<vmem>>, vector<288x27xbf16>,
    } else {
    }
    %c0 = arith.constant 0 : index
    %c0_1 = arith.constant 0 : index
    %3 = vector.load %arg7[%c0, %c0_1] : memref<576x27xbf16, #tpu.memory_space<vmem>>, vector<576x27xbf16>
    %c0_2 = arith.constant 0 : index
    %c0_3 = arith.constant 0 : index
    %4 = vector.load %arg3[%c0_2, %c0_3] : memref<27x64xbf16, #tpu.memory_space<vmem>>, vector<27x64xbf16>
    %cst = arith.constant dense<0.000000e+00> : vector<576x64xf32>
    %5 = tpu.matmul %3, %4, %cst {dimension_numbers = #tpu.dot_dimension_numbers<[1], [0], [0], [1], [0, 0, 1, 1], [], []>} : vector<576x27xbf16>, vector<27x64xbf16>, vector<576x64xf32> -> vector<576x64xf32>
    %c0_4 = arith.constant 0 : index
    %c0_5 = arith.constant 0 : index
    %6 = vector.load %arg4[%c0_4, %c0_5] : memref<1x64xf32, #tpu.memory_space<vmem>>, vector<1x64xf32>
    %7 = vector.broadcast %6 : vector<1x64xf32> to vector<576x64xf32>
    %8 = arith.mulf %5, %7 : vector<576x64xf32>
    %c0_6 = arith.constant 0 : index
    %c0_7 = arith.constant 0 : index
    %9 = vector.load %arg5[%c0_6, %c0_7] : memref<1x64xf32, #tpu.memory_space<vmem>>, vector<1x64xf32>
    %10 = vector.broadcast %9 : vector<1x64xf32> to vector<576x64xf32>
    %11 = arith.addf %8, %10 : vector<576x64xf32>
    %cst_8 = arith.constant 0.000000e+00 : f32
    %12 = vector.broadcast %cst_8 : f32 to vector<576x64xf32>
    %13 = arith.maximumf %11, %12 : vector<576x64xf32>
    %14 = arith.truncf %13 : vector<576x64xf32> to vector<576x64xbf16>
    %c0_9 = arith.constant 0 : index
    %c0_10 = arith.constant 0 : index
    %15 = vector.load %arg6[%c0_9, %c0_10] : memref<576x64xbf16, #tpu.memory_space<vmem>>, vector<576x64xbf16>
    tpu.vector_store %arg6[%c0_9, %c0_10], %14 {strides = array<i32>} : memref<576x64xbf16, #tpu.memory_space<vmem>>, vector<576x64xbf16>,
    return
  }
  func.func @transform_0(%arg0: i32, %arg1: i32) -> (i32, i32, i32, i32) {
    %c0_i32 = arith.constant 0 : i32
    %c0_i32_0 = arith.constant 0 : i32
    %c0_i32_1 = arith.constant 0 : i32
    %c0_i32_2 = arith.constant 0 : i32
    return %c0_i32, %arg0, %c0_i32_0, %c0_i32_1 : i32, i32, i32, i32
  }
  func.func @transform_1(%arg0: i32, %arg1: i32) -> (i32, i32) {
    %c0_i32 = arith.constant 0 : i32
    %c0_i32_0 = arith.constant 0 : i32
    return %c0_i32, %arg1 : i32, i32
  }
  func.func @transform_2(%arg0: i32, %arg1: i32) -> (i32, i32) {
    %c0_i32 = arith.constant 0 : i32
    %c0_i32_0 = arith.constant 0 : i32
    return %c0_i32, %arg1 : i32, i32
  }
  func.func @transform_3(%arg0: i32, %arg1: i32) -> (i32, i32) {
    %c0_i32 = arith.constant 0 : i32
    %c0_i32_0 = arith.constant 0 : i32
    return %c0_i32, %arg1 : i32, i32
  }
  func.func @transform_4(%arg0: i32, %arg1: i32) -> (i32, i32) {
    %c0_i32 = arith.constant 0 : i32
    return %arg0, %arg1 : i32, i32
  }
}

</mosaic_0001>

<bundles_post_ra>
// kernel: tpu_custom_call.1
= control target key start
LH: loop header
LB: loop body
LE: loop exit
PB: predicated region body
PF: predicated region fallthrough
CT: control target
= control target key end

     0   :  { %vm165_vm0 = vsmask.f32 7424  ;;  %s4250_s7 = smov 3   ;;  %vm353_vm1 = vcmask 1046528   ;;  %s4251_s6 = smov 6   ;;  %vm613_vm3 = vcmask 1045504   ;;  %s7735_s0 = inlined_call_operand.vmem [shape: bf16[1,2,326,3], index: 0, kind: input, shape index: {}]   ;;  %s7736_s1 = inlined_call_operand.vmem [shape: bf16[27,64], index: 1, kind: input, shape index: {}]   ;;  %s7737_s2 = inlined_call_operand.vmem [shape: f32[1,64], index: 2, kind: input, shape index: {}]   ;;  %s7738_s3 = inlined_call_operand.vmem [shape: f32[1,64], index: 3, kind: input, shape index: {}]   ;;  %s7739_s4 = inlined_call_operand.vmem [shape: bf16[576,64], index: 4, kind: output, shape index: {}]  }
   0x1   :  { %v4287_v0 = vld [vmem:[%s7735_s0 + $0x10] sm:$0xff]   ;;  %v4292_v1 = vld [vmem:[%s7735_s0 + $0x18] sm:$0xff]  ;;  %v4168_v2 = vld [vmem:[%s7735_s0] sm:$0xff]   ;;  %s4252_s10 = smov 9   ;;  %vm483_vm2 = vsmask.f32 6400 }
   0x2   :  { %v7740_v3 = vshll.u32 %v4287_v0, 16  ;;  %v7741_v4 = vshrl.u32 %v4287_v0, 16  ;;  %v4302_v5 = vld [vmem:[%s7735_s0 + $0x8] sm:$0xff]   ;;  %v167_v6 = vshrl.u32 %v4168_v2, 16  ;;  %v169_v7 = vshll.u32 %v4168_v2, 16  ;;  %v4307_v8 = vld [vmem:[%s7735_s0 + $0x20] sm:$0xff] }
   0x3   :  { %v4310_v9 = vshll.u32 %v4292_v1, 16  ;;  %v174_v10 = vshll.u32 %v4302_v5, 16  ;;  %v4316_v11 = vld [vmem:[%s7735_s0 + $0x28] sm:$0xff]  ;;  %v4321_v14 = vshll.u32 %v4307_v8, 16  ;;  %v4324_v15 = vshrl.u32 %v4307_v8, 16  ;;  %v4329_v16 = vld [vmem:[%s7735_s0 + $0x30] sm:$0xff] }
   0x4   :  { %v184_v12 = vrot.slane %v7740_v3, 1  ;;  %v171_v13 = vrot.slane %v169_v7, 1  ;;  %v4333_v19 = vshll.u32 %v4316_v11, 16  ;;  %v4336_v20 = vshrl.u32 %v4292_v1, 16  ;;  %v4345_v25 = vld [vmem:[%s7735_s0 + $0x38] sm:$0xff]  ;;  %v4360_v32 = vld [vmem:[%s7735_s0 + $0x40] sm:$0xff] }
   0x5   :  { %v192_v17 = vrot.slane %v4310_v9, 1  ;;  %v176_v18 = vrot.slane %v174_v10, 1  ;;  %v200_v23 = vrot.slane %v4321_v14, 1  ;;  %v178_v24 = vshrl.u32 %v4302_v5, 16  ;;  %7847 = vst [vmem:[#allocation3_spill] sm:$0xff] %v4345_v25  ;;  %v4378_v40 = vld [vmem:[%s7735_s0 + $0x48] sm:$0xff] }
   0x6   :  { %v188_v21 = vor.u32 %v7741_v4, %v184_v12  ;;  %v172_v22 = vor.u32 %v171_v13, %v167_v6  ;;  %v208_v26 = vrot.slane %v4333_v19, 1  ;;  %v4349_v27 = vshrl.u32 %v4316_v11, 16  ;;  %7848 = vst [vmem:[#allocation4_spill] sm:$0xff] %v4360_v32  ;;  %v4392_v46 = vld [vmem:[%s7735_s0 + $0x50] sm:$0xff]  ;;  %v4405_v51 = vld [vmem:[%s7735_s0 + $0x58] sm:$0xff]  ;;  %v4423_v58 = vld [vmem:[%s7735_s0 + $0x60] sm:$0xff] }
   0x7   :  { %v204_v30 = vor.u32 %v4324_v15, %v200_v23  ;;  %v4355_v31 = vshll.u32 %v4329_v16, 16  ;;  %v196_v33 = vor.u32 %v4336_v20, %v192_v17  ;;  %v180_v35 = vor.u32 %v178_v24, %v176_v18  ;;  %7849 = vst [vmem:[#allocation5_spill] sm:$0xff] %v4378_v40  ;;  %v4437_v2 = vld [vmem:[%s7735_s0 + $0x68] sm:$0xff]  ;;  %v4442_v6 = vld [vmem:[%s7735_s0 + $0x70] sm:$0xff]  ;;  %s4253_s15 = smov 12   ;;  %s4254_s20 = smov 15  }
   0x8   :  { %v193_v28 = vsel %vm165_vm0, %v188_v21, %v192_v17  ;;  %v177_v29 = vsel %vm165_vm0, %v172_v22, %v176_v18  ;;  %v4367_v36 = vshll.u32 %v4345_v25, 16  ;;  %v212_v37 = vor.u32 %v4349_v27, %v208_v26  ;;  %7850 = vst [vmem:[#allocation6_spill] sm:$0xff] %v4392_v46  ;;  %s4255_s23 = smov 18   ;;  %s4256_s28 = smov 21  }
   0x9   :  { %318 = vrot.lane.b32.xlu1 %v193_v28, %s4250_s7  ;;  %314 = vrot.lane.b32.xlu0 %v177_v29, %s4250_s7  ;;  %v209_v34 = vsel %vm165_vm0, %v204_v30, %v208_v26  ;;  %v216_v38 = vrot.slane %v4355_v31, 1  ;;  %v4373_v39 = vshll.u32 %v4360_v32, 16  ;;  %v201_v41 = vsel %vm165_vm0, %v196_v33, %v200_v23  ;;  %7851 = vst [vmem:[#allocation7_spill] sm:$0xff] %v4405_v51  ;;  %v4468_v26 = vld [vmem:[%s7735_s0 + $0x78] sm:$0xff]  ;;  %v58_v29 = vld [vmem:[%s7735_s0 + $0x90] sm:$0x1] }
   0xa   :  { %322 = vrot.lane.b32.xlu2 %v209_v34, %s4250_s7  ;;  %v185_v42 = vsel %vm165_vm0, %v180_v35, %v184_v12  ;;  %v224_v43 = vrot.slane %v4367_v36, 1  ;;  %v4384_v44 = vshrl.u32 %v4345_v25, 16  ;;  %v4387_v45 = vshrl.u32 %v4329_v16, 16  ;;  %7852 = vst [vmem:[#allocation8_spill] sm:$0xff] %v4423_v58  ;;  %s4257_s17 = smov 24  }
   0xb   :  { %v217_v47 = vsel %vm165_vm0, %v212_v37, %v216_v38  ;;  %v232_v48 = vrot.slane %v4373_v39, 1  ;;  %v4397_v49 = vshrl.u32 %v4360_v32, 16  ;;  %v4400_v50 = vshll.u32 %v4378_v40, 16  ;;  %7853 = vst [vmem:[#allocation9_spill] sm:$0xff] %v4437_v2  ;;  %v4485_v37 = vld [vmem:[%s7735_s0 + $0x80] sm:$0xff] }
   0xc   :  { %v228_v52 = vor.u32 %v4384_v44, %v224_v43  ;;  %v220_v53 = vor.u32 %v4387_v45, %v216_v38  ;;  %v4412_v54 = vshll.u32 %v4392_v46, 16  ;;  %v4418_v57 = vshll.u32 %v4405_v51, 16  ;;  %7854 = vst [vmem:[#allocation10_spill] sm:$0xff] %v4442_v6 }
   0xd   :  { %v236_v55 = vor.u32 %v4397_v49, %v232_v48  ;;  %v240_v56 = vrot.slane %v4400_v50, 1  ;;  %v4426_v59 = vshrl.u32 %v4392_v46, 16  ;;  %v4432_v63 = vshrl.u32 %v4378_v40, 16  ;;  %7855 = vst [vmem:[#allocation11_spill] sm:$0xff] %v4468_v26 }
   0xe   :  { %v233_v60 = vsel %vm165_vm0, %v228_v52, %v232_v48  ;;  %v225_v61 = vsel %vm165_vm0, %v220_v53, %v224_v43  ;;  %v248_v62 = vrot.slane %v4412_v54, 1  ;;  %v256_v10 = vrot.slane %v4418_v57, 1 }
   0xf   :  { %v241_v7 = vsel %vm165_vm0, %v236_v55, %v240_v56  ;;  %v4447_v12 = vshrl.u32 %v4405_v51, 16  ;;  %v4450_v13 = vshll.u32 %v4423_v58, 16  ;;  %v244_v18 = vor.u32 %v4432_v63, %v240_v56 }
  0x10   :  { %v252_v17 = vor.u32 %v4426_v59, %v248_v62  ;;  %v4457_v21 = vshll.u32 %v4437_v2, 16  ;;  %v4461_v22 = vshll.u32 %v4442_v6, 16  ;;  %v4471_v28 = vshrl.u32 %v4437_v2, 16 }
  0x11   :  { %320 = vrot.lane.b32.xlu1 %v201_v41, %s4250_s7  ;;  %316 = vrot.lane.b32.xlu0 %v185_v42, %s4250_s7  ;;  %v260_v23 = vor.u32 %v4447_v12, %v256_v10  ;;  %v264_v24 = vrot.slane %v4450_v13, 1  ;;  %v249_v33 = vsel %vm165_vm0, %v244_v18, %v248_v62  ;;  %v4480_v35 = vshrl.u32 %v4423_v58, 16 }
  0x12   :  { %324 = vrot.lane.b32.xlu2 %v217_v47, %s4250_s7  ;;  %v257_v30 = vsel %vm165_vm0, %v252_v17, %v256_v10  ;;  %v272_v34 = vrot.slane %v4457_v21, 1  ;;  %v280_v38 = vrot.slane %v4461_v22, 1  ;;  %v4490_v42 = vshrl.u32 %v4442_v6, 16  ;;  %v4498_v47 = vld [vmem:[%s7735_s0 + $0x88] sm:$0xff] }
  0x13   :  { %v265_v41 = vsel %vm165_vm0, %v260_v23, %v264_v24  ;;  %v4493_v43 = vshll.u32 %v4468_v26, 16  ;;  %7856 = vst [vmem:[#allocation12_spill] sm:$0xff] %v4498_v47  ;;  %v163_v48 = vunpack.c.l.b16 %v58_v29  ;;  %v268_v53 = vor.u32 %v4480_v35, %v264_v24 }
  0x14   :  { %v276_v52 = vor.u32 %v4471_v28, %v272_v34  ;;  %v4505_v55 = vshll.u32 %v4485_v37, 16  ;;  %v284_v56 = vor.u32 %v4490_v42, %v280_v38  ;;  %v4522_v23 = vshrl.u32 %v4468_v26, 16 }
  0x15   :  { %v4513_v62 = vpack.c.b16 %v163_v48, %v163_v48  ;;  %v273_v17 = vsel %vm165_vm0, %v268_v53, %v272_v34  ;;  %v4190_v48 = vld [vmem:[%s7735_s0] sm:$0xe]  ;;  %v4549_v3 = vrot.slane %v4287_v0, 1  ;;  %vm743_vm4 = vsmask.f32 5376 }
  0x16   :  { %v281_v10 = vsel %vm165_vm0, %v276_v52, %v280_v38  ;;  %v296_v18 = vrot.slane %v4505_v55, 1  ;;  %vm873_vm5 = vcmask 1044480   ;;  %vm947_vm6 = vcmask 23552  }
  0x17   :  { %vm984_vm7 = vcmask 48128   ;;  %vm1021_vm8 = vcmask 72704   ;;  %vm1058_vm9 = vcmask 97280   ;;  %vm1095_vm10 = vcmask 121856  }
  0x18   :  { %vm1132_vm11 = vcmask 146432   ;;  %vm1169_vm12 = vcmask 171008   ;;  %vm1206_vm13 = vcmask 195584   ;;  %vm1369_vm14 = vcmask 216064  }
  0x19   :  { %328 = vrot.lane.b32.xlu1 %v233_v60, %s4250_s7  ;;  %326 = vrot.lane.b32.xlu0 %v225_v61, %s4250_s7  ;;  %v288_v60 = vrot.slane %v4493_v43, 1  ;;  %v4511_v61 = vshll.u32 %v4498_v47, 16  ;;  %vm3043_vm15 = vcmask 220160  }
  0x1a   :  { %330 = vrot.lane.b32.xlu2 %v241_v7, %s4250_s7  ;;  %v4516_v7 = vshrl.u32 %v4485_v37, 16 }
  0x1b   :  { %v289_v24 = vsel %vm165_vm0, %v284_v56, %v288_v60  ;;  %v304_v29 = vrot.slane %v4511_v61, 1  ;;  %v292_v38 = vor.u32 %v4522_v23, %v288_v60 }
  0x1c   :  { %v300_v34 = vor.u32 %v4516_v7, %v296_v18 }
  0x1e   :  { %v305_v56 = vsel %vm165_vm0, %v300_v34, %v304_v29 }
  0x21   :  { %334 = vrot.lane.b32.xlu1 %v257_v30, %s4250_s7  ;;  %332 = vrot.lane.b32.xlu0 %v249_v33, %s4250_s7  ;;  %v4527_v30 = vshrl.u32 %v4498_v47, 16  ;;  %v310_v33 = vshll.u32 %v4513_v62, 16 }
  0x22   :  { %336 = vrot.lane.b32.xlu2 %v265_v41, %s4250_s7  ;;  %v4189_v41 = vld [vmem:[%s7735_s0] sm:$0xf0] }
  0x23   :  { %v308_v52 = vor.u32 %v4527_v30, %v304_v29  ;;  %v312_v53 = vrot.slane %v310_v33, 1  ;;  %v359_v29 = vrot.slane %v4292_v1, 1 }
  0x25   :  { %v313_v60 = vsel %vm165_vm0, %v308_v52, %v312_v53  ;;  %v360_v34 = vsel %vm353_vm1, %v4549_v3, %v359_v29 }
  0x29   :  { %340 = vrot.lane.b32.xlu1 %v281_v10, %s4250_s7  ;;  %338 = vrot.lane.b32.xlu0 %v273_v17, %s4250_s7  ;;  %v297_v10 = vsel %vm165_vm0, %v292_v38, %v296_v18  ;;  %v4191_v17 = vor.u32 %v4190_v48, %v4189_v41  ;;  %v361_v38 = vrot.slane %v4307_v8, 1  ;;  %v363_v41 = vrot.slane %v4316_v11, 1 }
  0x2a   :  { %342 = vrot.lane.b32.xlu2 %v289_v24, %s4250_s7  ;;  %v355_v24 = vrot.slane %v4302_v5, 1  ;;  %v365_v48 = vrot.slane %v4329_v16, 1 }
  0x2b   :  { %v354_v4 = vrot.slane %v4191_v17, 1  ;;  %v364_v52 = vsel %vm353_vm1, %v361_v38, %v363_v41  ;;  %v371_v17 = vrot.slane %v4378_v40, 1 }
  0x2c   :  { %v358_v18 = vsel %vm353_vm1, %v355_v24, %v4549_v3  ;;  %v366_v53 = vsel %vm353_vm1, %v363_v41, %v365_v48 }
  0x2d   :  { %v356_v33 = vsel %vm353_vm1, %v354_v4, %v355_v24  ;;  %v362_v4 = vsel %vm353_vm1, %v359_v29, %v361_v38  ;;  %v377_v38 = vrot.slane %v4423_v58, 1 }
  0x31   :  { %346 = vrot.lane.b32.xlu1 %v305_v56, %s4250_s7  ;;  %344 = vrot.lane.b32.xlu0 %v297_v10, %s4250_s7  ;;  %v367_v56 = vrot.slane %v4345_v25, 1  ;;  %v369_v10 = vrot.slane %v4360_v32, 1 }
  0x32   :  { %348 = vrot.lane.b32.xlu2 %v313_v60, %s4250_s7 }
  0x33   :  { %v370_v60 = vsel %vm353_vm1, %v367_v56, %v369_v10  ;;  %v368_v24 = vsel %vm353_vm1, %v365_v48, %v367_v56  ;;  %v372_v29 = vsel %vm353_vm1, %v369_v10, %v371_v17  ;;  %v379_v56 = vrot.slane %v4437_v2, 1 }
  0x34   :  { %v381_v10 = vrot.slane %v4442_v6, 1  ;;  %v387_v6 = vrot.slane %v4498_v47, 1 }
  0x36   :  { %v382_v58 = vsel %vm353_vm1, %v379_v56, %v381_v10 }
  0x39   :  { %393 = vrot.lane.b32.xlu1 %v358_v18, %s4251_s6  ;;  %391 = vrot.lane.b32.xlu0 %v356_v33, %s4251_s6  ;;  %v373_v18 = vrot.slane %v4392_v46, 1  ;;  %v375_v33 = vrot.slane %v4405_v51, 1  ;;  %v383_v51 = vrot.slane %v4468_v26, 1  ;;  %v380_v46 = vsel %vm353_vm1, %v377_v38, %v379_v56 }
  0x3a   :  { %395 = vrot.lane.b32.xlu2 %v360_v34, %s4251_s6  ;;  %v7752_v26 = vunpack.c.h.b16 %v4302_v5 }
  0x3b   :  { %v376_v41 = vsel %vm353_vm1, %v373_v18, %v375_v33  ;;  %v374_v40 = vsel %vm353_vm1, %v371_v17, %v373_v18  ;;  %v378_v48 = vsel %vm353_vm1, %v375_v33, %v377_v38  ;;  %v60_v17 = vld [vmem:[%s7735_s0 + $0x8] sm:$0xe]  ;;  %v384_v18 = vsel %vm353_vm1, %v381_v10, %v383_v51 }
  0x3c   :  { %v385_v33 = vrot.slane %v4485_v37, 1  ;;  %v431_v2 = vunpack.c.l.b16 %v60_v17  ;;  %v389_v38 = vrot.slane %v4513_v62, 1 }
  0x3e   :  { %v388_v56 = vsel %vm353_vm1, %v385_v33, %v387_v6  ;;  %v386_v32 = vsel %vm353_vm1, %v383_v51, %v385_v33  ;;  %v435_v10 = vpack.c.b16 %v7752_v26, %v431_v2  ;;  %v390_v25 = vsel %vm353_vm1, %v387_v6, %v389_v38 }
  0x40   :  { %v438_v47 = vrot.slane %v435_v10, 1 }
  0x41   :  { %399 = vrot.lane.b32.xlu1 %v364_v52, %s4251_s6  ;;  %397 = vrot.lane.b32.xlu0 %v362_v4, %s4251_s6 }
  0x42   :  { %401 = vrot.lane.b32.xlu2 %v366_v53, %s4251_s6  ;;  %v439_v62 = vsel %vm353_vm1, %v438_v47, %v4549_v3 }
  0x49   :  { %405 = vrot.lane.b32.xlu1 %v370_v60, %s4251_s6  ;;  %403 = vrot.lane.b32.xlu0 %v368_v24, %s4251_s6 }
  0x4a   :  { %407 = vrot.lane.b32.xlu2 %v372_v29, %s4251_s6 }
  0x51   :  { %411 = vrot.lane.b32.xlu1 %v376_v41, %s4251_s6  ;;  %409 = vrot.lane.b32.xlu0 %v374_v40, %s4251_s6 }
  0x52   :  { %413 = vrot.lane.b32.xlu2 %v378_v48, %s4251_s6 }
  0x59   :  { %417 = vrot.lane.b32.xlu1 %v382_v58, %s4251_s6  ;;  %415 = vrot.lane.b32.xlu0 %v380_v46, %s4251_s6 }
  0x5a   :  { %419 = vrot.lane.b32.xlu2 %v384_v18, %s4251_s6 }
  0x61   :  { %423 = vrot.lane.b32.xlu1 %v388_v56, %s4251_s6  ;;  %421 = vrot.lane.b32.xlu0 %v386_v32, %s4251_s6 }
  0x62   :  { %425 = vrot.lane.b32.xlu2 %v390_v25, %s4251_s6 }
  0x64   :  { %v4612_v17 = vpop.permute.xlu2 %322 }
  0x69   :  { %446 = vrot.lane.b32.xlu1 %v360_v34, %s4252_s10  ;;  %444 = vrot.lane.b32.xlu0 %v439_v62, %s4252_s10  ;;  %v63_v34 = vld [vmem:[%s7735_s0 + $0x98] sm:$0x1]  ;;  %v7864_v62 = vshrl.u32 %v4287_v0, 16 }
  0x6a   :  { %448 = vrot.lane.b32.xlu2 %v362_v4, %s4252_s10 }
  0x6c   :  { %v4619_v51 = vpop.permute.xlu2 %324 }
  0x71   :  { %452 = vrot.lane.b32.xlu1 %v366_v53, %s4252_s10  ;;  %450 = vrot.lane.b32.xlu0 %v364_v52, %s4252_s10 }
  0x72   :  { %454 = vrot.lane.b32.xlu2 %v368_v24, %s4252_s10 }
  0x74   :  { %v4624_v25 = vpop.permute.xlu2 %330 }
  0x79   :  { %458 = vrot.lane.b32.xlu1 %v372_v29, %s4252_s10  ;;  %456 = vrot.lane.b32.xlu0 %v370_v60, %s4252_s10  ;;  %v4650_v60 = vld [vmem:[%s7735_s0 + $0x90] sm:$0xff]  ;;  %v485_v29 = vshrl.u32 %v435_v10, 16 }
  0x7a   :  { %460 = vrot.lane.b32.xlu2 %v374_v40, %s4252_s10  ;;  %v434_v40 = vunpack.c.l.b16 %v63_v34  ;;  %v492_v34 = vrot.slane %v7864_v62, 1 }
  0x7b   :  { %v4629_v3 = vpop.permute.xlu1 %318  ;;  %v4631_v2 = vpop.permute.xlu0 %314 }
  0x7c   :  { %7857 = vst [vmem:[#allocation13_spill] sm:$0xff] %v4631_v2  ;;  %v4633_v47 = vpop.permute.xlu2 %336  ;;  %v437_v24 = vpack.c.b16 %v434_v40, %v434_v40  ;;  %v7865_v40 = vshll.u32 %v4287_v0, 16 }
  0x7d   :  { %7858 = vst [vmem:[#allocation14_spill] sm:$0xff] %v4633_v47 }
  0x7e   :  { %v442_v38 = vrot.slane %v437_v24, 1  ;;  %v493_v26 = vrot.slane %v7865_v40, 2  ;;  %v500_v24 = vrot.slane %v4324_v15, 1 }
  0x80   :  { %v494_v62 = vor.u32 %v493_v26, %v492_v34  ;;  %v505_v26 = vrot.slane %v4333_v19, 2 }
  0x81   :  { %464 = vrot.lane.b32.xlu1 %v378_v48, %s4252_s10  ;;  %462 = vrot.lane.b32.xlu0 %v376_v41, %s4252_s10  ;;  %v488_v41 = vshll.u32 %v435_v10, 16  ;;  %v497_v10 = vrot.slane %v4310_v9, 2 }
  0x82   :  { %466 = vrot.lane.b32.xlu2 %v380_v46, %s4252_s10  ;;  %v440_v46 = vrot.slane %v4650_v60, 1 }
  0x83   :  { %v4641_v52 = vpop.permute.xlu1 %320  ;;  %v4643_v4 = vpop.permute.xlu0 %316 }
  0x84   :  { %7859 = vst [vmem:[#allocation15_spill] sm:$0xff] %v4641_v52  ;;  %v4645_v53 = vpop.permute.xlu2 %342 }
  0x85   :  { %7860 = vst [vmem:[#allocation16_spill] sm:$0xff] %v4643_v4  ;;  %v490_v4 = vrot.slane %v488_v41, 2 }
  0x86   :  { %7861 = vst [vmem:[#allocation17_spill] sm:$0xff] %v4645_v53  ;;  %v487_v53 = vrot.slane %v485_v29, 1 }
  0x89   :  { %470 = vrot.lane.b32.xlu1 %v384_v18, %s4252_s10  ;;  %468 = vrot.lane.b32.xlu0 %v382_v58, %s4252_s10  ;;  %v496_v58 = vrot.slane %v4336_v20, 1 }
  0x8a   :  { %472 = vrot.lane.b32.xlu2 %v386_v32, %s4252_s10  ;;  %v441_v32 = vsel %vm353_vm1, %v387_v6, %v440_v46 }
  0x8b   :  { %v4656_v48 = vpop.permute.xlu1 %328  ;;  %v4658_v33 = vpop.permute.xlu0 %326  ;;  %v498_v40 = vor.u32 %v497_v10, %v496_v58 }
  0x8c   :  { %7862 = vst [vmem:[#allocation18_spill] sm:$0xff] %v4656_v48  ;;  %v4664_v18 = vpop.permute.xlu2 %348  ;;  %v443_v48 = vsel %vm353_vm1, %v440_v46, %v442_v38 }
  0x8d   :  { %7863 = vst [vmem:[#allocation19_spill] sm:$0xff] %v4658_v33  ;;  %v501_v33 = vrot.slane %v4321_v14, 2  ;;  %v499_v38 = vsel %vm483_vm2, %v494_v62, %v498_v40 }
  0x8e   :  { %7866 = vst [vmem:[#allocation20_spill] sm:$0xff] %v4664_v18  ;;  %v491_v18 = vor.u32 %v490_v4, %v487_v53  ;;  %v509_v4 = vrot.slane %v4355_v31, 2 }
  0x8f   :  { %v502_v6 = vor.u32 %v501_v33, %v500_v24  ;;  %v513_v33 = vrot.slane %v4367_v36, 2 }
  0x90   :  { %v495_v52 = vsel %vm483_vm2, %v491_v18, %v494_v62 }
  0x91   :  { %476 = vrot.lane.b32.xlu1 %v441_v32, %s4252_s10  ;;  %474 = vrot.lane.b32.xlu0 %v388_v56, %s4252_s10  ;;  %v504_v32 = vrot.slane %v4349_v27, 1  ;;  %v508_v56 = vrot.slane %v4387_v45, 1  ;;  %v503_v53 = vsel %vm483_vm2, %v498_v40, %v502_v6  ;;  %v516_v40 = vrot.slane %v4397_v49, 1 }
  0x92   :  { %478 = vrot.lane.b32.xlu2 %v443_v48, %s4252_s10  ;;  %v512_v48 = vrot.slane %v4384_v44, 1 }
  0x93   :  { %v4675_v29 = vpop.permute.xlu1 %334  ;;  %v4677_v41 = vpop.permute.xlu0 %332  ;;  %v506_v34 = vor.u32 %v505_v26, %v504_v32  ;;  %v510_v18 = vor.u32 %v509_v4, %v508_v56  ;;  %v524_v56 = vrot.slane %v4426_v59, 1  ;;  %v525_v4 = vrot.slane %v4412_v54, 2 }
  0x94   :  { %7867 = vst [vmem:[#allocation21_spill] sm:$0xff] %v4675_v29  ;;  %v4679_v46 = vpop.permute.xlu2 %395  ;;  %v514_v24 = vor.u32 %v513_v33, %v512_v48  ;;  %v545_v29 = vrot.slane %v4493_v43, 2 }
  0x95   :  { %7868 = vst [vmem:[#allocation22_spill] sm:$0xff] %v4677_v41  ;;  %v520_v41 = vrot.slane %v4432_v63, 1  ;;  %v507_v32 = vsel %vm483_vm2, %v502_v6, %v506_v34 }
  0x96   :  { %7869 = vst [vmem:[#allocation23_spill] sm:$0xff] %v4679_v46  ;;  %v517_v46 = vrot.slane %v4373_v39, 2  ;;  %v515_v26 = vsel %vm483_vm2, %v510_v18, %v514_v24 }
  0x99   :  { %576 = vrot.lane.b32.xlu1 %v499_v38, %s4253_s15  ;;  %574 = vrot.lane.b32.xlu0 %v495_v52, %s4253_s15  ;;  %v521_v38 = vrot.slane %v4400_v50, 2  ;;  %v511_v52 = vsel %vm483_vm2, %v506_v34, %v510_v18 }
  0x9a   :  { %578 = vrot.lane.b32.xlu2 %v503_v53, %s4253_s15  ;;  %v518_v53 = vor.u32 %v517_v46, %v516_v40  ;;  %v532_v46 = vrot.slane %v4480_v35, 1 }
  0x9b   :  { %v4693_v58 = vpop.permute.xlu1 %340  ;;  %v4695_v10 = vpop.permute.xlu0 %338  ;;  %v522_v48 = vor.u32 %v521_v38, %v520_v41  ;;  %v533_v41 = vrot.slane %v4450_v13, 2  ;;  %v536_v38 = vrot.slane %v4471_v28, 1 }
  0x9c   :  { %7870 = vst [vmem:[#allocation24_spill] sm:$0xff] %v4693_v58  ;;  %v4697_v62 = vpop.permute.xlu2 %401  ;;  %v519_v18 = vsel %vm483_vm2, %v514_v24, %v518_v53  ;;  %v528_v58 = vrot.slane %v4447_v12, 1  ;;  %v64_v24 = vld [vmem:[%s7735_s0 + $0x98] sm:$0x3] }
  0x9d   :  { %7871 = vst [vmem:[#allocation25_spill] sm:$0xff] %v4695_v10  ;;  %v526_v10 = vor.u32 %v525_v4, %v524_v56  ;;  %v523_v34 = vsel %vm483_vm2, %v518_v53, %v522_v48  ;;  %v534_v56 = vor.u32 %v533_v41, %v532_v46  ;;  %v548_v41 = vrot.slane %v4516_v7, 1 }
  0x9e   :  { %7872 = vst [vmem:[#allocation26_spill] sm:$0xff] %v4697_v62 }
  0x9f   :  { %v527_v40 = vsel %vm483_vm2, %v522_v48, %v526_v10 }
  0xa1   :  { %582 = vrot.lane.b32.xlu1 %v511_v52, %s4253_s15  ;;  %580 = vrot.lane.b32.xlu0 %v507_v32, %s4253_s15  ;;  %v529_v52 = vrot.slane %v4418_v57, 2  ;;  %v537_v32 = vrot.slane %v4457_v21, 2 }
  0xa2   :  { %584 = vrot.lane.b32.xlu2 %v515_v26, %s4253_s15 }
  0xa3   :  { %v4711_v33 = vpop.permute.xlu1 %346  ;;  %v4713_v62 = vpop.permute.xlu0 %344  ;;  %v530_v26 = vor.u32 %v529_v52, %v528_v58  ;;  %v538_v48 = vor.u32 %v537_v32, %v536_v38 }
  0xa4   :  { %7873 = vst [vmem:[#allocation27_spill] sm:$0xff] %v4711_v33  ;;  %v4715_v6 = vpop.permute.xlu2 %407  ;;  %v544_v33 = vrot.slane %v4522_v23, 1 }
  0xa5   :  { %7874 = vst [vmem:[#allocation28_spill] sm:$0xff] %v4713_v62  ;;  %v535_v58 = vsel %vm483_vm2, %v530_v26, %v534_v56  ;;  %v531_v52 = vsel %vm483_vm2, %v526_v10, %v530_v26  ;;  %v539_v46 = vsel %vm483_vm2, %v534_v56, %v538_v48 }
  0xa6   :  { %7875 = vst [vmem:[#allocation29_spill] sm:$0xff] %v4715_v6  ;;  %v481_v6 = vunpack.c.l.b16 %v64_v24  ;;  %v546_v24 = vor.u32 %v545_v29, %v544_v33  ;;  %v552_v33 = vrot.slane %v4527_v30, 1 }
  0xa8   :  { %v4747_v38 = vpack.c.b16 %v481_v6, %v481_v6 }
  0xa9   :  { %588 = vrot.lane.b32.xlu1 %v523_v34, %s4253_s15  ;;  %586 = vrot.lane.b32.xlu0 %v519_v18, %s4253_s15  ;;  %v540_v34 = vrot.slane %v4490_v42, 1  ;;  %v541_v18 = vrot.slane %v4461_v22, 2 }
  0xaa   :  { %590 = vrot.lane.b32.xlu2 %v527_v40, %s4253_s15  ;;  %v549_v40 = vrot.slane %v4505_v55, 2  ;;  %v566_v6 = vshrl.u32 %v4747_v38, 16 }
  0xab   :  { %v4732_v4 = vpop.permute.xlu1 %393  ;;  %v4734_v53 = vpop.permute.xlu0 %391  ;;  %v542_v32 = vor.u32 %v541_v18, %v540_v34  ;;  %v553_v18 = vrot.slane %v4511_v61, 2 }
  0xac   :  { %7876 = vst [vmem:[#allocation30_spill] sm:$0xff] %v4732_v4  ;;  %v4736_v62 = vpop.permute.xlu2 %413  ;;  %v550_v56 = vor.u32 %v549_v40, %v548_v41  ;;  %v569_v4 = vshll.u32 %v4747_v38, 16  ;;  %v65_v41 = vld [vmem:[%s7735_s0 + $0x8] sm:$0xc] }
  0xad   :  { %7877 = vst [vmem:[#allocation31_spill] sm:$0xff] %v4734_v53  ;;  %v7754_v53 = vshll.u32 %v4650_v60, 16  ;;  %v547_v34 = vsel %vm483_vm2, %v542_v32, %v546_v24  ;;  %v543_v29 = vsel %vm483_vm2, %v538_v48, %v542_v32  ;;  %v554_v48 = vor.u32 %v553_v18, %v552_v33 }
  0xae   :  { %7878 = vst [vmem:[#allocation32_spill] sm:$0xff] %v4736_v62  ;;  %v7753_v62 = vshrl.u32 %v4650_v60, 16  ;;  %v551_v40 = vsel %vm483_vm2, %v546_v24, %v550_v56  ;;  %v615_v33 = vrot.slane %v4287_v0, 2  ;;  %v4792_v18 = vrot.slane %v4292_v1, 2 }
  0xb1   :  { %594 = vrot.lane.b32.xlu1 %v535_v58, %s4253_s15  ;;  %592 = vrot.lane.b32.xlu0 %v531_v52, %s4253_s15  ;;  %v559_v52 = vrot.slane %v7753_v62, 1 }
  0xb2   :  { %596 = vrot.lane.b32.xlu2 %v539_v46, %s4253_s15  ;;  %v562_v46 = vrot.slane %v7754_v53, 2 }
  0xb3   :  { %v4754_v10 = vpop.permute.xlu1 %399  ;;  %v4756_v26 = vpop.permute.xlu0 %397 }
  0xb4   :  { %7879 = vst [vmem:[#allocation33_spill] sm:$0xff] %v4754_v10  ;;  %v4760_v58 = vpop.permute.xlu2 %419  ;;  %v563_v32 = vor.u32 %v562_v46, %v559_v52  ;;  %v611_v10 = vunpack.c.l.b16 %v65_v41  ;;  %v621_v46 = vrot.slane %v4316_v11, 2 }
  0xb5   :  { %7880 = vst [vmem:[#allocation34_spill] sm:$0xff] %v4756_v26  ;;  %v571_v26 = vrot.slane %v569_v4, 2  ;;  %v555_v4 = vsel %vm483_vm2, %v550_v56, %v554_v48 }
  0xb6   :  { %7881 = vst [vmem:[#allocation35_spill] sm:$0xff] %v4760_v58  ;;  %v568_v58 = vrot.slane %v566_v6, 1  ;;  %v564_v24 = vsel %vm483_vm2, %v554_v48, %v563_v32  ;;  %v7885_v6 = vunpack.c.h.b16 %v4302_v5  ;;  %v619_v5 = vrot.slane %v4307_v8, 2  ;;  %v7891_v48 = vld [vmem:[#allocation3_spill] sm:$0xff] }
  0xb7   :  { %v623_v8 = vrot.slane %v4329_v16, 2  ;;  %v7893_v16 = vld [vmem:[#allocation4_spill] sm:$0xff] }
  0xb8   :  { %v572_v47 = vor.u32 %v571_v26, %v568_v58  ;;  %v4807_v1 = vsel %vm613_vm3, %v4792_v18, %v619_v5 }
  0xb9   :  { %600 = vrot.lane.b32.xlu1 %v547_v34, %s4253_s15  ;;  %598 = vrot.lane.b32.xlu0 %v543_v29, %s4253_s15  ;;  %v612_v34 = vpack.c.b16 %v7885_v6, %v611_v10  ;;  %v618_v10 = vsel %vm613_vm3, %v615_v33, %v4792_v18  ;;  %v4826_v6 = vsel %vm613_vm3, %v619_v5, %v621_v46 }
  0xba   :  { %602 = vrot.lane.b32.xlu2 %v551_v40, %s4253_s15  ;;  %v573_v29 = vsel %vm483_vm2, %v563_v32, %v572_v47  ;;  %v625_v32 = vrot.slane %v7891_v48, 2 }
  0xbb   :  { %v4777_v62 = vpop.permute.xlu1 %405  ;;  %v4779_v53 = vpop.permute.xlu0 %403  ;;  %v614_v26 = vrot.slane %v612_v34, 2  ;;  %v627_v34 = vrot.slane %v7893_v16, 2 }
  0xbc   :  { %7882 = vst [vmem:[#allocation36_spill] sm:$0xff] %v4777_v62  ;;  %v4781_v2 = vpop.permute.xlu2 %425  ;;  %v4829_v11 = vsel %vm613_vm3, %v623_v8, %v625_v32 }
  0xbd   :  { %7883 = vst [vmem:[#allocation37_spill] sm:$0xff] %v4779_v53  ;;  %v616_v52 = vsel %vm613_vm3, %v614_v26, %v615_v33  ;;  %v628_v48 = vsel %vm613_vm3, %v625_v32, %v627_v34 }
  0xbe   :  { %7884 = vst [vmem:[#allocation38_spill] sm:$0xff] %v4781_v2 }
  0xc1   :  { %606 = vrot.lane.b32.xlu1 %v564_v24, %s4253_s15  ;;  %604 = vrot.lane.b32.xlu0 %v555_v4, %s4253_s15  ;;  %v4823_v4 = vsel %vm613_vm3, %v621_v46, %v623_v8 }
  0xc2   :  { %608 = vrot.lane.b32.xlu2 %v573_v29, %s4253_s15  ;;  %v7894_v29 = vld [vmem:[#allocation5_spill] sm:$0xff] }
  0xc3   :  { %v4795_v58 = vpop.permute.xlu1 %411  ;;  %v4797_v56 = vpop.permute.xlu0 %409  ;;  %v629_v33 = vrot.slane %v7894_v29, 2  ;;  %v7899_v29 = vld [vmem:[#allocation7_spill] sm:$0xff] }
  0xc4   :  { %7886 = vst [vmem:[#allocation39_spill] sm:$0xff] %v4795_v58  ;;  %v4800_v47 = vpop.permute.xlu2 %448 }
  0xc5   :  { %7887 = vst [vmem:[#allocation40_spill] sm:$0xff] %v4797_v56  ;;  %v4847_v8 = vsel %vm613_vm3, %v627_v34, %v629_v33  ;;  %v7906_v56 = vld [vmem:[#allocation11_spill] sm:$0xff] }
  0xc6   :  { %7888 = vst [vmem:[#allocation41_spill] sm:$0xff] %v4800_v47 }
  0xc9   :  { %653 = vrot.lane.b32.xlu1 %v618_v10, %s4254_s20  ;;  %651 = vrot.lane.b32.xlu0 %v616_v52, %s4254_s20  ;;  %v7897_v10 = vld [vmem:[#allocation6_spill] sm:$0xff] }
  0xca   :  { %655 = vrot.lane.b32.xlu2 %v4807_v1, %s4254_s20  ;;  %v631_v52 = vrot.slane %v7897_v10, 2 }
  0xcb   :  { %v4815_v41 = vpop.permute.xlu1 %417  ;;  %v4817_v40 = vpop.permute.xlu0 %415 }
  0xcc   :  { %7889 = vst [vmem:[#allocation42_spill] sm:$0xff] %v4815_v41  ;;  %v4820_v24 = vpop.permute.xlu2 %454  ;;  %v632_v16 = vsel %vm613_vm3, %v629_v33, %v631_v52 }
  0xcd   :  { %7890 = vst [vmem:[#allocation43_spill] sm:$0xff] %v4817_v40  ;;  %v7903_v40 = vld [vmem:[#allocation9_spill] sm:$0xff] }
  0xce   :  { %7892 = vst [vmem:[#allocation3_spill] sm:$0xff] %v4820_v24  ;;  %v7900_v24 = vld [vmem:[#allocation8_spill] sm:$0xff]  ;;  %v637_v41 = vrot.slane %v7903_v40, 2 }
  0xd1   :  { %659 = vrot.lane.b32.xlu1 %v4823_v4, %s4254_s20  ;;  %657 = vrot.lane.b32.xlu0 %v4826_v6, %s4254_s20 }
  0xd2   :  { %661 = vrot.lane.b32.xlu2 %v4829_v11, %s4254_s20 }
  0xd3   :  { %v4839_v26 = vpop.permute.xlu1 %423  ;;  %v4841_v5 = vpop.permute.xlu0 %421 }
  0xd4   :  { %7895 = vst [vmem:[#allocation4_spill] sm:$0xff] %v4839_v26  ;;  %v4844_v46 = vpop.permute.xlu2 %460  ;;  %v633_v26 = vrot.slane %v7899_v29, 2 }
  0xd5   :  { %7896 = vst [vmem:[#allocation5_spill] sm:$0xff] %v4841_v5  ;;  %v635_v5 = vrot.slane %v7900_v24, 2  ;;  %v7905_v24 = vld [vmem:[#allocation10_spill] sm:$0xff] }
  0xd6   :  { %7898 = vst [vmem:[#allocation6_spill] sm:$0xff] %v4844_v46  ;;  %v634_v33 = vsel %vm613_vm3, %v631_v52, %v633_v26  ;;  %v639_v29 = vrot.slane %v7905_v24, 2  ;;  %v66_v52 = vld [vmem:[%s7735_s0 + $0x10] sm:$0xc]  ;;  %v7910_v24 = vld [vmem:[#allocation12_spill] sm:$0xff] }
  0xd7   :  { %v636_v34 = vsel %vm613_vm3, %v633_v26, %v635_v5  ;;  %v638_v47 = vsel %vm613_vm3, %v635_v5, %v637_v41 }
  0xd8   :  { %v640_v5 = vsel %vm613_vm3, %v637_v41, %v639_v29 }
  0xd9   :  { %665 = vrot.lane.b32.xlu1 %v4847_v8, %s4254_s20  ;;  %663 = vrot.lane.b32.xlu0 %v628_v48, %s4254_s20 }
  0xda   :  { %667 = vrot.lane.b32.xlu2 %v632_v16, %s4254_s20 }
  0xdb   :  { %v4857_v10 = vpop.permute.xlu1 %446  ;;  %v4859_v46 = vpop.permute.xlu0 %444 }
  0xdc   :  { %7901 = vst [vmem:[#allocation7_spill] sm:$0xff] %v4857_v10  ;;  %v4862_v32 = vpop.permute.xlu2 %466  ;;  %v641_v10 = vrot.slane %v7906_v56, 2 }
  0xdd   :  { %7902 = vst [vmem:[#allocation8_spill] sm:$0xff] %v4859_v46 }
  0xde   :  { %7904 = vst [vmem:[#allocation9_spill] sm:$0xff] %v4862_v32  ;;  %v643_v32 = vrot.slane %v4485_v37, 2  ;;  %v642_v26 = vsel %vm613_vm3, %v639_v29, %v641_v10  ;;  %v4889_v37 = vrot.slane %v4650_v60, 2 }
  0xe0   :  { %v644_v56 = vsel %vm613_vm3, %v641_v10, %v643_v32  ;;  %v649_v10 = vrot.slane %v4747_v38, 2 }
  0xe1   :  { %671 = vrot.lane.b32.xlu1 %v636_v34, %s4254_s20  ;;  %669 = vrot.lane.b32.xlu0 %v634_v33, %s4254_s20 }
  0xe2   :  { %673 = vrot.lane.b32.xlu2 %v638_v47, %s4254_s20 }
  0xe3   :  { %v4872_v46 = vpop.permute.xlu1 %452  ;;  %v4874_v40 = vpop.permute.xlu0 %450 }
  0xe4   :  { %7907 = vst [vmem:[#allocation10_spill] sm:$0xff] %v4872_v46  ;;  %v4877_v58 = vpop.permute.xlu2 %472  ;;  %v691_v46 = vunpack.c.l.b16 %v66_v52  ;;  %v650_v52 = vsel %vm613_vm3, %v4889_v37, %v649_v10 }
  0xe5   :  { %7908 = vst [vmem:[#allocation11_spill] sm:$0xff] %v4874_v40  ;;  %v645_v40 = vrot.slane %v7910_v24, 2 }
  0xe6   :  { %7909 = vst [vmem:[#allocation44_spill] sm:$0xff] %v4877_v58  ;;  %v7755_v58 = vunpack.c.h.b16 %v4287_v0 }
  0xe7   :  { %v648_v53 = vsel %vm613_vm3, %v645_v40, %v4889_v37  ;;  %v646_v24 = vsel %vm613_vm3, %v643_v32, %v645_v40 }
  0xe8   :  { %v695_v62 = vpack.c.b16 %v7755_v58, %v691_v46 }
  0xe9   :  { %677 = vrot.lane.b32.xlu1 %v642_v26, %s4254_s20  ;;  %675 = vrot.lane.b32.xlu0 %v640_v5, %s4254_s20 }
  0xea   :  { %679 = vrot.lane.b32.xlu2 %v644_v56, %s4254_s20  ;;  %v748_v58 = vshll.u32 %v695_v62, 16 }
  0xeb   :  { %v4893_v41 = vpop.permute.xlu1 %458  ;;  %v4895_v29 = vpop.permute.xlu0 %456 }
  0xec   :  { %7911 = vst [vmem:[#allocation12_spill] sm:$0xff] %v4893_v41  ;;  %v4898_v2 = vpop.permute.xlu2 %478 }
  0xed   :  { %7912 = vst [vmem:[#allocation45_spill] sm:$0xff] %v4895_v29  ;;  %v698_v29 = vrot.slane %v695_v62, 2 }
  0xee   :  { %7913 = vst [vmem:[#allocation46_spill] sm:$0xff] %v4898_v2 }
  0xef   :  { %v699_v32 = vsel %vm613_vm3, %v698_v29, %v4792_v18 }
  0xf1   :  { %683 = vrot.lane.b32.xlu1 %v648_v53, %s4254_s20  ;;  %681 = vrot.lane.b32.xlu0 %v646_v24, %s4254_s20 }
  0xf2   :  { %685 = vrot.lane.b32.xlu2 %v650_v52, %s4254_s20 }
  0xf3   :  { %v4910_v38 = vpop.permute.xlu1 %464  ;;  %v4912_v2 = vpop.permute.xlu0 %462 }
  0xf4   :  { %v4914_v41 = vpop.permute.xlu2 %578 }
  0xf9   :  { %706 = vrot.lane.b32.xlu1 %v4807_v1, %s4255_s23  ;;  %704 = vrot.lane.b32.xlu0 %v699_v32, %s4255_s23  ;;  %v4965_v32 = vld [vmem:[%s7735_s0 + $0x98] sm:$0xff] }
  0xfa   :  { %708 = vrot.lane.b32.xlu2 %v4826_v6, %s4255_s23 }
  0xfb   :  { %v4923_v46 = vpop.permute.xlu1 %470  ;;  %v4925_v40 = vpop.permute.xlu0 %468 }
  0xfc   :  { %v4927_v10 = vpop.permute.xlu2 %584 }
 0x101   :  { %712 = vrot.lane.b32.xlu1 %v4829_v11, %s4255_s23  ;;  %710 = vrot.lane.b32.xlu0 %v4823_v4, %s4255_s23 }
 0x102   :  { %714 = vrot.lane.b32.xlu2 %v628_v48, %s4255_s23  ;;  %v69_v48 = vld [vmem:[%s7735_s0 + $0xa0] sm:$0x3] }
 0x103   :  { %v4934_v18 = vpop.permute.xlu1 %476  ;;  %v4936_v1 = vpop.permute.xlu0 %474 }
 0x104   :  { %7914 = vst [vmem:[#allocation47_spill] sm:$0xff] %v4934_v18  ;;  %v4938_v29 = vpop.permute.xlu2 %590 }
 0x105   :  { %7915 = vst [vmem:[#allocation48_spill] sm:$0xff] %v4936_v1 }
 0x109   :  { %718 = vrot.lane.b32.xlu1 %v632_v16, %s4255_s23  ;;  %716 = vrot.lane.b32.xlu0 %v4847_v8, %s4255_s23 }
 0x10a   :  { %720 = vrot.lane.b32.xlu2 %v634_v33, %s4255_s23  ;;  %v694_v33 = vunpack.c.l.b16 %v69_v48 }
 0x10b   :  { %v4944_v6 = vpop.permute.xlu1 %576  ;;  %v4946_v11 = vpop.permute.xlu0 %574 }
 0x10c   :  { %v4948_v4 = vpop.permute.xlu2 %596 }
 0x111   :  { %724 = vrot.lane.b32.xlu1 %v638_v47, %s4255_s23  ;;  %722 = vrot.lane.b32.xlu0 %v636_v34, %s4255_s23  ;;  %v697_v47 = vpack.c.b16 %v694_v33, %v694_v33  ;;  %v745_v34 = vshrl.u32 %v695_v62, 16 }
 0x112   :  { %726 = vrot.lane.b32.xlu2 %v640_v5, %s4255_s23  ;;  %v700_v5 = vrot.slane %v4965_v32, 2 }
 0x113   :  { %v4956_v16 = vpop.permute.xlu1 %582  ;;  %v4958_v8 = vpop.permute.xlu0 %580  ;;  %v702_v18 = vrot.slane %v697_v47, 2  ;;  %v747_v62 = vrot.slane %v745_v34, 2  ;;  %v761_v47 = vrot.slane %v4333_v19, 3  ;;  %v764_v34 = vrot.slane %v4387_v45, 2 }
 0x114   :  { %7916 = vst [vmem:[#allocation49_spill] sm:$0xff] %v4956_v16  ;;  %v4960_v52 = vpop.permute.xlu2 %602  ;;  %v750_v16 = vrot.slane %v748_v58, 3 }
 0x115   :  { %7917 = vst [vmem:[#allocation50_spill] sm:$0xff] %v4958_v8  ;;  %v753_v8 = vrot.slane %v4310_v9, 3 }
 0x116   :  { %7918 = vst [vmem:[#allocation51_spill] sm:$0xff] %v4960_v52  ;;  %v752_v52 = vrot.slane %v4336_v20, 2 }
 0x118   :  { %v754_v9 = vor.u32 %v753_v8, %v752_v52  ;;  %v769_v8 = vrot.slane %v4367_v36, 3  ;;  %v772_v52 = vrot.slane %v4397_v49, 2  ;;  %v776_v49 = vrot.slane %v4432_v63, 2 }
 0x119   :  { %730 = vrot.lane.b32.xlu1 %v644_v56, %s4255_s23  ;;  %728 = vrot.lane.b32.xlu0 %v642_v26, %s4255_s23  ;;  %v756_v56 = vrot.slane %v4324_v15, 2  ;;  %v757_v26 = vrot.slane %v4321_v14, 3  ;;  %v751_v15 = vor.u32 %v750_v16, %v747_v62  ;;  %v768_v16 = vrot.slane %v4384_v44, 2 }
 0x11a   :  { %732 = vrot.lane.b32.xlu2 %v646_v24, %s4255_s23  ;;  %v701_v24 = vsel %vm613_vm3, %v4889_v37, %v700_v5  ;;  %v781_v62 = vrot.slane %v4412_v54, 3 }
 0x11b   :  { %v4971_v1 = vpop.permute.xlu1 %588  ;;  %v4973_v48 = vpop.permute.xlu0 %586  ;;  %v758_v20 = vor.u32 %v757_v26, %v756_v56  ;;  %v755_v19 = vsel %vm743_vm4, %v751_v15, %v754_v9  ;;  %v770_v56 = vor.u32 %v769_v8, %v768_v16  ;;  %v780_v26 = vrot.slane %v4426_v59, 2 }
 0x11c   :  { %7919 = vst [vmem:[#allocation52_spill] sm:$0xff] %v4971_v1  ;;  %v4977_v33 = vpop.permute.xlu2 %608  ;;  %v703_v1 = vsel %vm613_vm3, %v700_v5, %v702_v18  ;;  %v773_v5 = vrot.slane %v4373_v39, 3  ;;  %v777_v39 = vrot.slane %v4400_v50, 3  ;;  %v785_v15 = vrot.slane %v4418_v57, 3 }
 0x11d   :  { %7920 = vst [vmem:[#allocation53_spill] sm:$0xff] %v4973_v48  ;;  %v760_v48 = vrot.slane %v4349_v27, 2  ;;  %v759_v27 = vsel %vm743_vm4, %v754_v9, %v758_v20  ;;  %v782_v50 = vor.u32 %v781_v62, %v780_v26  ;;  %v788_v57 = vrot.slane %v4480_v35, 2  ;;  %v70_v35 = vld [vmem:[%s7735_s0 + $0xa0] sm:$0x7] }
 0x11e   :  { %v774_v36 = vor.u32 %v773_v5, %v772_v52  ;;  %v778_v63 = vor.u32 %v777_v39, %v776_v49  ;;  %v793_v16 = vrot.slane %v4457_v21, 3  ;;  %v797_v52 = vrot.slane %v4461_v22, 3 }
 0x11f   :  { %v762_v37 = vor.u32 %v761_v47, %v760_v48  ;;  %v800_v22 = vrot.slane %v4522_v23, 2  ;;  %v804_v49 = vrot.slane %v4516_v7, 2  ;;  %v805_v39 = vrot.slane %v4505_v55, 3 }
 0x120   :  { %v775_v9 = vsel %vm743_vm4, %v770_v56, %v774_v36  ;;  %v817_v55 = vshrl.u32 %v4965_v32, 16  ;;  %v820_v23 = vshll.u32 %v4965_v32, 16 }
 0x121   :  { %736 = vrot.lane.b32.xlu1 %v701_v24, %s4255_s23  ;;  %734 = vrot.lane.b32.xlu0 %v648_v53, %s4255_s23  ;;  %v765_v53 = vrot.slane %v4355_v31, 3  ;;  %v806_v7 = vor.u32 %v805_v39, %v804_v49 }
 0x122   :  { %738 = vrot.lane.b32.xlu2 %v703_v1, %s4255_s23  ;;  %v763_v1 = vsel %vm743_vm4, %v758_v20, %v762_v37  ;;  %v784_v20 = vrot.slane %v4447_v12, 2  ;;  %v779_v12 = vsel %vm743_vm4, %v774_v36, %v778_v63  ;;  %v801_v36 = vrot.slane %v4493_v43, 3 }
 0x123   :  { %v4989_v14 = vpop.permute.xlu1 %594  ;;  %v4991_v58 = vpop.permute.xlu0 %592  ;;  %v766_v48 = vor.u32 %v765_v53, %v764_v34  ;;  %v789_v34 = vrot.slane %v4450_v13, 3  ;;  %v792_v53 = vrot.slane %v4471_v28, 2 }
 0x124   :  { %7921 = vst [vmem:[#allocation54_spill] sm:$0xff] %v4989_v14  ;;  %v4993_v18 = vpop.permute.xlu2 %655  ;;  %v802_v43 = vor.u32 %v801_v36, %v800_v22 }
 0x125   :  { %7922 = vst [vmem:[#allocation55_spill] sm:$0xff] %v4991_v58  ;;  %v771_v24 = vsel %vm743_vm4, %v766_v48, %v770_v56  ;;  %v767_v47 = vsel %vm743_vm4, %v762_v37, %v766_v48  ;;  %v790_v5 = vor.u32 %v789_v34, %v788_v57  ;;  %v794_v13 = vor.u32 %v793_v16, %v792_v53 }
 0x126   :  { %v7934_v57 = vshrl.u32 %v4650_v60, 16  ;;  %v7935_v53 = vshll.u32 %v4650_v60, 16 }
 0x127   :  { %v795_v26 = vsel %vm743_vm4, %v790_v5, %v794_v13 }
 0x128   :  { %v812_v34 = vrot.slane %v7934_v57, 2  ;;  %v813_v16 = vrot.slane %v7935_v53, 3 }
 0x129   :  { %836 = vrot.lane.b32.xlu1 %v759_v27, %s4256_s28  ;;  %834 = vrot.lane.b32.xlu0 %v755_v19, %s4256_s28  ;;  %v786_v27 = vor.u32 %v785_v15, %v784_v20  ;;  %v783_v19 = vsel %vm743_vm4, %v778_v63, %v782_v50 }
 0x12a   :  { %838 = vrot.lane.b32.xlu2 %v763_v1, %s4256_s28  ;;  %v796_v1 = vrot.slane %v4490_v42, 2  ;;  %v741_v42 = vunpack.c.l.b16 %v70_v35 }
 0x12b   :  { %v5007_v31 = vpop.permute.xlu1 %600  ;;  %v5009_v44 = vpop.permute.xlu0 %598  ;;  %v787_v8 = vsel %vm743_vm4, %v782_v50, %v786_v27  ;;  %v791_v62 = vsel %vm743_vm4, %v786_v27, %v790_v5 }
 0x12c   :  { %7923 = vst [vmem:[#allocation56_spill] sm:$0xff] %v5007_v31  ;;  %v5011_v45 = vpop.permute.xlu2 %661  ;;  %v798_v48 = vor.u32 %v797_v52, %v796_v1  ;;  %v5061_v20 = vpack.c.b16 %v741_v42, %v741_v42  ;;  %v822_v1 = vrot.slane %v820_v23, 3  ;;  %v71_v52 = vld [vmem:[%s7735_s0 + $0x10] sm:$0x8]  ;;  %v5111_v23 = vld [vmem:[%s7735_s0 + $0x20] sm:$0xff] }
 0x12d   :  { %7924 = vst [vmem:[#allocation57_spill] sm:$0xff] %v5009_v44  ;;  %v871_v22 = vunpack.c.l.b16 %v71_v52  ;;  %v5141_v52 = vld [vmem:[%s7735_s0 + $0x38] sm:$0xff] }
 0x12e   :  { %v829_v50 = vshll.u32 %v5061_v20, 16 }
 0x131   :  { %842 = vrot.lane.b32.xlu1 %v771_v24, %s4256_s28  ;;  %840 = vrot.lane.b32.xlu0 %v767_v47, %s4256_s28  ;;  %v799_v24 = vsel %vm743_vm4, %v794_v13, %v798_v48  ;;  %v808_v47 = vrot.slane %v4527_v30, 2  ;;  %v831_v13 = vrot.slane %v829_v50, 3 }
 0x132   :  { %844 = vrot.lane.b32.xlu2 %v775_v9, %s4256_s28  ;;  %v809_v9 = vrot.slane %v4511_v61, 3  ;;  %v826_v61 = vshrl.u32 %v5061_v20, 16 }
 0x133   :  { %v5025_v59 = vpop.permute.xlu1 %606  ;;  %v5027_v54 = vpop.permute.xlu0 %604 }
 0x134   :  { %7925 = vst [vmem:[#allocation58_spill] sm:$0xff] %v5025_v59  ;;  %v5029_v37 = vpop.permute.xlu2 %667  ;;  %v810_v30 = vor.u32 %v809_v9, %v808_v47  ;;  %v828_v5 = vrot.slane %v826_v61, 2  ;;  %v7939_v47 = vunpack.c.h.b16 %v4287_v0  ;;  %v877_v0 = vrot.slane %v5111_v23, 3  ;;  %v4193_v59 = vld [vmem:[%s7735_s0 + $0xb0] sm:$0xff]  }
 0x135   :  { %7926 = vst [vmem:[#allocation59_spill] sm:$0xff] %v5027_v54 }
 0x136   :  { %7927 = vst [vmem:[#allocation60_spill] sm:$0xff] %v5029_v37  ;;  %v811_v35 = vsel %vm743_vm4, %v806_v7, %v810_v30  ;;  %v832_v39 = vor.u32 %v831_v13, %v828_v5  ;;  %v872_v9 = vpack.c.b16 %v7939_v47, %v871_v22  ;;  %v5165_v47 = vld [vmem:[%s7735_s0 + $0x48] sm:$0xff] }
 0x139   :  { %848 = vrot.lane.b32.xlu1 %v783_v19, %s4256_s28  ;;  %846 = vrot.lane.b32.xlu0 %v779_v12, %s4256_s28  ;;  %v807_v19 = vsel %vm743_vm4, %v802_v43, %v806_v7  ;;  %v803_v12 = vsel %vm743_vm4, %v798_v48, %v802_v43  ;;  %v814_v48 = vor.u32 %v813_v16, %v812_v34  ;;  %v5105_v7 = vld [vmem:[%s7735_s0 + $0x18] sm:$0xff] }
 0x13a   :  { %850 = vrot.lane.b32.xlu2 %v787_v8, %s4256_s28  ;;  %v819_v8 = vrot.slane %v817_v55, 2  ;;  %v875_v55 = vrot.slane %v5105_v7, 3 }
 0x13b   :  { %v5046_v28 = vpop.permute.xlu1 %653  ;;  %v5048_v21 = vpop.permute.xlu0 %651 }
 0x13c   :  { %7928 = vst [vmem:[#allocation61_spill] sm:$0xff] %v5046_v28  ;;  %v5050_v56 = vpop.permute.xlu2 %673  ;;  %v823_v42 = vor.u32 %v822_v1, %v819_v8  ;;  %v878_v34 = vsel %vm873_vm5, %v875_v55, %v877_v0  ;;  %v5135_v8 = vld [vmem:[%s7735_s0 + $0x30] sm:$0xff] }
 0x13d   :  { %7929 = vst [vmem:[#allocation62_spill] sm:$0xff] %v5048_v21  ;;  %v881_v1 = vrot.slane %v5135_v8, 3 }
 0x13e   :  { %7930 = vst [vmem:[#allocation63_spill] sm:$0xff] %v5050_v56  ;;  %v833_v43 = vsel %vm743_vm4, %v823_v42, %v832_v39 }
 0x141   :  { %854 = vrot.lane.b32.xlu1 %v795_v26, %s4256_s28  ;;  %852 = vrot.lane.b32.xlu0 %v791_v62, %s4256_s28  ;;  %v824_v62 = vsel %vm743_vm4, %v814_v48, %v823_v42 }
 0x142   :  { %856 = vrot.lane.b32.xlu2 %v799_v24, %s4256_s28  ;;  %v815_v24 = vsel %vm743_vm4, %v810_v30, %v814_v48  ;;  %v874_v30 = vrot.slane %v872_v9, 3  ;;  %v5152_v48 = vld [vmem:[%s7735_s0 + $0x40] sm:$0xff]  ;;  %v887_v9 = vrot.slane %v5165_v47, 3 }
 0x143   :  { %v5068_v15 = vpop.permute.xlu1 %659  ;;  %v5070_v63 = vpop.permute.xlu0 %657  ;;  %v885_v42 = vrot.slane %v5152_v48, 3 }
 0x144   :  { %7931 = vst [vmem:[#allocation64_spill] sm:$0xff] %v5068_v15  ;;  %v5074_v27 = vpop.permute.xlu2 %679  ;;  %v876_v53 = vsel %vm873_vm5, %v874_v30, %v875_v55 }
 0x145   :  { %7932 = vst [vmem:[#allocation65_spill] sm:$0xff] %v5070_v63 }
 0x146   :  { %7933 = vst [vmem:[#allocation66_spill] sm:$0xff] %v5074_v27 }
 0x149   :  { %860 = vrot.lane.b32.xlu1 %v807_v19, %s4256_s28  ;;  %858 = vrot.lane.b32.xlu0 %v803_v12, %s4256_s28  ;;  %v5122_v19 = vld [vmem:[%s7735_s0 + $0x28] sm:$0xff] }
 0x14a   :  { %862 = vrot.lane.b32.xlu2 %v811_v35, %s4256_s28  ;;  %v879_v12 = vrot.slane %v5122_v19, 3  ;;  %v883_v35 = vrot.slane %v5141_v52, 3 }
 0x14b   :  { %v5089_v36 = vpop.permute.xlu1 %665  ;;  %v5091_v49 = vpop.permute.xlu0 %663 }
 0x14c   :  { %7936 = vst [vmem:[#allocation67_spill] sm:$0xff] %v5089_v36  ;;  %v5093_v26 = vpop.permute.xlu2 %685  ;;  %v880_v16 = vsel %vm873_vm5, %v877_v0, %v879_v12  ;;  %v884_v39 = vsel %vm873_vm5, %v881_v1, %v883_v35  ;;  %v4186_v36 = vunpack.c.h.b16 %v4193_v59 }
 0x14d   :  { %7937 = vst [vmem:[#allocation68_spill] sm:$0xff] %v5091_v49 }
 0x14e   :  { %7938 = vst [vmem:[#allocation69_spill] sm:$0xff] %v5093_v26  ;;  %v5260_v26 = vld [vmem:[%s7735_s0 + $0x88] sm:$0xff] }
 0x14f   :  { %v903_v49 = vrot.slane %v5260_v26, 3 }
 0x151   :  { %866 = vrot.lane.b32.xlu1 %v824_v62, %s4256_s28  ;;  %864 = vrot.lane.b32.xlu0 %v815_v24, %s4256_s28  ;;  %v882_v62 = vsel %vm873_vm5, %v879_v12, %v881_v1  ;;  %v886_v24 = vsel %vm873_vm5, %v883_v35, %v885_v42  ;;  %v5182_v12 = vld [vmem:[%s7735_s0 + $0x58] sm:$0xff]  ;;  %v888_v1 = vsel %vm873_vm5, %v885_v42, %v887_v9 }
 0x152   :  { %868 = vrot.lane.b32.xlu2 %v833_v43, %s4256_s28  ;;  %v5171_v43 = vld [vmem:[%s7735_s0 + $0x50] sm:$0xff] }
 0x153   :  { %v5115_v61 = vpop.permute.xlu1 %671  ;;  %v5117_v50 = vpop.permute.xlu0 %669  ;;  %v889_v55 = vrot.slane %v5171_v43, 3 }
 0x154   :  { %7940 = vst [vmem:[#allocation70_spill] sm:$0xff] %v5115_v61  ;;  %v5125_v57 = vpop.permute.xlu2 %708 }
 0x155   :  { %7941 = vst [vmem:[#allocation71_spill] sm:$0xff] %v5117_v50 }
 0x159   :  { %913 = vrot.lane.b32.xlu1 %v878_v34, %s4257_s17  ;;  %911 = vrot.lane.b32.xlu0 %v876_v53, %s4257_s17  ;;  %v891_v34 = vrot.slane %v5182_v12, 3 }
 0x15a   :  { %915 = vrot.lane.b32.xlu2 %v880_v16, %s4257_s17  ;;  %v890_v16 = vsel %vm873_vm5, %v887_v9, %v889_v55 }
 0x15b   :  { %v5145_v5 = vpop.permute.xlu1 %677  ;;  %v5147_v13 = vpop.permute.xlu0 %675  ;;  %v892_v35 = vsel %vm873_vm5, %v889_v55, %v891_v34 }
 0x15c   :  { %7942 = vst [vmem:[#allocation72_spill] sm:$0xff] %v5145_v5  ;;  %v5155_v22 = vpop.permute.xlu2 %714 }
 0x15d   :  { %7943 = vst [vmem:[#allocation73_spill] sm:$0xff] %v5147_v13  ;;  %v3789_v13 = vld [vmem:[%s7735_s0 + $0xa4] sm:$0xf] }
 0x15e   :  { %v1493_v50 = vunpack.c.l.b16 %v3789_v13 }
 0x161   :  { %919 = vrot.lane.b32.xlu1 %v884_v39, %s4257_s17  ;;  %917 = vrot.lane.b32.xlu0 %v882_v62, %s4257_s17  ;;  %v5195_v39 = vld [vmem:[%s7735_s0 + $0x60] sm:$0xff] }
 0x162   :  { %921 = vrot.lane.b32.xlu2 %v886_v24, %s4257_s17  ;;  %v893_v62 = vrot.slane %v5195_v39, 3  ;;  %v5201_v24 = vld [vmem:[%s7735_s0 + $0x68] sm:$0xff] }
 0x163   :  { %v5175_v0 = vpop.permute.xlu1 %683  ;;  %v5177_v30 = vpop.permute.xlu0 %681  ;;  %v895_v42 = vrot.slane %v5201_v24, 3 }
 0x164   :  { %7944 = vst [vmem:[#allocation74_spill] sm:$0xff] %v5175_v0  ;;  %v5185_v53 = vpop.permute.xlu2 %720  ;;  %v894_v54 = vsel %vm873_vm5, %v891_v34, %v893_v62 }
 0x165   :  { %7945 = vst [vmem:[#allocation75_spill] sm:$0xff] %v5177_v30  ;;  %v896_v0 = vsel %vm873_vm5, %v893_v62, %v895_v42  ;;  %v5234_v62 = vunpack.c.l.b16 %v4193_v59 }
 0x166   :  { %7946 = vst [vmem:[#allocation76_spill] sm:$0xff] %v5185_v53 }
 0x167   :  { %7950 = vst [vmem:[#allocation80_spill] sm:$0xff] %v5234_v62 }
 0x169   :  { %925 = vrot.lane.b32.xlu1 %v890_v16, %s4257_s17  ;;  %923 = vrot.lane.b32.xlu0 %v888_v1, %s4257_s17  ;;  %v5212_v16 = vld [vmem:[%s7735_s0 + $0x70] sm:$0xff] }
 0x16a   :  { %927 = vrot.lane.b32.xlu2 %v892_v35, %s4257_s17  ;;  %v897_v1 = vrot.slane %v5212_v16, 3  ;;  %v5222_v35 = vld [vmem:[%s7735_s0 + $0xa8] sm:$0xff]  }
 0x16b   :  { %v5205_v9 = vpop.permute.xlu1 %706  ;;  %v5207_v55 = vpop.permute.xlu0 %704  ;;  %v4182_v34 = vunpack.c.h.b16 %v5222_v35 }
 0x16c   :  { %7947 = vst [vmem:[#allocation77_spill] sm:$0xff] %v5205_v9  ;;  %v5215_v30 = vpop.permute.xlu2 %726  ;;  %v5242_v9 = vld [vmem:[%s7735_s0 + $0x78] sm:$0xff] }
 0x16d   :  { %7948 = vst [vmem:[#allocation78_spill] sm:$0xff] %v5207_v55  ;;  %v898_v55 = vsel %vm873_vm5, %v895_v42, %v897_v1  ;;  %v899_v5 = vrot.slane %v5242_v9, 3  ;;  %v5268_v13 = vpack.c.b16 %v5234_v62, %v4182_v34  ;;  %v907_v34 = vrot.slane %v4965_v32, 3 }
 0x16e   :  { %7949 = vst [vmem:[#allocation79_spill] sm:$0xff] %v5215_v30  ;;  %v3794_v30 = vld [vmem:[%s7735_s0 + $0xb8] sm:$0xf] }
 0x16f   :  { %v5263_v27 = vunpack.c.l.b16 %v3794_v30  ;;  %v900_v42 = vsel %vm873_vm5, %v897_v1, %v899_v5  ;;  %v1558_v59 = vshll.u32 %v5268_v13, 16  ;;  %v905_v30 = vrot.slane %v4650_v60, 3 }
 0x171   :  { %931 = vrot.lane.b32.xlu1 %v896_v0, %s4257_s17  ;;  %929 = vrot.lane.b32.xlu0 %v894_v54, %s4257_s17  ;;  %v5248_v0 = vld [vmem:[%s7735_s0 + $0x80] sm:$0xff]  ;;  %7953 = vst [vmem:[#allocation83_spill] sm:$0xff] %v5263_v27  ;;  %v5278_v56 = vpack.c.b16 %v5263_v27, %v4186_v36  ;;  %v909_v36 = vrot.slane %v5061_v20, 3  ;;  %v1560_v32 = vrot.slane %v1558_v59, 1 }
 0x172   :  { %v901_v54 = vrot.slane %v5248_v0, 3  ;;  %933 = vrot.lane.b32.xlu2 %v898_v55, %s4257_s17  ;;  %v5307_v20 = vld [vmem:[%s7735_s0 + $0xc4] sm:$0xff] }
 0x173   :  { %v5253_v53 = vpop.permute.xlu1 %712  ;;  %v5255_v61 = vpop.permute.xlu0 %710  ;;  %v910_v1 = vsel %vm873_vm5, %v907_v34, %v909_v36  ;;  %v7761_v59 = vshrl.u32 %v5278_v56, 16 }
 0x174   :  { %7951 = vst [vmem:[#allocation81_spill] sm:$0xff] %v5253_v53  ;;  %v5265_v63 = vpop.permute.xlu2 %732  ;;  %v902_v55 = vsel %vm873_vm5, %v899_v5, %v901_v54  ;;  %v904_v15 = vsel %vm873_vm5, %v901_v54, %v903_v49  ;;  %v5296_v54 = vld [vmem:[%s7735_s0 + $0xbc] sm:$0xff] }
 0x175   :  { %7952 = vst [vmem:[#allocation82_spill] sm:$0xff] %v5255_v61  ;;  %v7955_v61 = vunpack.c.l.b16 %v5222_v35  ;;  %v5314_v62 = vshll.u32 %v5296_v54, 16 }
 0x176   :  { %7954 = vst [vmem:[#allocation84_spill] sm:$0xff] %v5265_v63 }
 0x177   :  { %v5274_v53 = vpack.c.b16 %v7955_v61, %v1493_v50  ;;  %7961 = vst [vmem:[#allocation89_spill] sm:$0xff] %v5314_v62  ;;  %v1576_v63 = vrot.slane %v5314_v62, 1  ;;  %v5353_v62 = vshrl.u32 %v5307_v20, 16 }
 0x179   :  { %7956 = vst [vmem:[#allocation85_spill] sm:$0xff] %v5274_v53  ;;  %937 = vrot.lane.b32.xlu1 %v902_v55, %s4257_s17  ;;  %935 = vrot.lane.b32.xlu0 %v900_v42, %s4257_s17  ;;  %v1553_v5 = vshll.u32 %v5274_v53, 16  ;;  %v1562_v42 = vshrl.u32 %v5268_v13, 16  ;;  %v906_v55 = vsel %vm873_vm5, %v903_v49, %v905_v30  ;;  %v1551_v27 = vshrl.u32 %v5274_v53, 16  ;;  %v5319_v49 = vld [vmem:[%s7735_s0 + $0xcc] sm:$0xff] }
 0x17a   :  { %939 = vrot.lane.b32.xlu2 %v904_v15, %s4257_s17  ;;  %v908_v15 = vsel %vm873_vm5, %v905_v30, %v907_v34  ;;  %v5324_v34 = vshll.u32 %v5307_v20, 16  ;;  %7968 = vst [vmem:[#allocation96_spill] sm:$0xff] %v5353_v62 }
 0x17b   :  { %v5287_v61 = vpop.permute.xlu1 %718  ;;  %v5289_v50 = vpop.permute.xlu0 %716  ;;  %v1564_v30 = vor.u32 %v1562_v42, %v1560_v32  ;;  %v5348_v42 = vld [vmem:[%s7735_s0 + $0xdc] sm:$0xff] }
 0x17c   :  { %7957 = vst [vmem:[#allocation86_spill] sm:$0xff] %v5287_v61  ;;  %v5298_v60 = vpop.permute.xlu2 %738  ;;  %v7960_v61 = vshll.u32 %v5278_v56, 16 }
 0x17d   :  { %7958 = vst [vmem:[#allocation87_spill] sm:$0xff] %v5289_v50  ;;  %v1555_v50 = vrot.slane %v1553_v5, 1 }
 0x17e   :  { %7959 = vst [vmem:[#allocation88_spill] sm:$0xff] %v5298_v60  ;;  %v1568_v60 = vrot.slane %v7960_v61, 1 }
 0x17f   :  { %v1556_v5 = vor.u32 %v1555_v50, %v1551_v27  ;;  %7962 = vst [vmem:[#allocation90_spill] sm:$0xff] %v5324_v34  ;;  %v5340_v27 = vld [vmem:[%s7735_s0 + $0xd4] sm:$0xff] }
 0x180   :  { %v1572_v53 = vor.u32 %v7761_v59, %v1568_v60  ;;  %7966 = vst [vmem:[#allocation94_spill] sm:$0xff] %v5340_v27  ;;  %v1584_v59 = vrot.slane %v5324_v34, 1 }
 0x181   :  { %943 = vrot.lane.b32.xlu1 %v908_v15, %s4257_s17  ;;  %941 = vrot.lane.b32.xlu0 %v906_v55, %s4257_s17  ;;  %v5335_v15 = vshll.u32 %v5319_v49, 16  ;;  %7967 = vst [vmem:[#allocation95_spill] sm:$0xff] %v5348_v42  ;;  %v1561_v55 = vsel %vm165_vm0, %v1556_v5, %v1560_v32  ;;  %v5369_v32 = vld [vmem:[%s7735_s0 + $0xe4] sm:$0xff]  ;;  %v5374_v5 = vshll.u32 %v5348_v42, 16 }
 0x182   :  { %945 = vrot.lane.b32.xlu2 %v910_v1, %s4257_s17  ;;  %v1569_v1 = vsel %vm165_vm0, %v1564_v30, %v1568_v60  ;;  %v5361_v60 = vshrl.u32 %v5319_v49, 16  ;;  %v5364_v30 = vshll.u32 %v5340_v27, 16  ;;  %7972 = vst [vmem:[#allocation100_spill] sm:$0xff] %v5369_v32 }
 0x183   :  { %v5327_v61 = vpop.permute.xlu1 %724  ;;  %v5329_v36 = vpop.permute.xlu0 %722  ;;  %7965 = vst [vmem:[#allocation93_spill] sm:$0xff] %v5335_v15  ;;  %v1592_v21 = vrot.slane %v5335_v15, 1 }
 0x184   :  { %7963 = vst [vmem:[#allocation91_spill] sm:$0xff] %v5327_v61  ;;  %v5342_v50 = vpop.permute.xlu2 %838  ;;  %v1577_v61 = vsel %vm165_vm0, %v1572_v53, %v1576_v63  ;;  %v1588_v53 = vor.u32 %v5353_v62, %v1584_v59  ;;  %v1600_v44 = vrot.slane %v5364_v30, 1 }
 0x185   :  { %7964 = vst [vmem:[#allocation92_spill] sm:$0xff] %v5329_v36  ;;  %v5356_v36 = vshrl.u32 %v5296_v54, 16  ;;  %v1596_v37 = vor.u32 %v5361_v60, %v1592_v21 }
 0x186   :  { %7970 = vst [vmem:[#allocation98_spill] sm:$0xff] %v5361_v60 }
 0x187   :  { %7969 = vst [vmem:[#allocation97_spill] sm:$0xff] %v5356_v36  ;;  %v1580_v15 = vor.u32 %v5356_v36, %v1576_v63  ;;  %v1608_v63 = vrot.slane %v5374_v5, 1  ;;  %v5412_v36 = vld [vmem:[%s7735_s0 + $0xfc] sm:$0xff] }
 0x188   :  { %7971 = vst [vmem:[#allocation99_spill] sm:$0xff] %v5364_v30  ;;  %v5402_v30 = vshrl.u32 %v5340_v27, 16 }
 0x189   :  { %1700 = vrot.lane.b32.xlu1 %v1569_v1, %s4250_s7  ;;  %1698 = vrot.lane.b32.xlu0 %v1561_v55, %s4250_s7  ;;  %7973 = vst [vmem:[#allocation101_spill] sm:$0xff] %v5374_v5  ;;  %v5386_v1 = vshll.u32 %v5369_v32, 16  ;;  %v5391_v55 = vld [vmem:[%s7735_s0 + $0xec] sm:$0xff]  ;;  %v1585_v60 = vsel %vm165_vm0, %v1580_v15, %v1584_v59  ;;  %v1601_v5 = vsel %vm165_vm0, %v1596_v37, %v1600_v44 }
 0x18a   :  { %1702 = vrot.lane.b32.xlu2 %v1577_v61, %s4250_s7  ;;  %7977 = vst [vmem:[#allocation105_spill] sm:$0xff] %v5391_v55  ;;  %v5397_v61 = vshrl.u32 %v5348_v42, 16  ;;  %v5420_v59 = vshll.u32 %v5391_v55, 16 }
 0x18b   :  { %v5379_v34 = vpop.permute.xlu1 %730  ;;  %v5381_v28 = vpop.permute.xlu0 %728  ;;  %7976 = vst [vmem:[#allocation104_spill] sm:$0xff] %v5386_v1  ;;  %v1616_v42 = vrot.slane %v5386_v1, 1 }
 0x18c   :  { %7974 = vst [vmem:[#allocation102_spill] sm:$0xff] %v5379_v34  ;;  %v5393_v62 = vpop.permute.xlu2 %844  ;;  %v5407_v34 = vld [vmem:[%s7735_s0 + $0xf4] sm:$0xff]  ;;  %v1612_v15 = vor.u32 %v5397_v61, %v1608_v63 }
 0x18d   :  { %7975 = vst [vmem:[#allocation103_spill] sm:$0xff] %v5381_v28  ;;  %v1593_v28 = vsel %vm165_vm0, %v1588_v53, %v1592_v21  ;;  %v5417_v21 = vshrl.u32 %v5369_v32, 16  ;;  %v1604_v53 = vor.u32 %v5402_v30, %v1600_v44  ;;  %v5435_v32 = vshll.u32 %v5412_v36, 16 }
 0x18e   :  { %7978 = vst [vmem:[#allocation106_spill] sm:$0xff] %v5393_v62  ;;  %v5427_v62 = vshll.u32 %v5407_v34, 16  ;;  %v1624_v44 = vrot.slane %v5420_v59, 1  ;;  %v5455_v31 = vshrl.u32 %v5407_v34, 16 }
 0x18f   :  { %7979 = vst [vmem:[#allocation107_spill] sm:$0xff] %v5397_v61 }
 0x190   :  { %7980 = vst [vmem:[#allocation108_spill] sm:$0xff] %v5402_v30  ;;  %v5450_v30 = vld [vmem:[%s7735_s0 + $0x10c] sm:$0xff] }
 0x191   :  { %7981 = vst [vmem:[#allocation109_spill] sm:$0xff] %v5407_v34  ;;  %1706 = vrot.lane.b32.xlu1 %v1593_v28, %s4250_s7  ;;  %1704 = vrot.lane.b32.xlu0 %v1585_v60, %s4250_s7  ;;  %v5440_v28 = vld [vmem:[%s7735_s0 + $0x104] sm:$0xff]  ;;  %v1620_v60 = vor.u32 %v5417_v21, %v1616_v42  ;;  %v3825_v34 = vld [vmem:[%s7735_s0 + $0x134] sm:$0x1] }
 0x192   :  { %7982 = vst [vmem:[#allocation110_spill] sm:$0xff] %v5412_v36  ;;  %1708 = vrot.lane.b32.xlu2 %v1601_v5, %s4250_s7  ;;  %v1617_v5 = vsel %vm165_vm0, %v1612_v15, %v1616_v42  ;;  %v5465_v42 = vshll.u32 %v5440_v28, 16 }
 0x193   :  { %7983 = vst [vmem:[#allocation111_spill] sm:$0xff] %v5417_v21  ;;  %v5430_v37 = vpop.permute.xlu1 %736  ;;  %v5432_v1 = vpop.permute.xlu0 %734  ;;  %v5458_v21 = vshrl.u32 %v5391_v55, 16  ;;  %v1625_v15 = vsel %vm165_vm0, %v1620_v60, %v1624_v44  ;;  %v959_v60 = vsel %vm947_vm6, %v5122_v19, %v4619_v51  ;;  %v8008_v55 = vld [vmem:[#allocation18_spill] sm:$0xff] }
 0x194   :  { %7984 = vst [vmem:[#allocation112_spill] sm:$0xff] %v5420_v59  ;;  %v5444_v61 = vpop.permute.xlu2 %850  ;;  %v1640_v59 = vrot.slane %v5435_v32, 1  ;;  %v963_v58 = vsel %vm947_vm6, %v5141_v52, %v8008_v55  ;;  %v8012_v52 = vld [vmem:[#allocation21_spill] sm:$0xff] }
 0x195   :  { %7985 = vst [vmem:[#allocation113_spill] sm:$0xff] %v5427_v62 }
 0x196   :  { %7986 = vst [vmem:[#allocation114_spill] sm:$0xff] %v5430_v37  ;;  %v1632_v37 = vrot.slane %v5427_v62, 1 }
 0x197   :  { %7987 = vst [vmem:[#allocation115_spill] sm:$0xff] %v5432_v1  ;;  %v1609_v1 = vsel %vm165_vm0, %v1604_v53, %v1608_v63  ;;  %v5471_v63 = vld [vmem:[%s7735_s0 + $0x114] sm:$0xff]  ;;  %v5476_v53 = vsel %vm947_vm6, %v5111_v23, %v4612_v17  ;;  %v965_v17 = vsel %vm947_vm6, %v5152_v48, %v4624_v25  ;;  %v4227_v25 = vld [vmem:[%s7735_s0] sm:$0xff]  }
 0x198   :  { %7988 = vst [vmem:[#allocation116_spill] sm:$0xff] %v5435_v32  ;;  %v5481_v32 = vshll.u32 %v5450_v30, 16  ;;  %v1636_v62 = vor.u32 %v5455_v31, %v1632_v37  ;;  %v4226_v23 = vld [vmem:[%s7735_s0 + $0x10] sm:$0xff]  }
 0x199   :  { %7989 = vst [vmem:[#allocation117_spill] sm:$0xff] %v5440_v28  ;;  %1712 = vrot.lane.b32.xlu1 %v1617_v5, %s4250_s7  ;;  %1710 = vrot.lane.b32.xlu0 %v1609_v1, %s4250_s7  ;;  %v953_v1 = vsel %vm947_vm6, %v4226_v23, %v4629_v3  ;;  %v8000_v48 = vld [vmem:[#allocation13_spill] sm:$0xff] }
 0x19a   :  { %7990 = vst [vmem:[#allocation118_spill] sm:$0xff] %v5444_v61  ;;  %v5462_v61 = vshrl.u32 %v5412_v36, 16  ;;  %v1628_v36 = vor.u32 %v5458_v21, %v1624_v44  ;;  %1714 = vrot.lane.b32.xlu2 %v1625_v15, %s4250_s7  ;;  %v1648_v44 = vrot.slane %v5465_v42, 1  ;;  %v8002_v15 = vld [vmem:[#allocation15_spill] sm:$0xff] }
 0x19b   :  { %7991 = vst [vmem:[#allocation119_spill] sm:$0xff] %v5450_v30  ;;  %v5497_v5 = vpop.permute.xlu1 %836  ;;  %v5499_v51 = vpop.permute.xlu0 %834  ;;  %v955_v23 = vsel %vm947_vm6, %v5105_v7, %v8002_v15  ;;  %v1656_v15 = vrot.slane %v5481_v32, 1 }
 0x19c   :  { %7992 = vst [vmem:[#allocation120_spill] sm:$0xff] %v5455_v31  ;;  %v1644_v19 = vor.u32 %v5462_v61, %v1640_v59  ;;  %v8001_v31 = vld [vmem:[#allocation14_spill] sm:$0xff]  ;;  %v5530_v7 = vpop.permute.xlu2 %856 }
 0x19d   :  { %7993 = vst [vmem:[#allocation121_spill] sm:$0xff] %v5458_v21  ;;  %v949_v21 = vsel %vm947_vm6, %v4227_v25, %v8000_v48  ;;  %v971_v3 = vsel %vm947_vm6, %v5182_v12, %v8001_v31  ;;  %v4228_v25 = vld [vmem:[%s7735_s0 + $0x8] sm:$0xff]   ;;  %v8005_v31 = vld [vmem:[#allocation17_spill] sm:$0xff] }
 0x19e   :  { %7994 = vst [vmem:[#allocation122_spill] sm:$0xff] %v5462_v61  ;;  %v8004_v48 = vld [vmem:[#allocation16_spill] sm:$0xff]  ;;  %v977_v12 = vsel %vm947_vm6, %v5212_v16, %v8005_v31  ;;  %v5545_v16 = vshrl.u32 %v5440_v28, 16  ;;  %v8018_v28 = vld [vmem:[#allocation25_spill] sm:$0xff] }
 0x19f   :  { %7995 = vst [vmem:[#allocation123_spill] sm:$0xff] %v5465_v42  ;;  %v5520_v42 = vld [vmem:[%s7735_s0 + $0x11c] sm:$0xff]  ;;  %v951_v61 = vsel %vm947_vm6, %v4228_v25, %v8004_v48  ;;  %v1641_v25 = vsel %vm165_vm0, %v1636_v62, %v1640_v59  ;;  %v1633_v48 = vsel %vm165_vm0, %v1628_v36, %v1632_v37  ;;  %v4125_v31 = vld [vmem:[%s7735_s0 + $0x124] sm:$0xff]  ;;  %v969_v62 = vsel %vm947_vm6, %v5171_v43, %v8012_v52 }
 0x1a0   :  { %7996 = vst [vmem:[#allocation124_spill] sm:$0xff] %v5471_v63  ;;  %v1649_v36 = vsel %vm165_vm0, %v1644_v19, %v1648_v44  ;;  %v5562_v59 = vshrl.u32 %v5471_v63, 16  ;;  %v5565_v37 = vshll.u32 %v5520_v42, 16  ;;  %v8016_v43 = vld [vmem:[#allocation23_spill] sm:$0xff]  ;;  %v1652_v27 = vor.u32 %v5545_v16, %v1648_v44 }
 0x1a1   :  { %7997 = vst [vmem:[#allocation125_spill] sm:$0xff] %v5481_v32  ;;  %v8010_v32 = vld [vmem:[#allocation19_spill] sm:$0xff]  ;;  %v990_v19 = vsel %vm984_vm7, %v953_v1, %v8016_v43  ;;  %1718 = vrot.lane.b32.xlu1 %v1641_v25, %s4250_s7  ;;  %1716 = vrot.lane.b32.xlu0 %v1633_v48, %s4250_s7  ;;  %v8022_v43 = vld [vmem:[#allocation28_spill] sm:$0xff] }
 0x1a2   :  { %7998 = vst [vmem:[#allocation126_spill] sm:$0xff] %v5497_v5  ;;  %v5534_v5 = vshrl.u32 %v5450_v30, 16  ;;  %v961_v30 = vsel %vm947_vm6, %v5135_v8, %v8010_v32  ;;  %v4126_v8 = vld [vmem:[%s7735_s0 + $0x12c] sm:$0xff]  ;;  %v1548_v32 = vunpack.c.l.b16 %v3825_v34  ;;  %v973_v34 = vsel %vm947_vm6, %v5195_v39, %v8018_v28  ;;  %v8021_v25 = vld [vmem:[#allocation27_spill] sm:$0xff]  ;;  %1720 = vrot.lane.b32.xlu2 %v1649_v36, %s4250_s7 }
 0x1a3   :  { %7999 = vst [vmem:[#allocation127_spill] sm:$0xff] %v5499_v51  ;;  %v5515_v51 = vshll.u32 %v5471_v63, 16  ;;  %v981_v48 = vsel %vm947_vm6, %v5248_v0, %v8021_v25  ;;  %v5598_v39 = vpop.permute.xlu0 %840  ;;  %v8027_v0 = vld [vmem:[#allocation29_spill] sm:$0xff]  ;;  %v8028_v25 = vld [vmem:[#allocation30_spill] sm:$0xff] }
 0x1a4   :  { %8006 = vst [vmem:[#allocation14_spill] sm:$0xff] %v5530_v7  ;;  %v8011_v7 = vld [vmem:[#allocation20_spill] sm:$0xff]  ;;  %v1660_v52 = vor.u32 %v5534_v5, %v1656_v15  ;;  %v5604_v44 = vpack.c.b16 %v1548_v32, %v1548_v32  ;;  %v5620_v32 = vshrl.u32 %v5520_v42, 16 }
 0x1a5   :  { %8003 = vst [vmem:[#allocation13_spill] sm:$0xff] %v5515_v51  ;;  %v983_v14 = vsel %vm947_vm6, %v5260_v26, %v8011_v7  ;;  %v1664_v55 = vrot.slane %v5515_v51, 1  ;;  %v8015_v26 = vld [vmem:[#allocation22_spill] sm:$0xff]  ;;  %v8017_v51 = vld [vmem:[#allocation24_spill] sm:$0xff] }
 0x1a6   :  { %8007 = vst [vmem:[#allocation15_spill] sm:$0xff] %v5534_v5  ;;  %v967_v7 = vsel %vm947_vm6, %v5165_v47, %v8015_v26  ;;  %v975_v63 = vsel %vm947_vm6, %v5201_v24, %v8017_v51  ;;  %v5585_v47 = vshll.u32 %v4125_v31, 16  ;;  %v8020_v26 = vld [vmem:[#allocation26_spill] sm:$0xff]  ;;  %v979_v5 = vsel %vm947_vm6, %v5242_v9, %v8022_v43  ;;  %v5596_v24 = vpop.permute.xlu1 %842  ;;  %v8029_v43 = vld [vmem:[#allocation31_spill] sm:$0xff] }
 0x1a7   :  { %8009 = vst [vmem:[#allocation16_spill] sm:$0xff] %v5545_v16  ;;  %v996_v1 = vsel %vm984_vm7, %v959_v60, %v8020_v26  ;;  %v1668_v28 = vor.u32 %v5562_v59, %v1664_v55  ;;  %v1672_v51 = vrot.slane %v5565_v37, 1  ;;  %v5602_v60 = vshll.u32 %v4126_v8, 16  ;;  %v5612_v16 = vpop.permute.xlu2 %862 }
 0x1a8   :  { %8013 = vst [vmem:[#allocation17_spill] sm:$0xff] %v5562_v59  ;;  %v1002_v26 = vsel %vm984_vm7, %v965_v17, %v8027_v0  ;;  %v988_v9 = vsel %vm984_vm7, %v951_v61, %v8028_v25  ;;  %v986_v36 = vsel %vm984_vm7, %v949_v21, %v8029_v43  ;;  %v1657_v59 = vsel %vm165_vm0, %v1652_v27, %v1656_v15  ;;  %v8033_v17 = vld [vmem:[#allocation32_spill] sm:$0xff]  ;;  %v8034_v61 = vld [vmem:[#allocation33_spill] sm:$0xff]  ;;  %v8035_v25 = vld [vmem:[#allocation34_spill] sm:$0xff] }
 0x1a9   :  { %8014 = vst [vmem:[#allocation18_spill] sm:$0xff] %v5565_v37  ;;  %v1680_v37 = vrot.slane %v5585_v47, 1  ;;  %v1008_v0 = vsel %vm984_vm7, %v971_v3, %v8033_v17  ;;  %v994_v21 = vsel %vm984_vm7, %v5476_v53, %v8034_v61  ;;  %v992_v43 = vsel %vm984_vm7, %v955_v23, %v8035_v25  ;;  %v3826_v15 = vld [vmem:[%s7735_s0 + $0xa4] sm:$0xe]  ;;  %v8038_v17 = vld [vmem:[#allocation36_spill] sm:$0xff]  ;;  %v8039_v61 = vld [vmem:[#allocation37_spill] sm:$0xff]  ;;  %1722 = vrot.lane.b32.xlu0 %v1657_v59, %s4250_s7 }
 0x1aa   :  { %8019 = vst [vmem:[#allocation19_spill] sm:$0xff] %v5585_v47  ;;  %v5636_v47 = vshrl.u32 %v4126_v8, 16  ;;  %v1694_v3 = vshll.u32 %v5604_v44, 16  ;;  %v1000_v53 = vsel %vm984_vm7, %v963_v58, %v8038_v17  ;;  %v998_v23 = vsel %vm984_vm7, %v961_v30, %v8039_v61  ;;  %v8040_v25 = vld [vmem:[#allocation38_spill] sm:$0xff]  ;;  %v8043_v17 = vld [vmem:[#allocation41_spill] sm:$0xff] }
 0x1ab   :  { %8023 = vst [vmem:[#allocation20_spill] sm:$0xff] %v5596_v24  ;;  %v5617_v24 = vshrl.u32 %v4125_v31, 16  ;;  %v1673_v31 = vsel %vm165_vm0, %v1668_v28, %v1672_v51  ;;  %v8041_v28 = vld [vmem:[#allocation39_spill] sm:$0xff]  ;;  %v1027_v30 = vsel %vm1021_vm8, %v990_v19, %v8043_v17  ;;  %v8044_v61 = vld [vmem:[#allocation42_spill] sm:$0xff] }
 0x1ac   :  { %8024 = vst [vmem:[#allocation21_spill] sm:$0xff] %v5598_v39  ;;  %v1665_v39 = vsel %vm165_vm0, %v1660_v52, %v1664_v55  ;;  %v8036_v55 = vld [vmem:[#allocation35_spill] sm:$0xff]  ;;  %v1688_v52 = vrot.slane %v5602_v60, 1  ;;  %1726 = vrot.lane.b32.xlu2 %v1673_v31, %s4250_s7  ;;  %v1696_v19 = vrot.slane %v1694_v3, 1 }
 0x1ad   :  { %8025 = vst [vmem:[#allocation22_spill] sm:$0xff] %v5602_v60  ;;  %v1014_v27 = vsel %vm984_vm7, %v977_v12, %v8036_v55  ;;  %v1020_v12 = vsel %vm984_vm7, %v983_v14, %v8040_v25  ;;  %1724 = vrot.lane.b32.xlu1 %v1665_v39, %s4250_s7  ;;  %v1006_v55 = vsel %vm984_vm7, %v969_v62, %v8041_v28  ;;  %v1735_v60 = vunpack.c.l.b16 %v3826_v15  ;;  %v8045_v39 = vld [vmem:[#allocation43_spill] sm:$0xff]  ;;  %v5662_v25 = vpop.permute.xlu0 %846  ;;  %v8047_v28 = vld [vmem:[#allocation4_spill] sm:$0xff] }
 0x1ae   :  { %8026 = vst [vmem:[#allocation23_spill] sm:$0xff] %v5604_v44  ;;  %v1684_v8 = vor.u32 %v5617_v24, %v1680_v37  ;;  %v1676_v44 = vor.u32 %v5620_v32, %v1672_v51  ;;  %v1012_v14 = vsel %vm984_vm7, %v975_v63, %v8044_v61  ;;  %v1010_v59 = vsel %vm984_vm7, %v973_v34, %v8045_v39  ;;  %v5660_v62 = vpop.permute.xlu1 %848  ;;  %v8046_v51 = vld [vmem:[#allocation3_spill] sm:$0xff]  ;;  %v8048_v63 = vld [vmem:[#allocation5_spill] sm:$0xff]  ;;  %v8050_v34 = vld [vmem:[#allocation6_spill] sm:$0xff] }
 0x1af   :  { %8030 = vst [vmem:[#allocation24_spill] sm:$0xff] %v5612_v16  ;;  %v8042_v16 = vld [vmem:[#allocation40_spill] sm:$0xff]  ;;  %v1033_v15 = vsel %vm1021_vm8, %v996_v1, %v8046_v51  ;;  %v5673_v17 = vsel %vm984_vm7, %v979_v5, %v8048_v63  ;;  %v1039_v31 = vsel %vm1021_vm8, %v1002_v26, %v8050_v34  ;;  %v8051_v61 = vld [vmem:[#allocation7_spill] sm:$0xff]  ;;  %v8054_v63 = vld [vmem:[#allocation9_spill] sm:$0xff] }
 0x1b0   :  { %8031 = vst [vmem:[#allocation25_spill] sm:$0xff] %v5617_v24  ;;  %v1004_v58 = vsel %vm984_vm7, %v967_v7, %v8042_v16  ;;  %v5668_v16 = vsel %vm984_vm7, %v981_v48, %v8047_v28  ;;  %v1692_v7 = vor.u32 %v5636_v47, %v1688_v52  ;;  %v1025_v39 = vsel %vm1021_vm8, %v988_v9, %v8051_v61  ;;  %v5679_v24 = vpop.permute.xlu2 %868  ;;  %v8052_v1 = vld [vmem:[#allocation8_spill] sm:$0xff]  ;;  %v8055_v26 = vld [vmem:[#allocation10_spill] sm:$0xff]  ;;  %v8056_v9 = vld [vmem:[#allocation11_spill] sm:$0xff] }
 0x1b1   :  { %8032 = vst [vmem:[#allocation26_spill] sm:$0xff] %v5620_v32  ;;  %v1023_v48 = vsel %vm1021_vm8, %v986_v36, %v8052_v1  ;;  %v1689_v51 = vsel %vm165_vm0, %v1684_v8, %v1688_v52  ;;  %v1681_v3 = vsel %vm165_vm0, %v1676_v44, %v1680_v37  ;;  %v8053_v28 = vunpack.c.l.b16 %v5222_v35  ;;  %v8057_v32 = vld [vmem:[#allocation44_spill] sm:$0xff]  ;;  %v8059_v8 = vld [vmem:[#allocation45_spill] sm:$0xff] }
 0x1b2   :  { %8037 = vst [vmem:[#allocation27_spill] sm:$0xff] %v5636_v47  ;;  %v1045_v47 = vsel %vm1021_vm8, %v1008_v0, %v8054_v63  ;;  %v1031_v34 = vsel %vm1021_vm8, %v994_v21, %v8055_v26  ;;  %v1029_v61 = vsel %vm1021_vm8, %v992_v43, %v8056_v9  ;;  %v8058_v36 = vld [vmem:[#allocation12_spill] sm:$0xff]  ;;  %v5699_v37 = vsel %vm1021_vm8, %v998_v23, %v8059_v8 }
 0x1b3   :  { %8049 = vst [vmem:[#allocation28_spill] sm:$0xff] %v5673_v17  ;;  %v1736_v5 = vpack.c.b16 %v8053_v28, %v1735_v60  ;;  %v1051_v17 = vsel %vm1021_vm8, %v1014_v27, %v8057_v32  ;;  %v1037_v52 = vsel %vm1021_vm8, %v1000_v53, %v8058_v36  ;;  %v1697_v35 = vsel %vm165_vm0, %v1692_v7, %v1696_v19  ;;  %v8060_v60 = vld [vmem:[#allocation46_spill] sm:$0xff]  ;;  %v4057_v53 = vld [vmem:[%s7736_s1 + $0x8] sm:$0xf]  ;;  %v4166_v23 = vld [vmem:[%s7736_s1 + $0x8] sm:$0x30] }
 0x1b4   :  { %v1057_v44 = vsel %vm1021_vm8, %v1020_v12, %v8060_v60  ;;  %1728 = vrot.lane.b32.xlu0 %v1681_v3, %s4250_s7  ;;  %v1738_v32 = vrot.slane %v5268_v13, 1  ;;  %v1043_v0 = vsel %vm1021_vm8, %v1006_v55, %v4910_v38  ;;  %v1064_v21 = vsel %vm1058_vm9, %v1027_v30, %v4914_v41  ;;  %1732 = vrot.lane.b32.xlu2 %v1697_v35, %s4250_s7  ;;  %v8064_v60 = vld [vmem:[#allocation52_spill] sm:$0xff] }
 0x1b5   :  { %1730 = vrot.lane.b32.xlu1 %v1689_v51, %s4250_s7  ;;  %v5712_v43 = vrot.slane %v5278_v56, 1  ;;  %v1737_v27 = vrot.slane %v1736_v5, 1  ;;  %v1101_v12 = vsel %vm1095_vm10, %v1064_v21, %v4993_v18  ;;  %v5725_v41 = vpop.permute.xlu0 %852  ;;  %v4058_v55 = vor.u32 %v4166_v23, %v4057_v53  ;;  %v8066_v21 = vld [vmem:[#allocation94_spill] sm:$0xff] }
 0x1b6   :  { %v5723_v38 = vpop.permute.xlu1 %854  ;;  %v1041_v30 = vsel %vm1021_vm8, %v1004_v58, %v4912_v2  ;;  %v1049_v7 = vsel %vm1021_vm8, %v1012_v14, %v4923_v46  ;;  %v1138_v19 = vsel %vm1132_vm11, %v1101_v12, %v5125_v57  ;;  %v1742_v1 = vrot.slane %v5296_v54, 1  ;;  %v8067_v53 = vld [vmem:[#allocation54_spill] sm:$0xff]  ;;  %v8068_v12 = vld [vmem:[#allocation55_spill] sm:$0xff] }
 0x1b7   :  { %v1047_v18 = vsel %vm1021_vm8, %v1010_v59, %v4925_v40  ;;  %v1070_v51 = vsel %vm1058_vm9, %v1033_v15, %v4927_v10  ;;  %v1175_v3 = vsel %vm1169_vm12, %v1138_v19, %v5342_v50  ;;  %v4258_v5 = vmov 65535   ;;  %v8069_v19 = vld [vmem:[#allocation56_spill] sm:$0xff] }
 0x1b8   :  { %v916_v28 = vpop.permute.xlu2 %915  ;;  %v3154_v2 = vsel %vm873_vm5, 4294967295, %v4258_v5  ;;  %v1741_v57 = vsel %vm353_vm1, %v1738_v32, %v5712_v43  ;;  %v1739_v58 = vsel %vm353_vm1, %v1737_v27, %v1738_v32  ;;  %v1076_v40 = vsel %vm1058_vm9, %v1039_v31, %v4938_v29  ;;  %v8061_v29 = vld [vmem:[#allocation49_spill] sm:$0xff]  ;;  %v8062_v31 = vld [vmem:[#allocation50_spill] sm:$0xff] }
 0x1b9   :  { %v1212_v46 = vsel %vm1206_vm13, %v1175_v3, %v916_v28  ;;  %v3155_v14 = vsel %vm613_vm3, %v3154_v2, 0  ;;  %v1062_v50 = vsel %vm1058_vm9, %v1025_v39, %v4944_v6  ;;  %v1060_v63 = vsel %vm1058_vm9, %v1023_v48, %v4946_v11 }
 0x1ba   :  { %v1265_v10 = vunpack.c.l.b16 %v1212_v46  ;;  %v1266_v59 = vunpack.c.h.b16 %v1212_v46  ;;  %v3157_v15 = vand.u32 %v4058_v55, %v3155_v14  ;;  %v5754_v26 = vsel %vm353_vm1, %v5712_v43, %v1742_v1  ;;  %v8074_v14 = vld [vmem:[#allocation62_spill] sm:$0xff] }
 0x1bb   :  { %v1082_v9 = vsel %vm1058_vm9, %v1045_v47, %v4948_v4  ;;  %v1068_v6 = vsel %vm1058_vm9, %v1031_v34, %v8061_v29  ;;  %v1066_v11 = vsel %vm1058_vm9, %v1029_v61, %v8062_v31  ;;  %v1744_v39 = vrot.slane %v5307_v20, 1  ;;  %v4165_v4 = vld [vmem:[%s7736_s1] sm:$0xff]  ;;  %v8065_v61 = vld [vmem:[#allocation53_spill] sm:$0xff]  ;;  %v8078_v29 = vld [vmem:[#allocation66_spill] sm:$0xff] }
 0x1bc   :  { %v1301_v36 = vpack.c.b16 %v1265_v10, %v1265_v10  ;;  %v1302_v8 = vpack.c.b16 %v1266_v59, %v1266_v59  ;;  %1774 = vrot.lane.b32.xlu0 %v1739_v58, %s4251_s6  ;;  %v1746_v48 = vrot.slane %v5319_v49, 1  ;;  %3165 = vmatpush.bf16.msra.mxu0 %v3157_v15  ;;  %v8063_v47 = vld [vmem:[#allocation51_spill] sm:$0xff]  ;;  %v1074_v32 = vsel %vm1058_vm9, %v1037_v52, %v8064_v60 }
 0x1bd   :  { %1776 = vrot.lane.b32.xlu1 %v1741_v57, %s4251_s6  ;;  %4194 = vmatpush.bf16.msra.mxu1 %v3157_v15  ;;  %v1088_v35 = vsel %vm1058_vm9, %v1051_v17, %v8063_v47  ;;  %v1107_v34 = vsel %vm1095_vm10, %v1070_v51, %v5011_v45  ;;  %v5780_v49 = vpop.permute.xlu0 %858  ;;  %v1072_v17 = vsel %vm1058_vm9, %v5699_v37, %v8065_v61  ;;  %v1748_v27 = vrot.slane %v8066_v21, 1  ;;  %v8070_v37 = vld [vmem:[#allocation106_spill] sm:$0xff]  ;;  %v8073_v57 = vld [vmem:[#allocation61_spill] sm:$0xff]  ;;  %v8081_v60 = vld [vmem:[#allocation67_spill] sm:$0xff] }
 0x1be   :  { %1374 = vst.msk [vmem:[#allocation2 + $0x10] sm:$0xf] %vm1369_vm14, %v1301_v36  ;;  %1778 = vrot.lane.b32.xlu2 %v5754_v26, %s4251_s6  ;;  %v5778_v20 = vpop.permute.xlu1 %860  ;;  %4195 = vmatpush.bf16.msra.mxu2 %v3157_v15  ;;  %v1094_v52 = vsel %vm1058_vm9, %v1057_v44, %v4977_v33  ;;  %v1144_v45 = vsel %vm1132_vm11, %v1107_v34, %v5155_v22  ;;  %v8082_v61 = vld [vmem:[#allocation68_spill] sm:$0xff]  ;;  %v8083_v21 = vld [vmem:[#allocation69_spill] sm:$0xff]  ;;  %vm3644_vm0 = vcmask 519168  }
 0x1bf   :  { %1375 = vst.msk [vmem:[#allocation2 + $0x14] sm:$0xf] %vm1369_vm14, %v1302_v8  ;;  %v1080_v23 = vsel %vm1058_vm9, %v1043_v0, %v8067_v53  ;;  %v1078_v55 = vsel %vm1058_vm9, %v1041_v30, %v8068_v12  ;;  %v1086_v51 = vsel %vm1058_vm9, %v1049_v7, %v8069_v19  ;;  %v1181_v3 = vsel %vm1169_vm12, %v1144_v45, %v8070_v37  ;;  %v8071_v0 = vld [vmem:[#allocation57_spill] sm:$0xff]  ;;  %v8072_v7 = vld [vmem:[#allocation60_spill] sm:$0xff]  ;;  %v8084_v12 = vld [vmem:[#allocation70_spill] sm:$0xff] }
 0x1c0   :  { %v922_v33 = vpop.permute.xlu2 %921  ;;  %4196 = vmatpush.bf16.msra.mxu3 %v3157_v15  ;;  %v5801_v44 = vsel %vm353_vm1, %v1744_v39, %v1746_v48  ;;  %v5804_v28 = vsel %vm353_vm1, %v1742_v1, %v1744_v39  ;;  %3166 = vmatpush.bf16.msra.mxu0 %v4165_v4  ;;  %v5808_v30 = vsel %vm1058_vm9, %v1047_v18, %v8071_v0  ;;  %v8075_v1 = vld [vmem:[#allocation63_spill] sm:$0xff]  ;;  %v8076_v18 = vld [vmem:[#allocation64_spill] sm:$0xff] }
 0x1c1   :  { %v1218_v22 = vsel %vm1206_vm13, %v1181_v3, %v922_v33  ;;  %4197 = vmatpush.bf16.msra.mxu1 %v4165_v4  ;;  %v1113_v5 = vsel %vm1095_vm10, %v1076_v40, %v8072_v7  ;;  %v1099_v58 = vsel %vm1095_vm10, %v1062_v50, %v8073_v57  ;;  %v1097_v10 = vsel %vm1095_vm10, %v1060_v63, %v8074_v14  ;;  %v3827_v50 = vld [vmem:[%s7735_s0 + $0xac] sm:$0xe]  ;;  %v8077_v63 = vld [vmem:[#allocation65_spill] sm:$0xff]  ;;  %v8079_v39 = vld [vmem:[#allocation95_spill] sm:$0xff] }
 0x1c2   :  { %v1271_v2 = vunpack.c.l.b16 %v1218_v22  ;;  %v1272_v46 = vunpack.c.h.b16 %v1218_v22  ;;  %4198 = vmatpush.bf16.msra.mxu2 %v4165_v4  ;;  %v1119_v59 = vsel %vm1095_vm10, %v1082_v9, %v8075_v1  ;;  %v5819_v15 = vsel %vm353_vm1, %v1746_v48, %v1748_v27  ;;  %v8080_v48 = vld [vmem:[#allocation100_spill] sm:$0xff]  ;;  %v8087_v3 = vld [vmem:[#allocation71_spill] sm:$0xff]  ;;  %v8089_v7 = vld [vmem:[#allocation77_spill] sm:$0xff] }
 0x1c3   :  { %v1105_v36 = vsel %vm1095_vm10, %v1068_v6, %v8076_v18  ;;  %v1103_v9 = vsel %vm1095_vm10, %v1066_v11, %v8077_v63  ;;  %v1125_v31 = vsel %vm1095_vm10, %v1088_v35, %v8078_v29  ;;  %v1750_v6 = vrot.slane %v8079_v39, 1  ;;  %v8088_v22 = vld [vmem:[#allocation72_spill] sm:$0xff]  ;;  %v8091_v57 = vld [vmem:[#allocation78_spill] sm:$0xff] }
 0x1c4   :  { %v1307_v8 = vpack.c.b16 %v1271_v2, %v1271_v2  ;;  %v1308_v40 = vpack.c.b16 %v1272_v46, %v1272_v46  ;;  %1780 = vrot.lane.b32.xlu0 %v5804_v28, %s4251_s6  ;;  %v1752_v47 = vrot.slane %v8080_v48, 1  ;;  %4199 = vmatpush.bf16.msra.mxu3 %v4165_v4  ;;  %v1111_v34 = vsel %vm1095_vm10, %v1074_v32, %v8081_v60  ;;  %v8085_v32 = vld [vmem:[#allocation76_spill] sm:$0xff]  ;;  %v8090_v2 = vld [vmem:[#allocation118_spill] sm:$0xff] }
 0x1c5   :  { %1782 = vrot.lane.b32.xlu1 %v5801_v44, %s4251_s6  ;;  %v1109_v45 = vsel %vm1095_vm10, %v1072_v17, %v8082_v61  ;;  %v1131_v53 = vsel %vm1095_vm10, %v1094_v52, %v8083_v21  ;;  %v5847_v35 = vpop.permute.xlu0 %864  ;;  %v5851_v4 = vsel %vm1095_vm10, %v1080_v23, %v8084_v12  ;;  %v1150_v19 = vsel %vm1132_vm11, %v1113_v5, %v8085_v32  ;;  %v8086_v17 = vld [vmem:[#allocation105_spill] sm:$0xff]  ;;  %v8094_v29 = vld [vmem:[#allocation82_spill] sm:$0xff]  ;;  %v8096_v61 = vld [vmem:[#allocation80_spill] sm:$0xff] }
 0x1c6   :  { %1380 = vst.msk [vmem:[#allocation2 + $0x28] sm:$0xf] %vm1369_vm14, %v1307_v8  ;;  %1784 = vrot.lane.b32.xlu2 %v5819_v15, %s4251_s6  ;;  %v5845_v11 = vpop.permute.xlu1 %866  ;;  %v1754_v52 = vrot.slane %v8086_v17, 1  ;;  %v1814_v37 = vunpack.c.l.b16 %v3827_v50  ;;  %v5859_v33 = vsel %vm1095_vm10, %v1078_v55, %v8087_v3  ;;  %v5863_v0 = vsel %vm1095_vm10, %v1086_v51, %v8088_v22  ;;  %v8092_v51 = vld [vmem:[#allocation79_spill] sm:$0xff]  ;;  %v8100_v32 = vld [vmem:[#allocation109_spill] sm:$0xff] }
 0x1c7   :  { %1381 = vst.msk [vmem:[#allocation2 + $0x2c] sm:$0xf] %vm1369_vm14, %v1308_v40  ;;  %v1136_v23 = vsel %vm1132_vm11, %v1099_v58, %v8089_v7  ;;  %v1187_v46 = vsel %vm1169_vm12, %v1150_v19, %v8090_v2  ;;  %v1134_v14 = vsel %vm1132_vm11, %v1097_v10, %v8091_v57  ;;  %v5873_v18 = vsel %vm353_vm1, %v1750_v6, %v1752_v47  ;;  %v8093_v40 = vld [vmem:[#allocation81_spill] sm:$0xff]  ;;  %v8095_v10 = vld [vmem:[#allocation84_spill] sm:$0xff]  ;;  %v8103_v22 = vld [vmem:[#allocation127_spill] sm:$0xff] }
 0x1c8   :  { %v928_v5 = vpop.permute.xlu2 %927  ;;  %v5876_v55 = vsel %vm353_vm1, %v1748_v27, %v1750_v6  ;;  %v1156_v8 = vsel %vm1132_vm11, %v1119_v59, %v8092_v51  ;;  %v1142_v58 = vsel %vm1132_vm11, %v1105_v36, %v8093_v40  ;;  %v1140_v39 = vsel %vm1132_vm11, %v1103_v9, %v8094_v29  ;;  %v8097_v6 = vld [vmem:[#allocation86_spill] sm:$0xff]  ;;  %v8098_v9 = vld [vmem:[#allocation87_spill] sm:$0xff] }
 0x1c9   :  { %v1224_v1 = vsel %vm1206_vm13, %v1187_v46, %v928_v5  ;;  %v1162_v48 = vsel %vm1132_vm11, %v1125_v31, %v8095_v10  ;;  %v5887_v60 = vsel %vm353_vm1, %v1752_v47, %v1754_v52  ;;  %v5890_v27 = vpack.c.b16 %v8096_v61, %v1814_v37  ;;  %v8099_v47 = vld [vmem:[#allocation88_spill] sm:$0xff]  ;;  %v8102_v37 = vld [vmem:[#allocation126_spill] sm:$0xff]  ;;  %v8105_v5 = vld [vmem:[#allocation117_spill] sm:$0xff] }
 0x1ca   :  { %v1277_v50 = vunpack.c.l.b16 %v1224_v1  ;;  %v1278_v63 = vunpack.c.h.b16 %v1224_v1  ;;  %v5894_v59 = vsel %vm1132_vm11, %v1111_v34, %v8097_v6  ;;  %v5902_v31 = vsel %vm1132_vm11, %v1109_v45, %v8098_v9  ;;  %v8101_v34 = vld [vmem:[#allocation110_spill] sm:$0xff] }
 0x1cb   :  { %v5906_v12 = vsel %vm1132_vm11, %v1131_v53, %v8099_v47  ;;  %v1756_v19 = vrot.slane %v8100_v32, 1  ;;  %v1758_v17 = vrot.slane %v8101_v34, 1  ;;  %v1173_v3 = vsel %vm1169_vm12, %v1136_v23, %v8102_v37  ;;  %v8104_v2 = vld [vmem:[#allocation14_spill] sm:$0xff] }
 0x1cc   :  { %v1313_v21 = vpack.c.b16 %v1277_v50, %v1277_v50  ;;  %v1314_v36 = vpack.c.b16 %v1278_v63, %v1278_v63  ;;  %1786 = vrot.lane.b32.xlu0 %v5876_v55, %s4251_s6  ;;  %v1171_v7 = vsel %vm1169_vm12, %v1134_v14, %v8103_v22  ;;  %v1193_v46 = vsel %vm1169_vm12, %v1156_v8, %v8104_v2  ;;  %v8107_v22 = vld [vmem:[#allocation124_spill] sm:$0xff] }
 0x1cd   :  { %1788 = vrot.lane.b32.xlu1 %v5873_v18, %s4251_s6  ;;  %v912_v53 = vpop.permute.xlu0 %911  ;;  %v1760_v57 = vrot.slane %v8105_v5, 1  ;;  %v1867_v14 = vshrl.u32 %v5890_v27, 16  ;;  %v1870_v51 = vshll.u32 %v5890_v27, 16  ;;  %v5927_v6 = vsel %vm353_vm1, %v1756_v19, %v1758_v17 }
 0x1ce   :  { %1386 = vst.msk [vmem:[#allocation2 + $0x40] sm:$0xf] %vm1369_vm14, %v1313_v21  ;;  %1790 = vrot.lane.b32.xlu2 %v5887_v60, %s4251_s6  ;;  %v914_v45 = vpop.permute.xlu1 %913  ;;  %v1208_v23 = vsel %vm1206_vm13, %v1171_v7, %v912_v53  ;;  %v5930_v21 = vsel %vm353_vm1, %v1754_v52, %v1756_v19  ;;  %v1764_v7 = vrot.slane %v8107_v22, 1  ;;  %v8112_v22 = vld [vmem:[#allocation24_spill] sm:$0xff] }
 0x1cf   :  { %1387 = vst.msk [vmem:[#allocation2 + $0x44] sm:$0xf] %vm1369_vm14, %v1314_v36  ;;  %v1210_v1 = vsel %vm1206_vm13, %v1173_v3, %v914_v45  ;;  %v1261_v50 = vunpack.c.l.b16 %v1208_v23  ;;  %v1262_v63 = vunpack.c.h.b16 %v1208_v23  ;;  %v8106_v36 = vld [vmem:[#allocation119_spill] sm:$0xff]  ;;  %v8108_v23 = vld [vmem:[#allocation20_spill] sm:$0xff] }
 0x1d0   :  { %v1263_v8 = vunpack.c.l.b16 %v1210_v1  ;;  %v1264_v40 = vunpack.c.h.b16 %v1210_v1  ;;  %v934_v29 = vpop.permute.xlu2 %933  ;;  %v1762_v9 = vrot.slane %v8106_v36, 1  ;;  %v5935_v1 = vsel %vm353_vm1, %v1758_v17, %v1760_v57  ;;  %v8111_v36 = vld [vmem:[#allocation21_spill] sm:$0xff] }
 0x1d1   :  { %v1230_v10 = vsel %vm1206_vm13, %v1193_v46, %v934_v29  ;;  %v1297_v3 = vpack.c.b16 %v1261_v50, %v1261_v50  ;;  %v1298_v2 = vpack.c.b16 %v1262_v63, %v1262_v63  ;;  %v3832_v46 = vld [vmem:[%s7735_s0 + $0xac] sm:$0xc]  ;;  %v1179_v52 = vsel %vm1169_vm12, %v1142_v58, %v8108_v23 }
 0x1d2   :  { %v1299_v47 = vpack.c.b16 %v1263_v8, %v1263_v8  ;;  %v1300_v37 = vpack.c.b16 %v1264_v40, %v1264_v40  ;;  %v1283_v45 = vunpack.c.l.b16 %v1230_v10  ;;  %v1284_v53 = vunpack.c.h.b16 %v1230_v10 }
 0x1d3   :  { %v5948_v8 = vrot.slane %v1867_v14, 1  ;;  %v1872_v17 = vrot.slane %v1870_v51, 2  ;;  %v8109_v63 = vshrl.u32 %v5278_v56, 16  ;;  %v8110_v29 = vshll.u32 %v5278_v56, 16  ;;  %1370 = vst.msk [vmem:[#allocation2] sm:$0xf] %vm1369_vm14, %v1297_v3 }
 0x1d4   :  { %1372 = vst.msk [vmem:[#allocation2 + $0x8] sm:$0xf] %vm1369_vm14, %v1299_v47  ;;  %1792 = vrot.lane.b32.xlu0 %v5930_v21, %s4251_s6  ;;  %v1319_v40 = vpack.c.b16 %v1283_v45, %v1283_v45  ;;  %v1320_v50 = vpack.c.b16 %v1284_v53, %v1284_v53  ;;  %v1177_v47 = vsel %vm1169_vm12, %v1140_v39, %v8111_v36  ;;  %v1993_v45 = vunpack.c.l.b16 %v3832_v46 }
 0x1d5   :  { %1794 = vrot.lane.b32.xlu1 %v5927_v6, %s4251_s6  ;;  %1373 = vst.msk [vmem:[#allocation2 + $0xc] sm:$0xf] %vm1369_vm14, %v1300_v37  ;;  %v1874_v58 = vrot.slane %v8109_v63, 1  ;;  %v1875_v10 = vrot.slane %v8110_v29, 2  ;;  %v1199_v23 = vsel %vm1169_vm12, %v1162_v48, %v8112_v22  ;;  %v918_v51 = vpop.permute.xlu0 %917  ;;  %v5963_v37 = vsel %vm353_vm1, %v1762_v9, %v1764_v7 }
 0x1d6   :  { %1796 = vrot.lane.b32.xlu2 %v5935_v1, %s4251_s6  ;;  %v920_v14 = vpop.permute.xlu1 %919  ;;  %1371 = vst.msk [vmem:[#allocation2 + $0x4] sm:$0xf] %vm1369_vm14, %v1298_v2  ;;  %v1214_v39 = vsel %vm1206_vm13, %v1177_v47, %v918_v51  ;;  %v5969_v63 = vsel %vm353_vm1, %v1760_v57, %v1762_v9  ;;  %v1821_v48 = vrot.slane %v5890_v27, 1  ;;  %v8113_v46 = vrot.slane %v5520_v42, 1 }
 0x1d7   :  { %v1216_v53 = vsel %vm1206_vm13, %v1179_v52, %v920_v14  ;;  %1392 = vst.msk [vmem:[#allocation2 + $0x58] sm:$0xf] %vm1369_vm14, %v1319_v40  ;;  %v1267_v36 = vunpack.c.l.b16 %v1214_v39  ;;  %v1268_v22 = vunpack.c.h.b16 %v1214_v39  ;;  %v1873_v57 = vor.u32 %v1872_v17, %v5948_v8  ;;  %v8115_v17 = vld [vmem:[#allocation113_spill] sm:$0xff] }
 0x1d8   :  { %v1269_v3 = vunpack.c.l.b16 %v1216_v53  ;;  %v1270_v29 = vunpack.c.h.b16 %v1216_v53  ;;  %v940_v19 = vpop.permute.xlu2 %939  ;;  %1393 = vst.msk [vmem:[#allocation2 + $0x5c] sm:$0xf] %vm1369_vm14, %v1320_v50  ;;  %v5978_v52 = vsel %vm353_vm1, %v1764_v7, %v8113_v46  ;;  %v5981_v9 = vor.u32 %v1875_v10, %v1874_v58 }
 0x1d9   :  { %v1236_v2 = vsel %vm1206_vm13, %v1199_v23, %v940_v19  ;;  %v1303_v47 = vpack.c.b16 %v1267_v36, %v1267_v36  ;;  %v5984_v14 = vpack.c.b16 %v8096_v61, %v1993_v45  ;;  %v1304_v51 = vpack.c.b16 %v1268_v22, %v1268_v22  ;;  %v8114_v61 = vld [vmem:[#allocation120_spill] sm:$0xff] }
 0x1da   :  { %v1305_v27 = vpack.c.b16 %v1269_v3, %v1269_v3  ;;  %v1306_v40 = vpack.c.b16 %v1270_v29, %v1270_v29  ;;  %v1289_v53 = vunpack.c.l.b16 %v1236_v2  ;;  %v1290_v50 = vunpack.c.h.b16 %v1236_v2  ;;  %v8117_v23 = vld [vmem:[#allocation116_spill] sm:$0xff] }
 0x1db   :  { %v1185_v19 = vsel %vm1169_vm12, %v5894_v59, %v5660_v62  ;;  %v1183_v7 = vsel %vm1169_vm12, %v5902_v31, %v5662_v25  ;;  %v1906_v8 = vrot.slane %v8114_v61, 1  ;;  %v1907_v58 = vrot.slane %v8115_v17, 2  ;;  %v3833_v62 = vld [vmem:[%s7735_s0 + $0xb4] sm:$0xc]  ;;  %v8116_v31 = vld [vmem:[#allocation122_spill] sm:$0xff] }
 0x1dc   :  { %1378 = vst.msk [vmem:[#allocation2 + $0x20] sm:$0xf] %vm1369_vm14, %v1305_v27  ;;  %1798 = vrot.lane.b32.xlu0 %v5969_v63, %s4251_s6  ;;  %v1325_v59 = vpack.c.b16 %v1289_v53, %v1289_v53  ;;  %v1326_v25 = vpack.c.b16 %v1290_v50, %v1290_v50  ;;  %v1910_v10 = vrot.slane %v8116_v31, 1  ;;  %v1911_v45 = vrot.slane %v8117_v23, 2 }
 0x1dd   :  { %1800 = vrot.lane.b32.xlu1 %v5963_v37, %s4251_s6  ;;  %1379 = vst.msk [vmem:[#allocation2 + $0x24] sm:$0xf] %vm1369_vm14, %v1306_v40  ;;  %v1205_v39 = vsel %vm1169_vm12, %v5906_v12, %v5679_v24  ;;  %v4129_v29 = vld [vmem:[#allocation2] sm:$0xff]  ;;  %v924_v36 = vpop.permute.xlu0 %923  ;;  %v1822_v22 = vsel %vm353_vm1, %v1821_v48, %v5712_v43  ;;  %v1877_v2 = vsel %vm483_vm2, %v1873_v57, %v5981_v9  ;;  %v1995_v46 = vrot.slane %v5984_v14, 2 }
 0x1de   :  { %1376 = vst.msk [vmem:[#allocation2 + $0x18] sm:$0xf] %vm1369_vm14, %v1303_v47  ;;  %1802 = vrot.lane.b32.xlu2 %v5978_v52, %s4251_s6  ;;  %v926_v3 = vpop.permute.xlu1 %925  ;;  %v1220_v12 = vsel %vm1206_vm13, %v1183_v7, %v924_v36  ;;  %v2072_v40 = vunpack.c.l.b16 %v3833_v62  ;;  %4059 = vmatmul.msk.bf16.vlgmr.msra.gmra.mxu0 %vm3043_vm15, %v4129_v29  ;;  %v6026_v50 = vor.u32 %v1911_v45, %v1910_v10  ;;  %v8121_v45 = vld [vmem:[#allocation92_spill] sm:$0xff] }
 0x1df   :  { %1377 = vst.msk [vmem:[#allocation2 + $0x1c] sm:$0xf] %vm1369_vm14, %v1304_v51  ;;  %v1222_v24 = vsel %vm1206_vm13, %v1185_v19, %v926_v3  ;;  %v1273_v43 = vunpack.c.l.b16 %v1220_v12  ;;  %v1274_v48 = vunpack.c.h.b16 %v1220_v12  ;;  %v6024_v51 = vor.u32 %v1907_v58, %v1906_v8  ;;  %v8118_v12 = vld [vmem:[#allocation83_spill] sm:$0xff] }
 0x1e0   :  { %1398 = vst.msk [vmem:[#allocation2 + $0x70] sm:$0xf] %vm1369_vm14, %v1325_v59  ;;  %v1275_v47 = vunpack.c.l.b16 %v1222_v24  ;;  %v1276_v53 = vunpack.c.h.b16 %v1222_v24  ;;  %v946_v57 = vpop.permute.xlu2 %945  ;;  %v7835_v19 = vrot.slane %v8100_v32, 2  ;;  %v7836_v3 = vrot.slane %v8101_v34, 2  ;;  %v8120_v58 = vld [vmem:[#allocation91_spill] sm:$0xff] }
 0x1e1   :  { %1399 = vst.msk [vmem:[#allocation2 + $0x74] sm:$0xf] %vm1369_vm14, %v1326_v25  ;;  %v1242_v14 = vsel %vm1206_vm13, %v1205_v39, %v946_v57  ;;  %v1309_v59 = vpack.c.b16 %v1273_v43, %v1273_v43  ;;  %v1310_v36 = vpack.c.b16 %v1274_v48, %v1274_v48  ;;  %v6031_v27 = vpack.c.b16 %v8118_v12, %v2072_v40  ;;  %v8119_v25 = vld [vmem:[#allocation73_spill] sm:$0xff] }
 0x1e2   :  { %v1311_v7 = vpack.c.b16 %v1275_v47, %v1275_v47  ;;  %v1312_v62 = vpack.c.b16 %v1276_v53, %v1276_v53  ;;  %v1295_v29 = vunpack.c.l.b16 %v1242_v14  ;;  %v1296_v24 = vunpack.c.h.b16 %v1242_v14 }
 0x1e3   :  { %v1121_v8 = vsel %vm1095_vm10, %v5808_v30, %v8119_v25  ;;  %v1154_v10 = vsel %vm1132_vm11, %v5851_v4, %v8120_v58  ;;  %v1152_v39 = vsel %vm1132_vm11, %v5859_v33, %v8121_v45  ;;  %1382 = vst.msk [vmem:[#allocation2 + $0x30] sm:$0xf] %vm1369_vm14, %v1309_v59  ;;  %v2125_v48 = vshrl.u32 %v6031_v27, 16  ;;  %v8123_v25 = vld [vmem:[#allocation97_spill] sm:$0xff] }
 0x1e4   :  { %1384 = vst.msk [vmem:[#allocation2 + $0x38] sm:$0xf] %vm1369_vm14, %v1311_v7  ;;  %1827 = vrot.lane.b32.xlu0 %v1822_v22, %s4252_s10  ;;  %v1191_v40 = vsel %vm1169_vm12, %v1154_v10, %v5723_v38  ;;  %v1189_v30 = vsel %vm1169_vm12, %v1152_v39, %v5725_v41  ;;  %v1331_v4 = vpack.c.b16 %v1295_v29, %v1295_v29  ;;  %v2132_v58 = vrot.slane %v8123_v25, 2  ;;  %v8124_v10 = vld [vmem:[#allocation89_spill] sm:$0xff] }
 0x1e5   :  { %1845 = vrot.lane.b32.xlu1 %v5927_v6, %s4252_s10  ;;  %1385 = vst.msk [vmem:[#allocation2 + $0x3c] sm:$0xf] %vm1369_vm14, %v1312_v62  ;;  %v1332_v47 = vpack.c.b16 %v1296_v24, %v1296_v24  ;;  %v930_v53 = vpop.permute.xlu0 %929  ;;  %v8122_v6 = vrot.slane %v5278_v56, 2  ;;  %v1913_v38 = vsel %vm483_vm2, %v6024_v51, %v6026_v50  ;;  %v6064_v41 = vsel %vm613_vm3, %v7835_v19, %v7836_v3  ;;  %v8126_v19 = vld [vmem:[#allocation102_spill] sm:$0xff]  ;;  %v8127_v3 = vld [vmem:[#allocation103_spill] sm:$0xff] }
 0x1e6   :  { %1956 = vrot.lane.b32.xlu2 %v1877_v2, %s4253_s15  ;;  %v932_v33 = vpop.permute.xlu1 %931  ;;  %1383 = vst.msk [vmem:[#allocation2 + $0x34] sm:$0xf] %vm1369_vm14, %v1310_v36  ;;  %v1226_v43 = vsel %vm1206_vm13, %v1189_v30, %v930_v53  ;;  %v3838_v36 = vld [vmem:[%s7735_s0 + $0xb4] sm:$0x8]  ;;  %v6080_v24 = vrot.slane %v5296_v54, 2  ;;  %v2133_v45 = vrot.slane %v8124_v10, 3  ;;  %v1160_v54 = vsel %vm1132_vm11, %v5863_v0, %v8126_v19 }
 0x1e7   :  { %v1997_v22 = vsel %vm613_vm3, %v1995_v46, %v8122_v6  ;;  %v1228_v2 = vsel %vm1206_vm13, %v1191_v40, %v932_v33  ;;  %v2128_v46 = vshll.u32 %v6031_v27, 16  ;;  %1404 = vst.msk [vmem:[#allocation2 + $0x88] sm:$0xf] %vm1369_vm14, %v1331_v4  ;;  %v1279_v7 = vunpack.c.l.b16 %v1226_v43 }
 0x1e8   :  { %v1281_v57 = vunpack.c.l.b16 %v1228_v2  ;;  %v1282_v14 = vunpack.c.h.b16 %v1228_v2  ;;  %v1280_v62 = vunpack.c.h.b16 %v1226_v43  ;;  %v6072_v59 = vpop.permute.xlu2 %1702  ;;  %1405 = vst.msk [vmem:[#allocation2 + $0x8c] sm:$0xf] %vm1369_vm14, %v1332_v47  ;;  %v2079_v4 = vrot.slane %v6031_v27, 2  ;;  %v8125_v43 = vld [vmem:[#allocation47_spill] sm:$0xff]  ;;  %v8128_v27 = vld [vmem:[#allocation48_spill] sm:$0xff] }
 0x1e9   :  { %v1315_v30 = vpack.c.b16 %v1279_v7, %v1279_v7  ;;  %v2127_v53 = vrot.slane %v2125_v48, 2  ;;  %v2130_v6 = vrot.slane %v2128_v46, 3  ;;  %v2251_v2 = vunpack.c.l.b16 %v3838_v36  ;;  %v8129_v48 = vld [vmem:[#allocation28_spill] sm:$0xff] }
 0x1ea   :  { %v1317_v39 = vpack.c.b16 %v1281_v57, %v1281_v57  ;;  %v1318_v40 = vpack.c.b16 %v1282_v14, %v1282_v14  ;;  %v1316_v33 = vpack.c.b16 %v1280_v62, %v1280_v62  ;;  %v1055_v47 = vsel %vm1021_vm8, %v5668_v16, %v8125_v43  ;;  %v8130_v57 = vld [vmem:[#allocation58_spill] sm:$0xff] }
 0x1eb   :  { %v1158_v29 = vsel %vm1132_vm11, %v1121_v8, %v8127_v3  ;;  %v1053_v46 = vsel %vm1021_vm8, %v8129_v48, %v8128_v27  ;;  %v1092_v16 = vsel %vm1058_vm9, %v1055_v47, %v8130_v57  ;;  %v1197_v14 = vsel %vm1169_vm12, %v1160_v54, %v5778_v20  ;;  %1388 = vst.msk [vmem:[#allocation2 + $0x48] sm:$0xf] %vm1369_vm14, %v1315_v30  ;;  %v4130_v3 = vld [vmem:[#allocation2 + $0x8] sm:$0xff]  ;;  %v8134_v27 = vld [vmem:[#allocation123_spill] sm:$0xff] }
 0x1ec   :  { %1390 = vst.msk [vmem:[#allocation2 + $0x50] sm:$0xf] %vm1369_vm14, %v1317_v39  ;;  %1974 = vrot.lane.b32.xlu0 %v1913_v38, %s4253_s15  ;;  %v1195_v0 = vsel %vm1169_vm12, %v1158_v29, %v5780_v49  ;;  %v8132_v38 = vrot.slane %v8101_v34, 2  ;;  %v2080_v20 = vsel %vm613_vm3, %v2079_v4, %v6080_v24  ;;  %v6118_v49 = vor.u32 %v2133_v45, %v2132_v58  ;;  %v8133_v4 = vld [vmem:[#allocation16_spill] sm:$0xff]  ;;  %v8135_v57 = vld [vmem:[#allocation59_spill] sm:$0xff] }
 0x1ed   :  { %2032 = vrot.lane.b32.xlu1 %v1997_v22, %s4254_s20  ;;  %1391 = vst.msk [vmem:[#allocation2 + $0x54] sm:$0xf] %vm1369_vm14, %v1318_v40  ;;  %v936_v8 = vpop.permute.xlu0 %935  ;;  %v8131_v22 = vrot.slane %v8105_v5, 2  ;;  %v2131_v29 = vor.u32 %v2130_v6, %v2127_v53  ;;  %v2252_v39 = vpack.c.b16 %v8118_v12, %v2251_v2  ;;  %v2164_v58 = vrot.slane %v8116_v31, 2 }
 0x1ee   :  { %2050 = vrot.lane.b32.xlu2 %v6064_v41, %s4254_s20  ;;  %v938_v19 = vpop.permute.xlu1 %937  ;;  %1389 = vst.msk [vmem:[#allocation2 + $0x4c] sm:$0xf] %vm1369_vm14, %v1316_v33  ;;  %v1232_v36 = vsel %vm1206_vm13, %v1195_v0, %v936_v8  ;;  %4060 = vmatmul.msk.bf16.gmra.mxu0 %vm3043_vm15, %v4130_v3  ;;  %v2165_v45 = vrot.slane %v8117_v23, 3  ;;  %v2168_v33 = vrot.slane %v8133_v4, 2  ;;  %v2169_v48 = vrot.slane %v8134_v27, 3  ;;  %v8138_v23 = vld [vmem:[#allocation114_spill] sm:$0xff] }
 0x1ef   :  { %v6114_v7 = vsel %vm613_vm3, %v8132_v38, %v8131_v22  ;;  %v1234_v62 = vsel %vm1206_vm13, %v1197_v14, %v938_v19  ;;  %v1285_v43 = vunpack.c.l.b16 %v1232_v36  ;;  %v1286_v47 = vunpack.c.h.b16 %v1232_v36  ;;  %v8136_v14 = vld [vmem:[#allocation74_spill] sm:$0xff]  ;;  %v8137_v19 = vld [vmem:[#allocation75_spill] sm:$0xff] }
 0x1f0   :  { %v1287_v40 = vunpack.c.l.b16 %v1234_v62  ;;  %v1288_v30 = vunpack.c.h.b16 %v1234_v62  ;;  %v6125_v54 = vpop.permute.xlu2 %1708  ;;  %v1090_v53 = vsel %vm1058_vm9, %v1053_v46, %v8135_v57  ;;  %v1129_v0 = vsel %vm1095_vm10, %v1092_v16, %v8136_v14  ;;  %v8139_v38 = vld [vmem:[#allocation115_spill] sm:$0xff] }
 0x1f1   :  { %v1321_v2 = vpack.c.b16 %v1285_v43, %v1285_v43  ;;  %v1127_v3 = vsel %vm1095_vm10, %v1090_v53, %v8137_v19  ;;  %v1322_v8 = vpack.c.b16 %v1286_v47, %v1286_v47  ;;  %v2135_v31 = vsel %vm743_vm4, %v2131_v29, %v6118_v49  ;;  %v6151_v16 = vld [vmem:[%s7735_s0 + $0xbc] sm:$0xff] }
 0x1f2   :  { %v1323_v12 = vpack.c.b16 %v1287_v40, %v1287_v40  ;;  %v1324_v6 = vpack.c.b16 %v1288_v30, %v1288_v30  ;;  %v1166_v22 = vsel %vm1132_vm11, %v1129_v0, %v8138_v23  ;;  %v1164_v62 = vsel %vm1132_vm11, %v1127_v3, %v8139_v38  ;;  %v4131_v38 = vld [vmem:[#allocation2 + $0x10] sm:$0xff] }
 0x1f3   :  { %v2253_v46 = vrot.slane %v2252_v39, 3  ;;  %v2254_v36 = vrot.slane %v6151_v16, 3  ;;  %v6154_v29 = vor.u32 %v2165_v45, %v2164_v58  ;;  %v6156_v40 = vor.u32 %v2169_v48, %v2168_v33  ;;  %1394 = vst.msk [vmem:[#allocation2 + $0x60] sm:$0xf] %vm1369_vm14, %v1321_v2 }
 0x1f4   :  { %1396 = vst.msk [vmem:[#allocation2 + $0x68] sm:$0xf] %vm1369_vm14, %v1323_v12  ;;  %2085 = vrot.lane.b32.xlu0 %v2080_v20, %s4255_s23  ;;  %v1203_v30 = vsel %vm1169_vm12, %v1166_v22, %v5845_v11  ;;  %v1201_v20 = vsel %vm1169_vm12, %v1164_v62, %v5847_v35  ;;  %v7837_v33 = vrot.slane %v8101_v34, 3  ;;  %v2272_v11 = vrot.slane %v8105_v5, 3 }
 0x1f5   :  { %2103 = vrot.lane.b32.xlu1 %v6114_v7, %s4255_s23  ;;  %1397 = vst.msk [vmem:[#allocation2 + $0x6c] sm:$0xf] %vm1369_vm14, %v1324_v6  ;;  %v4138_v43 = vld [vmem:[#allocation2 + $0x48] sm:$0xff]  ;;  %v942_v47 = vpop.permute.xlu0 %941  ;;  %v2255_v6 = vsel %vm873_vm5, %v2253_v46, %v2254_v36  ;;  %v2171_v2 = vsel %vm743_vm4, %v6154_v29, %v6156_v40  ;;  %v1879_v23 = vrot.slane %v8124_v10, 2  ;;  %v1914_v46 = vrot.slane %v8133_v4, 1 }
 0x1f6   :  { %2214 = vrot.lane.b32.xlu2 %v2135_v31, %s4256_s28  ;;  %v944_v39 = vpop.permute.xlu1 %943  ;;  %1395 = vst.msk [vmem:[#allocation2 + $0x64] sm:$0xf] %vm1369_vm14, %v1322_v8  ;;  %v1238_v45 = vsel %vm1206_vm13, %v1201_v20, %v942_v47  ;;  %4068 = vmatmul.msk.bf16.vlgmr.msra.gmra.mxu1 %vm3043_vm15, %v4138_v43  ;;  %v2273_v8 = vsel %vm873_vm5, %v7837_v33, %v2272_v11  ;;  %v1878_v31 = vrot.slane %v8123_v25, 1  ;;  %v4139_v47 = vld [vmem:[#allocation2 + $0x50] sm:$0xff] }
 0x1f7   :  { %v1240_v58 = vsel %vm1206_vm13, %v1203_v30, %v944_v39  ;;  %v1291_v35 = vunpack.c.l.b16 %v1238_v45  ;;  %v1292_v53 = vunpack.c.h.b16 %v1238_v45  ;;  %v1915_v30 = vrot.slane %v8134_v27, 2 }
 0x1f8   :  { %v1293_v48 = vunpack.c.l.b16 %v1240_v58  ;;  %v1294_v57 = vunpack.c.h.b16 %v1240_v58  ;;  %v6170_v12 = vpop.permute.xlu2 %1714  ;;  %v6196_v25 = vor.u32 %v1879_v23, %v1878_v31  ;;  %v8141_v58 = vld [vmem:[#allocation96_spill] sm:$0xff]  ;;  %v8145_v23 = vld [vmem:[#allocation15_spill] sm:$0xff] }
 0x1f9   :  { %v1327_v19 = vpack.c.b16 %v1291_v35, %v1291_v35  ;;  %v1328_v3 = vpack.c.b16 %v1292_v53, %v1292_v53  ;;  %v6210_v39 = vor.u32 %v1915_v30, %v1914_v46  ;;  %v2136_v45 = vrot.slane %v8141_v58, 2  ;;  %v6234_v35 = vld [vmem:[%s7735_s0 + $0x10c] sm:$0xff] }
 0x1fa   :  { %v1329_v14 = vpack.c.b16 %v1293_v48, %v1293_v48  ;;  %v1330_v0 = vpack.c.b16 %v1294_v57, %v1294_v57  ;;  %v1881_v20 = vsel %vm483_vm2, %v5981_v9, %v6196_v25  ;;  %v8140_v9 = vrot.slane %v5278_v56, 2  ;;  %v8142_v48 = vld [vmem:[#allocation90_spill] sm:$0xff]  ;;  %v8146_v46 = vld [vmem:[#allocation125_spill] sm:$0xff] }
 0x1fb   :  { %1400 = vst.msk [vmem:[#allocation2 + $0x78] sm:$0xf] %vm1369_vm14, %v1327_v19  ;;  %v2137_v57 = vrot.slane %v8142_v48, 3  ;;  %v2018_v53 = vrot.slane %v6234_v35, 2  ;;  %v2173_v30 = vrot.slane %v8146_v46, 3 }
 0x1fc   :  { %1402 = vst.msk [vmem:[#allocation2 + $0x80] sm:$0xf] %vm1369_vm14, %v1329_v14  ;;  %2232 = vrot.lane.b32.xlu0 %v2171_v2, %s4256_s28  ;;  %v4132_v14 = vld [vmem:[#allocation2 + $0x18] sm:$0xff] }
 0x1fd   :  { %2290 = vrot.lane.b32.xlu1 %v2255_v6, %s4257_s17  ;;  %1403 = vst.msk [vmem:[#allocation2 + $0x84] sm:$0xf] %vm1369_vm14, %v1330_v0  ;;  %v6193_v62 = vpop.permute.xlu0 %1698  ;;  %v6240_v6 = vld [vmem:[%s7735_s0 + $0xc4] sm:$0xff]  ;;  %v6249_v19 = vor.u32 %v2137_v57, %v2136_v45  ;;  %v7840_v45 = vrot.slane %v6234_v35, 3 }
 0x1fe   :  { %2308 = vrot.lane.b32.xlu2 %v2273_v8, %s4257_s17  ;;  %v6191_v22 = vpop.permute.xlu1 %1700  ;;  %1401 = vst.msk [vmem:[#allocation2 + $0x7c] sm:$0xf] %vm1369_vm14, %v1328_v3  ;;  %4061 = vmatmul.msk.bf16.gmra.mxu0 %vm3043_vm15, %v4131_v38  ;;  %v8144_v8 = vrot.slane %v8105_v5, 2  ;;  %v2172_v38 = vrot.slane %v8145_v23, 2  ;;  %v6313_v5 = vld [vmem:[%s7735_s0 + $0xcc] sm:$0xff] }
 0x200   :  { %v6199_v10 = vpop.permute.xlu2 %1720  ;;  %v2019_v31 = vsel %vm613_vm3, %v8144_v8, %v2018_v53 }
 0x204   :  { %1829 = vrot.lane.b32.xlu0 %v5754_v26, %s4252_s10  ;;  %v1917_v26 = vsel %vm483_vm2, %v6026_v50, %v6210_v39  ;;  %v2000_v50 = vrot.slane %v6240_v6, 2 }
 0x205   :  { %1847 = vrot.lane.b32.xlu1 %v5935_v1, %s4252_s10  ;;  %v6215_v4 = vpop.permute.xlu0 %1704  ;;  %v1999_v1 = vsel %vm613_vm3, %v8140_v9, %v6080_v24  ;;  %v6271_v9 = vor.u32 %v2173_v30, %v2172_v38  ;;  %v1883_v30 = vrot.slane %v8142_v48, 2 }
 0x206   :  { %1958 = vrot.lane.b32.xlu2 %v1881_v20, %s4253_s15  ;;  %v6213_v43 = vpop.permute.xlu1 %1706  ;;  %4069 = vmatmul.msk.bf16.gmra.mxu1 %vm3043_vm15, %v4139_v47  ;;  %v2139_v20 = vsel %vm743_vm4, %v6118_v49, %v6249_v19  ;;  %v2256_v47 = vrot.slane %v6240_v6, 3  ;;  %v2331_v49 = vsel %vm947_vm6, %v5278_v56, %v6072_v59  ;;  %v2275_v56 = vsel %vm873_vm5, %v2272_v11, %v7840_v45 }
 0x207   :  { %v2175_v38 = vsel %vm743_vm4, %v6156_v40, %v6271_v9  ;;  %v1882_v59 = vrot.slane %v8141_v58, 1  ;;  %v2337_v11 = vsel %vm947_vm6, %v6313_v5, %v6125_v54 }
 0x208   :  { %v6218_v27 = vpop.permute.xlu2 %1726  ;;  %v2257_v8 = vsel %vm873_vm5, %v2254_v36, %v2256_v47 }
 0x20c   :  { %1976 = vrot.lane.b32.xlu0 %v1917_v26, %s4253_s15 }
 0x20d   :  { %2034 = vrot.lane.b32.xlu1 %v1999_v1, %s4254_s20  ;;  %v6247_v0 = vpop.permute.xlu0 %1710 }
 0x20e   :  { %2052 = vrot.lane.b32.xlu2 %v6114_v7, %s4254_s20  ;;  %v6245_v2 = vpop.permute.xlu1 %1712  ;;  %4062 = vmatmul.msk.bf16.gmra.mxu0 %vm3043_vm15, %v4132_v14  ;;  %v2001_v7 = vsel %vm613_vm3, %v6080_v24, %v2000_v50  ;;  %v4140_v24 = vld [vmem:[#allocation2 + $0x58] sm:$0xff] }
 0x210   :  { %v6252_v3 = vpop.permute.xlu2 %1732 }
 0x211   :  { %8143 = vst [vmem:[#allocation29_spill] sm:$0xff] %v6252_v3 }
 0x214   :  { %2087 = vrot.lane.b32.xlu0 %v2001_v7, %s4255_s23 }
 0x215   :  { %2105 = vrot.lane.b32.xlu1 %v2019_v31, %s4255_s23  ;;  %v6276_v26 = vpop.permute.xlu0 %1716 }
 0x216   :  { %2216 = vrot.lane.b32.xlu2 %v2139_v20, %s4256_s28  ;;  %v6274_v1 = vpop.permute.xlu1 %1718  ;;  %4070 = vmatmul.msk.bf16.gmra.mxu1 %vm3043_vm15, %v4140_v24  ;;  %v4133_v20 = vld [vmem:[#allocation2 + $0x20] sm:$0xff]  ;;  %v6308_v24 = vor.u32 %v1883_v30, %v1882_v59  ;;  %v8149_v30 = vld [vmem:[#allocation98_spill] sm:$0xff] }
 0x218   :  { %v1779_v57 = vpop.permute.xlu2 %1778 }
 0x219   :  { %v6284_v14 = vsel %vm984_vm7, %v2331_v49, %v1779_v57  ;;  %v1918_v49 = vrot.slane %v8145_v23, 1  ;;  %v1919_v57 = vrot.slane %v8146_v46, 2  ;;  %v6341_v46 = vld [vmem:[%s7735_s0 + $0xe4] sm:$0xff] }
 0x21b   :  { %v6331_v54 = vor.u32 %v1919_v57, %v1918_v49  ;;  %v7838_v57 = vrot.slane %v6313_v5, 2 }
 0x21c   :  { %2234 = vrot.lane.b32.xlu0 %v2175_v38, %s4256_s28 }
 0x21d   :  { %2292 = vrot.lane.b32.xlu1 %v2257_v8, %s4257_s17  ;;  %v6306_v40 = vpop.permute.xlu0 %1722  ;;  %v1885_v8 = vsel %vm483_vm2, %v6196_v25, %v6308_v24  ;;  %v1921_v59 = vsel %vm483_vm2, %v6210_v39, %v6331_v54  ;;  %v2329_v39 = vsel %vm947_vm6, %v5268_v13, %v6191_v22 }
 0x21e   :  { %2310 = vrot.lane.b32.xlu2 %v2275_v56, %s4257_s17  ;;  %4063 = vmatmul.msk.bf16.gmra.mxu0 %vm3043_vm15, %v4133_v20  ;;  %v4141_v56 = vld [vmem:[#allocation2 + $0x60] sm:$0xff]  ;;  %v2140_v20 = vrot.slane %v8149_v30, 2 }
 0x21f   :  { %v6304_v36 = vpop.permute.xlu1 %1724 }
 0x220   :  { %v1785_v58 = vpop.permute.xlu2 %1784 }
 0x221   :  { %v6320_v48 = vsel %vm984_vm7, %v2337_v11, %v1785_v58  ;;  %v8150_v11 = vld [vmem:[#allocation93_spill] sm:$0xff] }
 0x222   :  { %v2141_v58 = vrot.slane %v8150_v11, 3 }
 0x224   :  { %1831 = vrot.lane.b32.xlu0 %v5804_v28, %s4252_s10 }
 0x225   :  { %1849 = vrot.lane.b32.xlu1 %v5969_v63, %s4252_s10  ;;  %v2343_v63 = vsel %vm947_vm6, %v6341_v46, %v6170_v12  ;;  %v6360_v12 = vld [vmem:[%s7735_s0 + $0x114] sm:$0xff] }
 0x226   :  { %1960 = vrot.lane.b32.xlu2 %v1885_v8, %s4253_s15  ;;  %v6336_v23 = vpop.permute.xlu0 %1728  ;;  %4071 = vmatmul.msk.bf16.gmra.mxu1 %vm3043_vm15, %v4141_v56  ;;  %v7839_v49 = vrot.slane %v6360_v12, 2  ;;  %v4134_v56 = vld [vmem:[#allocation2 + $0x28] sm:$0xff] }
 0x227   :  { %v6334_v38 = vpop.permute.xlu1 %1730 }
 0x228   :  { %8147 = vst [vmem:[#allocation30_spill] sm:$0xff] %v6334_v38  ;;  %v1791_v28 = vpop.permute.xlu2 %1790  ;;  %v6386_v22 = vsel %vm613_vm3, %v2018_v53, %v7839_v49 }
 0x229   :  { %v6348_v25 = vsel %vm984_vm7, %v2343_v63, %v1791_v28  ;;  %v6373_v28 = vor.u32 %v2141_v58, %v2140_v20  ;;  %v2003_v20 = vsel %vm613_vm3, %v2000_v50, %v7838_v57  ;;  %v2335_v50 = vsel %vm947_vm6, %v6240_v6, %v6213_v43  ;;  %v6448_v6 = vld [vmem:[%s7735_s0 + $0xdc] sm:$0xff] }
 0x22a   :  { %8148 = vst [vmem:[#allocation31_spill] sm:$0xff] %v6348_v25  ;;  %v2355_v43 = vsel %vm947_vm6, %v6360_v12, %v6218_v27  ;;  %v8153_v27 = vrot.slane %v6234_v35, 3 }
 0x22c   :  { %1978 = vrot.lane.b32.xlu0 %v1921_v59, %s4253_s15  ;;  %v4235_v59 = vld [vmem:[%s7735_s0 + $0xfc] sm:$0xff] }
 0x22d   :  { %2036 = vrot.lane.b32.xlu1 %v2001_v7, %s4254_s20  ;;  %v2349_v33 = vsel %vm947_vm6, %v4235_v59, %v6199_v10  ;;  %v8151_v10 = vld [vmem:[#allocation17_spill] sm:$0xff]  ;;  %v2333_v59 = vsel %vm947_vm6, %v6151_v16, %v6215_v4 }
 0x22e   :  { %2054 = vrot.lane.b32.xlu2 %v2019_v31, %s4254_s20  ;;  %v6368_v7 = vpop.permute.xlu0 %1774  ;;  %4064 = vmatmul.msk.bf16.gmra.mxu0 %vm3043_vm15, %v4134_v56  ;;  %v2176_v58 = vrot.slane %v8151_v10, 2  ;;  %v2143_v56 = vsel %vm743_vm4, %v6249_v19, %v6373_v28 }
 0x22f   :  { %v1777_v8 = vpop.permute.xlu1 %1776 }
 0x230   :  { %v6371_v63 = vsel %vm984_vm7, %v2329_v39, %v1777_v8  ;;  %v1797_v13 = vpop.permute.xlu2 %1796  ;;  %v8152_v39 = vld [vmem:[#allocation13_spill] sm:$0xff] }
 0x231   :  { %v6389_v31 = vsel %vm984_vm7, %v2349_v33, %v1797_v13  ;;  %v2177_v8 = vrot.slane %v8152_v39, 3  ;;  %v2258_v33 = vrot.slane %v6313_v5, 3  ;;  %v4142_v13 = vld [vmem:[#allocation2 + $0x68] sm:$0xff] }
 0x233   :  { %v6405_v53 = vor.u32 %v2177_v8, %v2176_v58  ;;  %v7843_v58 = vrot.slane %v6360_v12, 3  ;;  %v2259_v8 = vsel %vm873_vm5, %v2256_v47, %v2258_v33  ;;  %v2341_v47 = vsel %vm947_vm6, %v6448_v6, %v6245_v2 }
 0x234   :  { %2089 = vrot.lane.b32.xlu0 %v2003_v20, %s4255_s23 }
 0x235   :  { %2107 = vrot.lane.b32.xlu1 %v6386_v22, %s4255_s23 }
 0x236   :  { %2218 = vrot.lane.b32.xlu2 %v2143_v56, %s4256_s28  ;;  %v1781_v57 = vpop.permute.xlu0 %1780  ;;  %4072 = vmatmul.msk.bf16.gmra.mxu1 %vm3043_vm15, %v4142_v13  ;;  %v2277_v56 = vsel %vm873_vm5, %v8153_v27, %v7843_v58 }
 0x237   :  { %v1783_v19 = vpop.permute.xlu1 %1782  ;;  %v6418_v45 = vsel %vm984_vm7, %v2333_v59, %v1781_v57  ;;  %v2179_v57 = vsel %vm743_vm4, %v6271_v9, %v6405_v53  ;;  %v1887_v59 = vrot.slane %v8150_v11, 2  ;;  %v6456_v9 = vld [vmem:[%s7735_s0 + $0xd4] sm:$0xff] }
 0x238   :  { %v6415_v49 = vsel %vm984_vm7, %v2335_v50, %v1783_v19  ;;  %v1803_v16 = vpop.permute.xlu2 %1802  ;;  %v1886_v50 = vrot.slane %v8149_v30, 1  ;;  %v2339_v30 = vsel %vm947_vm6, %v6456_v9, %v6247_v0  ;;  %v4135_v19 = vld [vmem:[#allocation2 + $0x30] sm:$0xff]  ;;  %v1923_v0 = vrot.slane %v8152_v39, 2 }
 0x239   :  { %v6426_v4 = vsel %vm984_vm7, %v2355_v43, %v1803_v16 }
 0x23a   :  { %v6468_v2 = vor.u32 %v1887_v59, %v1886_v50  ;;  %v4238_v50 = vld [vmem:[%s7735_s0 + $0xf4] sm:$0xff] }
 0x23b   :  { %v4143_v59 = vld [vmem:[#allocation2 + $0x70] sm:$0xff] }
 0x23c   :  { %2236 = vrot.lane.b32.xlu0 %v2179_v57, %s4256_s28  ;;  %v1922_v57 = vrot.slane %v8151_v10, 1  ;;  %v1889_v27 = vsel %vm483_vm2, %v6308_v24, %v6468_v2  ;;  %v2347_v10 = vsel %vm947_vm6, %v4238_v50, %v6274_v1  ;;  %v8156_v1 = vld [vmem:[#allocation99_spill] sm:$0xff] }
 0x23d   :  { %2294 = vrot.lane.b32.xlu1 %v2259_v8, %s4257_s17 }
 0x23e   :  { %2312 = vrot.lane.b32.xlu2 %v2277_v56, %s4257_s17  ;;  %v1787_v13 = vpop.permute.xlu0 %1786  ;;  %4065 = vmatmul.msk.bf16.gmra.mxu0 %vm3043_vm15, %v4135_v19  ;;  %v6482_v56 = vor.u32 %v1923_v0, %v1922_v57  ;;  %v2145_v19 = vrot.slane %v8156_v1, 3  ;;  %v7841_v0 = vrot.slane %v6456_v9, 2 }
 0x23f   :  { %v1789_v11 = vpop.permute.xlu1 %1788  ;;  %v6466_v16 = vsel %vm984_vm7, %v2339_v30, %v1787_v13  ;;  %v8155_v30 = vld [vmem:[#allocation108_spill] sm:$0xff]  ;;  %v6508_v13 = vld [vmem:[%s7735_s0 + $0x11c] sm:$0xff] }
 0x240   :  { %v6463_v43 = vsel %vm984_vm7, %v2341_v47, %v1789_v11  ;;  %v6471_v8 = vpop.permute.xlu2 %1956  ;;  %v1925_v47 = vsel %vm483_vm2, %v6331_v54, %v6482_v56  ;;  %v2144_v11 = vrot.slane %v8155_v30, 2  ;;  %v7842_v57 = vrot.slane %v6508_v13, 2 }
 0x241   :  { %8154 = vst [vmem:[#allocation32_spill] sm:$0xff] %v6463_v43  ;;  %v2353_v54 = vsel %vm947_vm6, %v6234_v35, %v6304_v36  ;;  %v7845_v58 = vrot.slane %v6508_v13, 3  ;;  %v1890_v25 = vrot.slane %v8155_v30, 1 }
 0x242   :  { %v6528_v35 = vor.u32 %v2145_v19, %v2144_v11  ;;  %v8159_v11 = vld [vmem:[#allocation26_spill] sm:$0xff] }
 0x243   :  { %v2180_v19 = vrot.slane %v8159_v11, 2 }
 0x244   :  { %1833 = vrot.lane.b32.xlu0 %v5801_v44, %s4252_s10 }
 0x245   :  { %1851 = vrot.lane.b32.xlu1 %v5963_v37, %s4252_s10 }
 0x246   :  { %1962 = vrot.lane.b32.xlu2 %v1889_v27, %s4253_s15  ;;  %v6490_v24 = vpop.permute.xlu0 %1792  ;;  %4073 = vmatmul.msk.bf16.gmra.mxu1 %vm3043_vm15, %v4143_v59  ;;  %v4240_v27 = vld [vmem:[%s7735_s0 + $0x104] sm:$0xff] }
 0x247   :  { %v1795_v39 = vpop.permute.xlu1 %1794 }
 0x248   :  { %v6493_v37 = vsel %vm984_vm7, %v2347_v10, %v1795_v39  ;;  %v6496_v44 = vpop.permute.xlu2 %2050  ;;  %v4136_v10 = vld [vmem:[#allocation2 + $0x38] sm:$0xff] }
 0x24c   :  { %1980 = vrot.lane.b32.xlu0 %v1925_v47, %s4253_s15 }
 0x24d   :  { %2038 = vrot.lane.b32.xlu1 %v2003_v20, %s4254_s20  ;;  %v2351_v20 = vsel %vm947_vm6, %v4240_v27, %v6306_v40  ;;  %v8157_v40 = vrot.slane %v6360_v12, 2 }
 0x24e   :  { %2056 = vrot.lane.b32.xlu2 %v6386_v22, %s4254_s20  ;;  %v1799_v39 = vpop.permute.xlu0 %1798  ;;  %4066 = vmatmul.msk.bf16.gmra.mxu0 %vm3043_vm15, %v4136_v10  ;;  %v2147_v10 = vsel %vm743_vm4, %v6373_v28, %v6528_v35 }
 0x24f   :  { %v1801_v50 = vpop.permute.xlu1 %1800  ;;  %v6526_v47 = vsel %vm984_vm7, %v2351_v20, %v1799_v39  ;;  %v6538_v22 = vsel %vm613_vm3, %v8157_v40, %v7842_v57  ;;  %v8160_v20 = vld [vmem:[#allocation18_spill] sm:$0xff]  ;;  %v7844_v39 = vrot.slane %v6456_v9, 3 }
 0x250   :  { %v6523_v59 = vsel %vm984_vm7, %v2353_v54, %v1801_v50  ;;  %v6531_v36 = vpop.permute.xlu2 %2214  ;;  %v8158_v54 = vrot.slane %v6313_v5, 2  ;;  %v2181_v50 = vrot.slane %v8160_v20, 3  ;;  %v1891_v5 = vrot.slane %v8156_v1, 2 }
 0x251   :  { %v2261_v3 = vsel %vm873_vm5, %v2258_v33, %v7844_v39  ;;  %v6587_v33 = vld [vmem:[%s7738_s3] ss:$0 sm:$0xff] }
 0x252   :  { %v6545_v27 = vsel %vm613_vm3, %v8158_v54, %v7841_v0  ;;  %v6557_v40 = vor.u32 %v2181_v50, %v2180_v19  ;;  %v4144_v0 = vld [vmem:[#allocation2 + $0x78] sm:$0xff]  ;;  %v6575_v50 = vld [vmem:[%s7737_s2] ss:$0 sm:$0xff]  ;;  %v6593_v30 = vor.u32 %v1891_v5, %v1890_v25 }
 0x254   :  { %2091 = vrot.lane.b32.xlu0 %v6545_v27, %s4255_s23  ;;  %v2183_v19 = vsel %vm743_vm4, %v6405_v53, %v6557_v40 }
 0x255   :  { %2109 = vrot.lane.b32.xlu1 %v6538_v22, %s4255_s23 }
 0x256   :  { %2220 = vrot.lane.b32.xlu2 %v2147_v10, %s4256_s28  ;;  %v1828_v57 = vpop.permute.xlu0 %1827  ;;  %4074 = vmatmul.msk.bf16.gmra.mxu1 %vm3043_vm15, %v4144_v0  ;;  %v8161_v0 = vrot.slane %v6360_v12, 3 }
 0x257   :  { %v1846_v54 = vpop.permute.xlu1 %1845 }
 0x258   :  { %v6562_v28 = vpop.permute.xlu2 %2308  ;;  %v2279_v10 = vsel %vm873_vm5, %v8161_v0, %v7845_v58  ;;  %v4137_v0 = vld [vmem:[#allocation2 + $0x40] sm:$0xff] }
 0x25b   :  { %v3168_v53 = vpop.f32.mrf.mxu0 }
 0x25c   :  { %2238 = vrot.lane.b32.xlu0 %v2183_v19, %s4256_s28  ;;  %v3352_v39 = vmul.f32 %v6575_v50, %v3168_v53  ;;  %v1927_v19 = vrot.slane %v8160_v20, 2  ;;  %v8162_v53 = vld [vmem:[#allocation85_spill] sm:$0xff] }
 0x25d   :  { %2296 = vrot.lane.b32.xlu1 %v2261_v3, %s4257_s17  ;;  %v1926_v3 = vrot.slane %v8159_v11, 1  ;;  %v2327_v25 = vsel %vm947_vm6, %v8162_v53, %v6193_v62 }
 0x25e   :  { %2314 = vrot.lane.b32.xlu2 %v2279_v10, %s4257_s17  ;;  %v1975_v58 = vpop.permute.xlu0 %1974  ;;  %v3428_v1 = vadd.f32 %v6587_v33, %v3352_v39  ;;  %4067 = vmatmul.msk.bf16.gmra.mxu0 %vm3043_vm15, %v4137_v0  ;;  %v1893_v10 = vsel %vm483_vm2, %v6468_v2, %v6593_v30  ;;  %v2363_v20 = vsel %vm984_vm7, %v2327_v25, %v6368_v7  ;;  %v6625_v2 = vld [vmem:[%s7735_s0 + $0xec] sm:$0xff]  ;;  %v8163_v25 = vld [vmem:[#allocation107_spill] sm:$0xff] }
 0x25f   :  { %v2033_v12 = vpop.permute.xlu1 %2032  ;;  %v6611_v11 = vor.u32 %v1927_v19, %v1926_v3  ;;  %v2399_v0 = vsel %vm1021_vm8, %v2363_v20, %v1828_v57  ;;  %v2345_v7 = vsel %vm947_vm6, %v6625_v2, %v6276_v26  ;;  %v2148_v26 = vrot.slane %v8163_v25, 2 }
 0x260   :  { %v6597_v43 = vpop.permute.xlu2 %1958  ;;  %v3500_v38 = vmax.f32 %v3428_v1, 0.0  ;;  %v2381_v57 = vsel %vm984_vm7, %v2345_v7, %v6490_v24  ;;  %v2435_v53 = vsel %vm1058_vm9, %v2399_v0, %v6471_v8  ;;  %v7846_v8 = vrot.slane %v6448_v6, 2 }
 0x261   :  { %v1929_v19 = vsel %vm483_vm2, %v6482_v56, %v6611_v11  ;;  %v2471_v24 = vsel %vm1095_vm10, %v2435_v53, %v2033_v12  ;;  %v6650_v56 = vld [vmem:[%s7735_s0 + $0x124] sm:$0xff]  ;;  %v8165_v53 = vrot.slane %v6508_v13, 2 }
 0x262   :  { %v3572_v5 = vpack.c.bf16 %v3500_v38, %v3500_v38  ;;  %v4145_v38 = vld [vmem:[#allocation2 + $0x80] sm:$0xff] }
 0x263   :  { %v3170_v39 = vpop.f32.mrf.mxu0 }
 0x264   :  { %1835 = vrot.lane.b32.xlu0 %v5819_v15, %s4252_s10  ;;  %3645 = vst.msk [vmem:[%s7739_s4] sm:$0xf] %vm3644_vm0, %v3572_v5  ;;  %v3353_v62 = vmul.f32 %v6575_v50, %v3170_v39  ;;  %v8164_v5 = vld [vmem:[#allocation101_spill] sm:$0xff] }
 0x265   :  { %1853 = vrot.lane.b32.xlu1 %v5978_v52, %s4252_s10  ;;  %v2149_v20 = vrot.slane %v8164_v5, 3 }
 0x266   :  { %1964 = vrot.lane.b32.xlu2 %v1893_v10, %s4253_s15  ;;  %v2086_v15 = vpop.permute.xlu0 %2085  ;;  %v3429_v1 = vadd.f32 %v6587_v33, %v3353_v62  ;;  %4075 = vmatmul.msk.bf16.gmra.mxu1 %vm3043_vm15, %v4145_v38  ;;  %v2417_v10 = vsel %vm1021_vm8, %v2381_v57, %v1846_v54  ;;  %v2024_v54 = vrot.slane %v6650_v56, 2 }
 0x267   :  { %v2104_v52 = vpop.permute.xlu1 %2103  ;;  %v2453_v39 = vsel %vm1058_vm9, %v2417_v10, %v1975_v58  ;;  %v2507_v38 = vsel %vm1132_vm11, %v2471_v24, %v2086_v15  ;;  %v6659_v15 = vor.u32 %v2149_v20, %v2148_v26 }
 0x268   :  { %v6634_v3 = vpop.permute.xlu2 %2052  ;;  %v3501_v62 = vmax.f32 %v3429_v1, 0.0  ;;  %v2489_v58 = vsel %vm1095_vm10, %v2453_v39, %v6496_v44  ;;  %v2543_v1 = vsel %vm1169_vm12, %v2507_v38, %v6531_v36 }
 0x269   :  { %v2525_v7 = vsel %vm1132_vm11, %v2489_v58, %v2104_v52  ;;  %v6678_v52 = vsel %vm613_vm3, %v8165_v53, %v2024_v54  ;;  %v8167_v58 = vld [vmem:[#allocation25_spill] sm:$0xff] }
 0x26a   :  { %v3573_v0 = vpack.c.bf16 %v3501_v62, %v3501_v62 }
 0x26b   :  { %v3173_v12 = vpop.f32.mrf.mxu0 }
 0x26c   :  { %1982 = vrot.lane.b32.xlu0 %v1929_v19, %s4253_s15  ;;  %3646 = vst.msk [vmem:[%s7739_s4 + $0x4] sm:$0xf] %vm3644_vm0, %v3573_v0  ;;  %v3354_v57 = vmul.f32 %v6575_v50, %v3173_v12  ;;  %v2184_v12 = vrot.slane %v8167_v58, 2 }
 0x26d   :  { %2040 = vrot.lane.b32.xlu1 %v6545_v27, %s4254_s20 }
 0x26e   :  { %2058 = vrot.lane.b32.xlu2 %v6538_v22, %s4254_s20  ;;  %v2233_v44 = vpop.permute.xlu0 %2232  ;;  %v8166_v22 = vrot.slane %v6456_v9, 2  ;;  %v3430_v36 = vadd.f32 %v6587_v33, %v3354_v57  ;;  %v2151_v57 = vsel %vm743_vm4, %v6528_v35, %v6659_v15 }
 0x26f   :  { %v2291_v27 = vpop.permute.xlu1 %2290  ;;  %v2561_v10 = vsel %vm1169_vm12, %v2525_v7, %v2233_v44  ;;  %v8168_v7 = vld [vmem:[#allocation19_spill] sm:$0xff] }
 0x270   :  { %v2579_v19 = vsel %vm1206_vm13, %v2543_v1, %v2291_v27  ;;  %v6685_v26 = vsel %vm613_vm3, %v8166_v22, %v7846_v8  ;;  %v2597_v39 = vsel %vm1206_vm13, %v2561_v10, %v6562_v28  ;;  %v6690_v62 = vpop.permute.xlu2 %2216  ;;  %v2185_v27 = vrot.slane %v8168_v7, 3 }
 0x271   :  { %v2632_v20 = vunpack.c.l.b16 %v2579_v19  ;;  %v2633_v24 = vunpack.c.h.b16 %v2579_v19  ;;  %v2650_v38 = vunpack.c.l.b16 %v2597_v39  ;;  %v2651_v0 = vunpack.c.h.b16 %v2597_v39 }
 0x272   :  { %v3502_v1 = vmax.f32 %v3430_v36, 0.0 }
 0x273   :  { %v2668_v44 = vpack.c.b16 %v2632_v20, %v2632_v20  ;;  %v2669_v53 = vpack.c.b16 %v2633_v24, %v2633_v24  ;;  %v2686_v22 = vpack.c.b16 %v2650_v38, %v2650_v38  ;;  %v2687_v28 = vpack.c.b16 %v2651_v0, %v2651_v0  ;;  %v3175_v10 = vpop.f32.mrf.mxu0  ;;  %v3213_v36 = vpop.f32.mrf.mxu1  ;;  %v4146_v0 = vld [vmem:[#allocation2 + $0x88] sm:$0xff] }
 0x274   :  { %v3574_v19 = vpack.c.bf16 %v3502_v1, %v3502_v1  ;;  %2093 = vrot.lane.b32.xlu0 %v6685_v26, %s4255_s23  ;;  %v2262_v20 = vrot.slane %v6448_v6, 3  ;;  %v6704_v24 = vor.u32 %v2185_v27, %v2184_v12  ;;  %v3355_v35 = vmul.f32 %v6575_v50, %v3175_v10 }
 0x275   :  { %2740 = vst.msk [vmem:[#allocation2 + $0x90] sm:$0xf] %vm1369_vm14, %v2668_v44  ;;  %2111 = vrot.lane.b32.xlu1 %v6678_v52, %s4255_s23  ;;  %v3370_v39 = vmul.f32 %v6575_v50, %v3213_v36  ;;  %v2280_v44 = vrot.slane %v6650_v56, 3  ;;  %v8170_v36 = vrot.slane %v6508_v13, 3 }
 0x276   :  { %2741 = vst.msk [vmem:[#allocation2 + $0x94] sm:$0xf] %vm1369_vm14, %v2669_v53  ;;  %2222 = vrot.lane.b32.xlu2 %v2151_v57, %s4256_s28  ;;  %v1830_v1 = vpop.permute.xlu0 %1829  ;;  %v3431_v12 = vadd.f32 %v6587_v33, %v3355_v35  ;;  %4076 = vmatmul.msk.bf16.gmra.mxu1 %vm3043_vm15, %v4146_v0  ;;  %v8169_v57 = vrot.slane %v6456_v9, 3  ;;  %v1895_v0 = vrot.slane %v8164_v5, 2 }
 0x277   :  { %3647 = vst.msk [vmem:[%s7739_s4 + $0x8] sm:$0xf] %vm3644_vm0, %v3574_v19  ;;  %v1848_v38 = vpop.permute.xlu1 %1847  ;;  %v3446_v27 = vadd.f32 %v6587_v33, %v3370_v39  ;;  %v2281_v35 = vsel %vm873_vm5, %v8170_v36, %v2280_v44  ;;  %v1894_v39 = vrot.slane %v8163_v25, 1 }
 0x278   :  { %2758 = vst.msk [vmem:[#allocation2 + $0xd8] sm:$0xf] %vm1369_vm14, %v2686_v22  ;;  %v6719_v53 = vpop.permute.xlu2 %2310  ;;  %v2263_v19 = vsel %vm873_vm5, %v8169_v57, %v2262_v20  ;;  %v2187_v22 = vsel %vm743_vm4, %v6557_v40, %v6704_v24  ;;  %v3503_v10 = vmax.f32 %v3431_v12, 0.0 }
 0x279   :  { %2759 = vst.msk [vmem:[#allocation2 + $0xdc] sm:$0xf] %vm1369_vm14, %v2687_v28  ;;  %v3518_v28 = vmax.f32 %v3446_v27, 0.0  ;;  %v1768_v27 = vrot.slane %v6650_v56, 1 }
 0x27a   :  { %v3575_v8 = vpack.c.bf16 %v3503_v10, %v3503_v10  ;;  %v6751_v10 = vor.u32 %v1895_v0, %v1894_v39  ;;  %v1931_v39 = vrot.slane %v8168_v7, 2 }
 0x27b   :  { %v3590_v9 = vpack.c.bf16 %v3518_v28, %v3518_v28  ;;  %v3178_v40 = vpop.f32.mrf.mxu0  ;;  %v3215_v12 = vpop.f32.mrf.mxu1 }
 0x27c   :  { %2240 = vrot.lane.b32.xlu0 %v2187_v22, %s4256_s28  ;;  %3648 = vst.msk [vmem:[%s7739_s4 + $0xc] sm:$0xf] %vm3644_vm0, %v3575_v8  ;;  %v3356_v13 = vmul.f32 %v6575_v50, %v3178_v40  ;;  %v3371_v25 = vmul.f32 %v6575_v50, %v3215_v12  ;;  %v1897_v12 = vsel %vm483_vm2, %v6593_v30, %v6751_v10 }
 0x27d   :  { %2298 = vrot.lane.b32.xlu1 %v2263_v19, %s4257_s17  ;;  %v4147_v57 = vld [vmem:[#allocation2 + $0x90] sm:$0xff]  ;;  %3663 = vst.msk [vmem:[%s7739_s4 + $0x48] sm:$0xf] %vm3644_vm0, %v3590_v9  ;;  %v1930_v9 = vrot.slane %v8167_v58, 1  ;;  %v2401_v58 = vsel %vm1021_vm8, %v6371_v63, %v1830_v1  ;;  %v2419_v63 = vsel %vm1021_vm8, %v6493_v37, %v1848_v38 }
 0x27e   :  { %2316 = vrot.lane.b32.xlu2 %v2281_v35, %s4257_s17  ;;  %4077 = vmatmul.msk.bf16.vlgmr.msra.gmra.mxu2 %vm3043_vm15, %v4147_v57  ;;  %v1977_v19 = vpop.permute.xlu0 %1976  ;;  %v3432_v8 = vadd.f32 %v6587_v33, %v3356_v13  ;;  %v3447_v28 = vadd.f32 %v6587_v33, %v3371_v25  ;;  %v8171_v35 = vrot.slane %v5520_v42, 1  ;;  %v6806_v38 = vld [vmem:[%s7735_s0 + $0x12c] sm:$0xff] }
 0x27f   :  { %v2035_v5 = vpop.permute.xlu1 %2034 }
 0x280   :  { %v4156_v22 = vld [vmem:[#allocation2 + $0xd8] sm:$0xff]  ;;  %v6755_v36 = vpop.permute.xlu2 %1960  ;;  %v6763_v57 = vsel %vm353_vm1, %v8171_v35, %v1768_v27  ;;  %v3504_v0 = vmax.f32 %v3432_v8, 0.0  ;;  %v3519_v40 = vmax.f32 %v3447_v28, 0.0  ;;  %v6774_v35 = vor.u32 %v1931_v39, %v1930_v9 }
 0x281   :  { %4086 = vmatmul.msk.bf16.vlgmr.msra.gmra.mxu3 %vm3043_vm15, %v4156_v22  ;;  %v2437_v39 = vsel %vm1058_vm9, %v2401_v58, %v6597_v43  ;;  %v8172_v43 = vld [vmem:[#allocation111_spill] sm:$0xff] }
 0x282   :  { %v3576_v13 = vpack.c.bf16 %v3504_v0, %v3504_v0  ;;  %v3591_v25 = vpack.c.bf16 %v3519_v40, %v3519_v40  ;;  %v2455_v0 = vsel %vm1058_vm9, %v2419_v63, %v1977_v19  ;;  %v1933_v40 = vsel %vm483_vm2, %v6611_v11, %v6774_v35  ;;  %v8173_v19 = vld [vmem:[#allocation104_spill] sm:$0xff] }
 0x283   :  { %v3180_v42 = vpop.f32.mrf.mxu0  ;;  %v3218_v22 = vpop.f32.mrf.mxu1  ;;  %v2153_v58 = vrot.slane %v8173_v19, 3  ;;  %v2491_v11 = vsel %vm1095_vm10, %v2455_v0, %v6634_v3 }
 0x284   :  { %1837 = vrot.lane.b32.xlu0 %v5876_v55, %s4252_s10  ;;  %3649 = vst.msk [vmem:[%s7739_s4 + $0x10] sm:$0xf] %vm3644_vm0, %v3576_v13  ;;  %v3357_v30 = vmul.f32 %v6575_v50, %v3180_v42  ;;  %v3372_v7 = vmul.f32 %v6575_v50, %v3218_v22  ;;  %v2026_v42 = vrot.slane %v6806_v38, 2  ;;  %v2152_v22 = vrot.slane %v8172_v43, 2 }
 0x285   :  { %1855 = vrot.lane.b32.xlu1 %v6763_v57, %s4252_s10  ;;  %3664 = vst.msk [vmem:[%s7739_s4 + $0x4c] sm:$0xf] %vm3644_vm0, %v3591_v25 }
 0x286   :  { %1966 = vrot.lane.b32.xlu2 %v1897_v12, %s4253_s15  ;;  %v2088_v55 = vpop.permute.xlu0 %2087  ;;  %v3433_v1 = vadd.f32 %v6587_v33, %v3357_v30  ;;  %v3448_v28 = vadd.f32 %v6587_v33, %v3372_v7  ;;  %v2473_v12 = vsel %vm1095_vm10, %v2437_v39, %v2035_v5 }
 0x287   :  { %v2106_v8 = vpop.permute.xlu1 %2105  ;;  %v2509_v37 = vsel %vm1132_vm11, %v2473_v12, %v2088_v55  ;;  %v6841_v12 = vor.u32 %v2153_v58, %v2152_v22  ;;  %v8175_v22 = vld [vmem:[#allocation27_spill] sm:$0xff] }
 0x288   :  { %v6793_v9 = vpop.permute.xlu2 %2054  ;;  %v3505_v13 = vmax.f32 %v3433_v1, 0.0  ;;  %v3520_v25 = vmax.f32 %v3448_v28, 0.0  ;;  %v2527_v5 = vsel %vm1132_vm11, %v2491_v11, %v2106_v8  ;;  %v2008_v1 = vrot.slane %v6341_v46, 2 }
 0x289   :  { %v2545_v8 = vsel %vm1169_vm12, %v2509_v37, %v6690_v62  ;;  %v8174_v11 = vrot.slane %v6448_v6, 2  ;;  %v2188_v58 = vrot.slane %v8175_v22, 2 }
 0x28a   :  { %v3577_v30 = vpack.c.bf16 %v3505_v13, %v3505_v13  ;;  %v3592_v7 = vpack.c.bf16 %v3520_v25, %v3520_v25 }
 0x28b   :  { %v3183_v55 = vpop.f32.mrf.mxu0  ;;  %v3220_v63 = vpop.f32.mrf.mxu1 }
 0x28c   :  { %1984 = vrot.lane.b32.xlu0 %v1933_v40, %s4253_s15  ;;  %3650 = vst.msk [vmem:[%s7739_s4 + $0x14] sm:$0xf] %vm3644_vm0, %v3577_v30  ;;  %v3358_v28 = vmul.f32 %v6575_v50, %v3183_v55  ;;  %v3373_v3 = vmul.f32 %v6575_v50, %v3220_v63 }
 0x28d   :  { %2042 = vrot.lane.b32.xlu1 %v6685_v26, %s4254_s20  ;;  %3665 = vst.msk [vmem:[%s7739_s4 + $0x50] sm:$0xf] %vm3644_vm0, %v3592_v7 }
 0x28e   :  { %2060 = vrot.lane.b32.xlu2 %v6678_v52, %s4254_s20  ;;  %v2235_v39 = vpop.permute.xlu0 %2234  ;;  %v6839_v52 = vsel %vm613_vm3, %v2024_v54, %v2026_v42  ;;  %v3434_v62 = vadd.f32 %v6587_v33, %v3358_v28  ;;  %v3449_v13 = vadd.f32 %v6587_v33, %v3373_v3  ;;  %v6854_v54 = vsel %vm613_vm3, %v8174_v11, %v2008_v1 }
 0x28f   :  { %v2293_v26 = vpop.permute.xlu1 %2292  ;;  %v2563_v40 = vsel %vm1169_vm12, %v2527_v5, %v2235_v39  ;;  %v8176_v5 = vld [vmem:[#allocation22_spill] sm:$0xff] }
 0x290   :  { %v2581_v0 = vsel %vm1206_vm13, %v2545_v8, %v2293_v26  ;;  %v6845_v30 = vpop.permute.xlu2 %2218  ;;  %v2599_v7 = vsel %vm1206_vm13, %v2563_v40, %v6719_v53  ;;  %v2189_v55 = vrot.slane %v8176_v5, 3  ;;  %v3506_v63 = vmax.f32 %v3434_v62, 0.0 }
 0x291   :  { %v2634_v25 = vunpack.c.l.b16 %v2581_v0  ;;  %v2635_v37 = vunpack.c.h.b16 %v2581_v0  ;;  %v3521_v28 = vmax.f32 %v3449_v13, 0.0  ;;  %v2652_v8 = vunpack.c.l.b16 %v2599_v7 }
 0x292   :  { %v2653_v39 = vunpack.c.h.b16 %v2599_v7  ;;  %v2155_v53 = vsel %vm743_vm4, %v6659_v15, %v6841_v12  ;;  %v3578_v0 = vpack.c.bf16 %v3506_v63, %v3506_v63  ;;  %v2264_v7 = vrot.slane %v6341_v46, 3 }
 0x293   :  { %v2670_v3 = vpack.c.b16 %v2634_v25, %v2634_v25  ;;  %v2671_v26 = vpack.c.b16 %v2635_v37, %v2635_v37  ;;  %v3593_v40 = vpack.c.bf16 %v3521_v28, %v3521_v28  ;;  %v2688_v62 = vpack.c.b16 %v2652_v8, %v2652_v8  ;;  %v3185_v25 = vpop.f32.mrf.mxu0  ;;  %v3223_v37 = vpop.f32.mrf.mxu1 }
 0x294   :  { %2095 = vrot.lane.b32.xlu0 %v6854_v54, %s4255_s23  ;;  %v2689_v13 = vpack.c.b16 %v2653_v39, %v2653_v39  ;;  %v6868_v11 = vor.u32 %v2189_v55, %v2188_v58  ;;  %3651 = vst.msk [vmem:[%s7739_s4 + $0x18] sm:$0xf] %vm3644_vm0, %v3578_v0  ;;  %v3359_v15 = vmul.f32 %v6575_v50, %v3185_v25  ;;  %v2282_v58 = vrot.slane %v6806_v38, 3 }
 0x295   :  { %2742 = vst.msk [vmem:[#allocation2 + $0x98] sm:$0xf] %vm1369_vm14, %v2670_v3  ;;  %2113 = vrot.lane.b32.xlu1 %v6839_v52, %s4255_s23  ;;  %v3374_v63 = vmul.f32 %v6575_v50, %v3223_v37  ;;  %v2265_v39 = vsel %vm873_vm5, %v2262_v20, %v2264_v7 }
 0x296   :  { %2743 = vst.msk [vmem:[#allocation2 + $0x9c] sm:$0xf] %vm1369_vm14, %v2671_v26  ;;  %2224 = vrot.lane.b32.xlu2 %v2155_v53, %s4256_s28  ;;  %v1832_v3 = vpop.permute.xlu0 %1831  ;;  %v3435_v55 = vadd.f32 %v6587_v33, %v3359_v15  ;;  %v2191_v53 = vsel %vm743_vm4, %v6704_v24, %v6868_v11 }
 0x297   :  { %v1850_v28 = vpop.permute.xlu1 %1849  ;;  %3666 = vst.msk [vmem:[%s7739_s4 + $0x54] sm:$0xf] %vm3644_vm0, %v3593_v40  ;;  %v3450_v26 = vadd.f32 %v6587_v33, %v3374_v63  ;;  %v2403_v56 = vsel %vm1021_vm8, %v6284_v14, %v1832_v3 }
 0x298   :  { %2760 = vst.msk [vmem:[#allocation2 + $0xe0] sm:$0xf] %vm1369_vm14, %v2688_v62  ;;  %v6885_v8 = vpop.permute.xlu2 %2312  ;;  %v3507_v0 = vmax.f32 %v3435_v55, 0.0  ;;  %v2283_v62 = vsel %vm873_vm5, %v2280_v44, %v2282_v58  ;;  %v6916_v55 = vrot.slane %v6806_v38, 1  ;;  %v2421_v14 = vsel %vm1021_vm8, %v6389_v31, %v1850_v28  ;;  %v6973_v31 = vld [vmem:[%s7735_s0 + $0x134] sm:$0xff] }
 0x299   :  { %2761 = vst.msk [vmem:[#allocation2 + $0xe4] sm:$0xf] %vm1369_vm14, %v2689_v13  ;;  %v3522_v40 = vmax.f32 %v3450_v26, 0.0 }
 0x29a   :  { %v3579_v25 = vpack.c.bf16 %v3507_v0, %v3507_v0 }
 0x29b   :  { %v3594_v13 = vpack.c.bf16 %v3522_v40, %v3522_v40  ;;  %v3188_v20 = vpop.f32.mrf.mxu0  ;;  %v3225_v37 = vpop.f32.mrf.mxu1  ;;  %v1934_v40 = vrot.slane %v8175_v22, 1 }
 0x29c   :  { %2242 = vrot.lane.b32.xlu0 %v2191_v53, %s4256_s28  ;;  %3652 = vst.msk [vmem:[%s7739_s4 + $0x1c] sm:$0xf] %vm3644_vm0, %v3579_v25  ;;  %v3360_v24 = vmul.f32 %v6575_v50, %v3188_v20  ;;  %v3375_v15 = vmul.f32 %v6575_v50, %v3225_v37  ;;  %v1898_v25 = vrot.slane %v8172_v43, 1  ;;  %v6931_v37 = vsel %vm353_vm1, %v1768_v27, %v6916_v55 }
 0x29d   :  { %2300 = vrot.lane.b32.xlu1 %v2265_v39, %s4257_s17  ;;  %v4148_v6 = vld [vmem:[#allocation2 + $0x98] sm:$0xff]  ;;  %3667 = vst.msk [vmem:[%s7739_s4 + $0x58] sm:$0xf] %vm3644_vm0, %v3594_v13 }
 0x29e   :  { %2318 = vrot.lane.b32.xlu2 %v2283_v62, %s4257_s17  ;;  %4078 = vmatmul.msk.bf16.gmra.mxu2 %vm3043_vm15, %v4148_v6  ;;  %v1979_v63 = vpop.permute.xlu0 %1978  ;;  %v3436_v26 = vadd.f32 %v6587_v33, %v3360_v24  ;;  %v3451_v39 = vadd.f32 %v6587_v33, %v3375_v15  ;;  %v1935_v62 = vrot.slane %v8176_v5, 2  ;;  %v1899_v6 = vrot.slane %v8173_v19, 2 }
 0x29f   :  { %v2037_v44 = vpop.permute.xlu1 %2036 }
 0x2a0   :  { %v4157_v53 = vld [vmem:[#allocation2 + $0xe0] sm:$0xff]  ;;  %v6920_v0 = vpop.permute.xlu2 %1962  ;;  %v3508_v20 = vmax.f32 %v3436_v26, 0.0  ;;  %v3523_v13 = vmax.f32 %v3451_v39, 0.0  ;;  %v6937_v22 = vor.u32 %v1935_v62, %v1934_v40  ;;  %v6939_v5 = vor.u32 %v1899_v6, %v1898_v25 }
 0x2a1   :  { %4087 = vmatmul.msk.bf16.gmra.mxu3 %vm3043_vm15, %v4157_v53  ;;  %v2439_v40 = vsel %vm1058_vm9, %v2403_v56, %v6755_v36  ;;  %v2457_v62 = vsel %vm1058_vm9, %v2421_v14, %v1979_v63  ;;  %v2010_v63 = vrot.slane %v6625_v2, 2  ;;  %v1942_v56 = vshll.u32 %v6973_v31, 16 }
 0x2a2   :  { %v3580_v24 = vpack.c.bf16 %v3508_v20, %v3508_v20  ;;  %v3595_v15 = vpack.c.bf16 %v3523_v13, %v3523_v13  ;;  %v1937_v25 = vsel %vm483_vm2, %v6774_v35, %v6937_v22  ;;  %v1901_v6 = vsel %vm483_vm2, %v6751_v10, %v6939_v5 }
 0x2a3   :  { %v3190_v43 = vpop.f32.mrf.mxu0  ;;  %v3228_v19 = vpop.f32.mrf.mxu1  ;;  %v2475_v28 = vsel %vm1095_vm10, %v2439_v40, %v2037_v44  ;;  %v2493_v10 = vsel %vm1095_vm10, %v2457_v62, %v6793_v9  ;;  %v6996_v14 = vrot.slane %v6973_v31, 2 }
 0x2a4   :  { %1804 = vrot.lane.b32.xlu0 %v6763_v57, %s4251_s6  ;;  %3653 = vst.msk [vmem:[%s7739_s4 + $0x20] sm:$0xf] %vm3644_vm0, %v3580_v24  ;;  %v3361_v27 = vmul.f32 %v6575_v50, %v3190_v43  ;;  %v1939_v24 = vshrl.u32 %v6973_v31, 16 }
 0x2a5   :  { %1839 = vrot.lane.b32.xlu1 %v5873_v18, %s4252_s10  ;;  %v3376_v18 = vmul.f32 %v6575_v50, %v3228_v19  ;;  %3668 = vst.msk [vmem:[%s7739_s4 + $0x5c] sm:$0xf] %vm3644_vm0, %v3595_v15 }
 0x2a6   :  { %1857 = vrot.lane.b32.xlu2 %v6931_v37, %s4252_s10  ;;  %v2090_v26 = vpop.permute.xlu0 %2089  ;;  %v3437_v3 = vadd.f32 %v6587_v33, %v3361_v27 }
 0x2a7   :  { %v2108_v57 = vpop.permute.xlu1 %2107  ;;  %v3452_v39 = vadd.f32 %v6587_v33, %v3376_v18  ;;  %v2511_v36 = vsel %vm1132_vm11, %v2475_v28, %v2090_v26 }
 0x2a8   :  { %v6959_v53 = vpop.permute.xlu2 %2056  ;;  %v3509_v20 = vmax.f32 %v3437_v3, 0.0  ;;  %v2529_v43 = vsel %vm1132_vm11, %v2493_v10, %v2108_v57  ;;  %v2547_v57 = vsel %vm1169_vm12, %v2511_v36, %v6845_v30  ;;  %v2192_v30 = vrot.slane %v1939_v24, 2  ;;  %v8177_v36 = vld [vmem:[#allocation121_spill] sm:$0xff] }
 0x2a9   :  { %v3524_v13 = vmax.f32 %v3452_v39, 0.0 }
 0x2aa   :  { %v3581_v35 = vpack.c.bf16 %v3509_v20, %v3509_v20 }
 0x2ab   :  { %v3596_v15 = vpack.c.bf16 %v3524_v13, %v3524_v13  ;;  %v3193_v44 = vpop.f32.mrf.mxu0  ;;  %v3230_v19 = vpop.f32.mrf.mxu1  ;;  %v2193_v13 = vrot.slane %v1942_v56, 3 }
 0x2ac   :  { %1968 = vrot.lane.b32.xlu0 %v1901_v6, %s4253_s15  ;;  %3654 = vst.msk [vmem:[%s7739_s4 + $0x24] sm:$0xf] %vm3644_vm0, %v3581_v35  ;;  %v3362_v27 = vmul.f32 %v6575_v50, %v3193_v44  ;;  %v3377_v18 = vmul.f32 %v6575_v50, %v3230_v19  ;;  %v8178_v35 = vld [vmem:[#allocation112_spill] sm:$0xff] }
 0x2ad   :  { %1986 = vrot.lane.b32.xlu1 %v1937_v25, %s4253_s15  ;;  %3669 = vst.msk [vmem:[%s7739_s4 + $0x60] sm:$0xf] %vm3644_vm0, %v3596_v15  ;;  %v2157_v15 = vrot.slane %v8178_v35, 3 }
 0x2ae   :  { %2044 = vrot.lane.b32.xlu2 %v6854_v54, %s4254_s20  ;;  %v2237_v26 = vpop.permute.xlu0 %2236  ;;  %v7009_v54 = vsel %vm613_vm3, %v2008_v1, %v2010_v63  ;;  %v3438_v40 = vadd.f32 %v6587_v33, %v3362_v27  ;;  %v3453_v62 = vadd.f32 %v6587_v33, %v3377_v18  ;;  %v2156_v1 = vrot.slane %v8177_v36, 2 }
 0x2af   :  { %v2295_v9 = vpop.permute.xlu1 %2294  ;;  %v2565_v39 = vsel %vm1169_vm12, %v2529_v43, %v2237_v26 }
 0x2b0   :  { %v2583_v3 = vsel %vm1206_vm13, %v2547_v57, %v2295_v9  ;;  %v7015_v28 = vpop.permute.xlu2 %2220  ;;  %v2601_v20 = vsel %vm1206_vm13, %v2565_v39, %v6885_v8  ;;  %v3510_v10 = vmax.f32 %v3438_v40, 0.0  ;;  %v3525_v43 = vmax.f32 %v3453_v62, 0.0 }
 0x2b1   :  { %v2636_v25 = vunpack.c.l.b16 %v2583_v3  ;;  %v2637_v6 = vunpack.c.h.b16 %v2583_v3  ;;  %v2654_v27 = vunpack.c.l.b16 %v2601_v20  ;;  %v2655_v18 = vunpack.c.h.b16 %v2601_v20 }
 0x2b2   :  { %v7027_v9 = vsel %vm613_vm3, %v2026_v42, %v6996_v14  ;;  %v3582_v8 = vpack.c.bf16 %v3510_v10, %v3510_v10  ;;  %v3597_v57 = vpack.c.bf16 %v3525_v43, %v3525_v43  ;;  %v7035_v62 = vor.u32 %v2193_v13, %v2192_v30 }
 0x2b3   :  { %v2672_v44 = vpack.c.b16 %v2636_v25, %v2636_v25  ;;  %v2673_v19 = vpack.c.b16 %v2637_v6, %v2637_v6  ;;  %v2690_v26 = vpack.c.b16 %v2654_v27, %v2654_v27  ;;  %v2691_v3 = vpack.c.b16 %v2655_v18, %v2655_v18  ;;  %v3195_v39 = vpop.f32.mrf.mxu0  ;;  %v3233_v40 = vpop.f32.mrf.mxu1 }
 0x2b4   :  { %2062 = vrot.lane.b32.xlu0 %v6839_v52, %s4254_s20  ;;  %v7037_v42 = vor.u32 %v2157_v15, %v2156_v1  ;;  %3655 = vst.msk [vmem:[%s7739_s4 + $0x28] sm:$0xf] %vm3644_vm0, %v3582_v8  ;;  %v3363_v25 = vmul.f32 %v6575_v50, %v3195_v39  ;;  %v3378_v6 = vmul.f32 %v6575_v50, %v3233_v40  ;;  %v2266_v30 = vrot.slane %v6625_v2, 3 }
 0x2b5   :  { %2744 = vst.msk [vmem:[#allocation2 + $0xa0] sm:$0xf] %vm1369_vm14, %v2672_v44  ;;  %2097 = vrot.lane.b32.xlu1 %v7009_v54, %s4255_s23  ;;  %v2195_v10 = vsel %vm743_vm4, %v6868_v11, %v7035_v62 }
 0x2b6   :  { %2745 = vst.msk [vmem:[#allocation2 + $0xa4] sm:$0xf] %vm1369_vm14, %v2673_v19  ;;  %2115 = vrot.lane.b32.xlu2 %v7027_v9, %s4255_s23  ;;  %v1834_v20 = vpop.permute.xlu0 %1833  ;;  %v3439_v13 = vadd.f32 %v6587_v33, %v3363_v25  ;;  %v3454_v1 = vadd.f32 %v6587_v33, %v3378_v6  ;;  %v2159_v43 = vsel %vm743_vm4, %v6841_v12, %v7037_v42 }
 0x2b7   :  { %v1852_v52 = vpop.permute.xlu1 %1851  ;;  %3670 = vst.msk [vmem:[%s7739_s4 + $0x64] sm:$0xf] %vm3644_vm0, %v3597_v57  ;;  %v2267_v27 = vsel %vm873_vm5, %v2264_v7, %v2266_v30 }
 0x2b8   :  { %2762 = vst.msk [vmem:[#allocation2 + $0xe8] sm:$0xf] %vm1369_vm14, %v2690_v26  ;;  %v7055_v15 = vpop.permute.xlu2 %2314  ;;  %v3511_v44 = vmax.f32 %v3439_v13, 0.0  ;;  %v3526_v19 = vmax.f32 %v3454_v1, 0.0 }
 0x2b9   :  { %2763 = vst.msk [vmem:[#allocation2 + $0xec] sm:$0xf] %vm1369_vm14, %v2691_v3  ;;  %v2284_v3 = vrot.slane %v6973_v31, 3 }
 0x2ba   :  { %v3583_v18 = vpack.c.bf16 %v3511_v44, %v3511_v44  ;;  %v3598_v8 = vpack.c.bf16 %v3526_v19, %v3526_v19 }
 0x2bb   :  { %v3198_v11 = vpop.f32.mrf.mxu0  ;;  %v3235_v26 = vpop.f32.mrf.mxu1  ;;  %v2285_v1 = vsel %vm873_vm5, %v2282_v58, %v2284_v3 }
 0x2bc   :  { %2226 = vrot.lane.b32.xlu0 %v2159_v43, %s4256_s28  ;;  %3656 = vst.msk [vmem:[%s7739_s4 + $0x2c] sm:$0xf] %vm3644_vm0, %v3583_v18  ;;  %v3364_v46 = vmul.f32 %v6575_v50, %v3198_v11  ;;  %v3379_v12 = vmul.f32 %v6575_v50, %v3235_v26  ;;  %v1903_v43 = vrot.slane %v8178_v35, 2  ;;  %v1944_v18 = vrot.slane %v1942_v56, 2 }
 0x2bd   :  { %2244 = vrot.lane.b32.xlu1 %v2195_v10, %s4256_s28  ;;  %v4149_v57 = vld [vmem:[#allocation2 + $0xa0] sm:$0xff]  ;;  %3671 = vst.msk [vmem:[%s7739_s4 + $0x68] sm:$0xf] %vm3644_vm0, %v3598_v8  ;;  %v1902_v10 = vrot.slane %v8177_v36, 1  ;;  %v1823_v35 = vrot.slane %v6973_v31, 1  ;;  %v2405_v11 = vsel %vm1021_vm8, %v6418_v45, %v1834_v20  ;;  %v2423_v20 = vsel %vm1021_vm8, %v6526_v47, %v1852_v52 }
 0x2be   :  { %2302 = vrot.lane.b32.xlu2 %v2267_v27, %s4257_s17  ;;  %4079 = vmatmul.msk.bf16.gmra.mxu2 %vm3043_vm15, %v4149_v57  ;;  %v1981_v39 = vpop.permute.xlu0 %1980  ;;  %v3440_v40 = vadd.f32 %v6587_v33, %v3364_v46  ;;  %v3455_v25 = vadd.f32 %v6587_v33, %v3379_v12  ;;  %v1941_v27 = vrot.slane %v1939_v24, 1 }
 0x2bf   :  { %v2039_v7 = vpop.permute.xlu1 %2038  ;;  %v7103_v36 = vor.u32 %v1903_v43, %v1902_v10  ;;  %v1824_v47 = vsel %vm353_vm1, %v6916_v55, %v1823_v35 }
 0x2c0   :  { %v4158_v6 = vld [vmem:[#allocation2 + $0xe8] sm:$0xff]  ;;  %v7086_v13 = vpop.permute.xlu2 %1964  ;;  %v3512_v44 = vmax.f32 %v3440_v40, 0.0  ;;  %v3527_v19 = vmax.f32 %v3455_v25, 0.0  ;;  %v7120_v45 = vor.u32 %v1944_v18, %v1941_v27  ;;  %v2459_v25 = vsel %vm1058_vm9, %v2423_v20, %v1981_v39  ;;  %v7146_v39 = vld [vmem:[%s7735_s0 + $0x13c] sm:$0xff] }
 0x2c1   :  { %4088 = vmatmul.msk.bf16.gmra.mxu3 %vm3043_vm15, %v4158_v6  ;;  %v1905_v6 = vsel %vm483_vm2, %v6939_v5, %v7103_v36  ;;  %v1909_v31 = vsel %vm483_vm2, %v7103_v36, %v6024_v51 }
 0x2c2   :  { %v3584_v8 = vpack.c.bf16 %v3512_v44, %v3512_v44  ;;  %v3599_v57 = vpack.c.bf16 %v3527_v19, %v3527_v19  ;;  %v2495_v19 = vsel %vm1095_vm10, %v2459_v25, %v6959_v53 }
 0x2c3   :  { %v3200_v38 = vpop.f32.mrf.mxu0  ;;  %v3238_v58 = vpop.f32.mrf.mxu1 }
 0x2c4   :  { %2320 = vrot.lane.b32.xlu0 %v2285_v1, %s4257_s17  ;;  %3657 = vst.msk [vmem:[%s7739_s4 + $0x30] sm:$0xf] %vm3644_vm0, %v3584_v8  ;;  %v3365_v24 = vmul.f32 %v6575_v50, %v3200_v38 }
 0x2c5   :  { %1806 = vrot.lane.b32.xlu1 %v6931_v37, %s4251_s6  ;;  %v3380_v37 = vmul.f32 %v6575_v50, %v3238_v58  ;;  %3672 = vst.msk [vmem:[%s7739_s4 + $0x6c] sm:$0xf] %vm3644_vm0, %v3599_v57 }
 0x2c6   :  { %1841 = vrot.lane.b32.xlu2 %v5887_v60, %s4252_s10  ;;  %v2092_v26 = vpop.permute.xlu0 %2091  ;;  %v3441_v46 = vadd.f32 %v6587_v33, %v3365_v24  ;;  %v2441_v60 = vsel %vm1058_vm9, %v2405_v11, %v6920_v0  ;;  %v1946_v0 = vsel %vm483_vm2, %v6937_v22, %v7120_v45  ;;  %v2197_v24 = vshrl.u32 %v7146_v39, 16 }
 0x2c7   :  { %v2110_v56 = vpop.permute.xlu1 %2109  ;;  %v3456_v12 = vadd.f32 %v6587_v33, %v3380_v37  ;;  %v2477_v52 = vsel %vm1095_vm10, %v2441_v60, %v2039_v7  ;;  %v2200_v37 = vshll.u32 %v7146_v39, 16  ;;  %v8179_v60 = vrot.slane %v8100_v32, 2 }
 0x2c8   :  { %v7126_v40 = vpop.permute.xlu2 %2058  ;;  %v3513_v1 = vmax.f32 %v3441_v46, 0.0  ;;  %v2513_v43 = vsel %vm1132_vm11, %v2477_v52, %v2092_v26  ;;  %v2531_v7 = vsel %vm1132_vm11, %v2495_v19, %v2110_v56 }
 0x2c9   :  { %v3528_v10 = vmax.f32 %v3456_v12, 0.0  ;;  %v2549_v57 = vsel %vm1169_vm12, %v2513_v43, %v7015_v28  ;;  %v7181_v25 = vsel %vm613_vm3, %v2010_v63, %v8179_v60  ;;  %v2202_v19 = vrot.slane %v2200_v37, 3 }
 0x2ca   :  { %v3585_v5 = vpack.c.bf16 %v3513_v1, %v3513_v1 }
 0x2cb   :  { %v3600_v44 = vpack.c.bf16 %v3528_v10, %v3528_v10  ;;  %v3203_v27 = vpop.f32.mrf.mxu0  ;;  %v3240_v18 = vpop.f32.mrf.mxu1 }
 0x2cc   :  { %1859 = vrot.lane.b32.xlu0 %v1824_v47, %s4252_s10  ;;  %3658 = vst.msk [vmem:[%s7739_s4 + $0x34] sm:$0xf] %vm3644_vm0, %v3585_v5  ;;  %v3366_v22 = vmul.f32 %v6575_v50, %v3203_v27  ;;  %v3381_v8 = vmul.f32 %v6575_v50, %v3240_v18  ;;  %v2161_v47 = vrot.slane %v8115_v17, 3  ;;  %v2081_v18 = vrot.slane %v7146_v39, 2 }
 0x2cd   :  { %1970 = vrot.lane.b32.xlu1 %v1905_v6, %s4253_s15  ;;  %3673 = vst.msk [vmem:[%s7739_s4 + $0x70] sm:$0xf] %vm3644_vm0, %v3600_v44  ;;  %v2160_v6 = vrot.slane %v8114_v61, 2  ;;  %v2199_v44 = vrot.slane %v2197_v24, 2 }
 0x2ce   :  { %1988 = vrot.lane.b32.xlu2 %v1946_v0, %s4253_s15  ;;  %v2239_v38 = vpop.permute.xlu0 %2238  ;;  %v3442_v56 = vadd.f32 %v6587_v33, %v3366_v22  ;;  %v3457_v26 = vadd.f32 %v6587_v33, %v3381_v8  ;;  %v2082_v37 = vsel %vm613_vm3, %v6996_v14, %v2081_v18 }
 0x2cf   :  { %v2297_v53 = vpop.permute.xlu1 %2296  ;;  %v2567_v11 = vsel %vm1169_vm12, %v2531_v7, %v2239_v38  ;;  %v7191_v27 = vor.u32 %v2161_v47, %v2160_v6 }
 0x2d0   :  { %v2585_v58 = vsel %vm1206_vm13, %v2549_v57, %v2297_v53  ;;  %v7172_v46 = vpop.permute.xlu2 %2222  ;;  %v2603_v12 = vsel %vm1206_vm13, %v2567_v11, %v7055_v15  ;;  %v3514_v52 = vmax.f32 %v3442_v56, 0.0  ;;  %v3529_v1 = vmax.f32 %v3457_v26, 0.0  ;;  %v3831_v11 = vld [vmem:[%s7735_s0 + $0x13c] sm:$0x3] }
 0x2d1   :  { %v2638_v20 = vunpack.c.l.b16 %v2585_v58  ;;  %v2639_v28 = vunpack.c.h.b16 %v2585_v58  ;;  %v2656_v0 = vunpack.c.l.b16 %v2603_v12  ;;  %v2657_v5 = vunpack.c.h.b16 %v2603_v12 }
 0x2d2   :  { %v3586_v15 = vpack.c.bf16 %v3514_v52, %v3514_v52  ;;  %v3601_v7 = vpack.c.bf16 %v3529_v1, %v3529_v1  ;;  %v7208_v53 = vor.u32 %v2202_v19, %v2199_v44  ;;  %v2163_v24 = vsel %vm743_vm4, %v7037_v42, %v7191_v27 }
 0x2d3   :  { %v2674_v10 = vpack.c.b16 %v2638_v20, %v2638_v20  ;;  %v2675_v43 = vpack.c.b16 %v2639_v28, %v2639_v28  ;;  %v2692_v32 = vpack.c.b16 %v2656_v0, %v2656_v0  ;;  %v2693_v61 = vpack.c.b16 %v2657_v5, %v2657_v5  ;;  %v3205_v17 = vpop.f32.mrf.mxu0  ;;  %v3243_v63 = vpop.f32.mrf.mxu1  ;;  %v3830_v20 = vld [vmem:[%s7735_s0 + $0x13c] sm:$0x1] }
 0x2d4   :  { %2046 = vrot.lane.b32.xlu0 %v7009_v54, %s4254_s20  ;;  %3659 = vst.msk [vmem:[%s7739_s4 + $0x38] sm:$0xf] %vm3644_vm0, %v3586_v15  ;;  %v3382_v22 = vmul.f32 %v6575_v50, %v3243_v63  ;;  %v2204_v28 = vsel %vm743_vm4, %v7035_v62, %v7208_v53  ;;  %v1864_v12 = vunpack.c.l.b16 %v3831_v11  ;;  %v2286_v1 = vrot.slane %v7146_v39, 3  ;;  %v8180_v15 = vld [vmem:[#allocation23_spill] sm:$0xff] }
 0x2d5   :  { %2746 = vst.msk [vmem:[#allocation2 + $0xa8] sm:$0xf] %vm1369_vm14, %v2674_v10  ;;  %2064 = vrot.lane.b32.xlu1 %v7027_v9, %s4254_s20  ;;  %v3367_v9 = vmul.f32 %v6575_v50, %v3205_v17  ;;  %v7238_v10 = vld [vmem:[%s7735_s0 + $0xf4] sm:$0xff]  ;;  %v1817_v62 = vunpack.c.l.b16 %v3830_v20 }
 0x2d6   :  { %2747 = vst.msk [vmem:[#allocation2 + $0xac] sm:$0xf] %vm1369_vm14, %v2675_v43  ;;  %2099 = vrot.lane.b32.xlu2 %v7181_v25, %s4255_s23  ;;  %v1836_v8 = vpop.permute.xlu0 %1835  ;;  %v3458_v38 = vadd.f32 %v6587_v33, %v3382_v22  ;;  %v2268_v43 = vrot.slane %v7238_v10, 3  ;;  %v2287_v22 = vsel %vm873_vm5, %v2284_v3, %v2286_v1 }
 0x2d7   :  { %v7202_v54 = vpop.permute.xlu1 %1853  ;;  %3674 = vst.msk [vmem:[%s7739_s4 + $0x74] sm:$0xf] %vm3644_vm0, %v3601_v7  ;;  %v3443_v57 = vadd.f32 %v6587_v33, %v3367_v9  ;;  %v1772_v7 = vrot.slane %v8180_v15, 1 }
 0x2d8   :  { %2764 = vst.msk [vmem:[#allocation2 + $0xf0] sm:$0xf] %vm1369_vm14, %v2692_v32  ;;  %v7213_v58 = vpop.permute.xlu2 %2316  ;;  %v3530_v26 = vmax.f32 %v3458_v38, 0.0  ;;  %v7254_v32 = vpack.c.b16 %v1864_v12, %v1864_v12 }
 0x2d9   :  { %2765 = vst.msk [vmem:[#allocation2 + $0xf4] sm:$0xf] %vm1369_vm14, %v2693_v61  ;;  %v3515_v56 = vmax.f32 %v3443_v57, 0.0  ;;  %v1820_v57 = vpack.c.b16 %v1817_v62, %v1817_v62 }
 0x2da   :  { %v3602_v6 = vpack.c.bf16 %v3530_v26, %v3530_v26 }
 0x2db   :  { %v3587_v60 = vpack.c.bf16 %v3515_v56, %v3515_v56  ;;  %v3208_v47 = vpop.f32.mrf.mxu0  ;;  %v3245_v52 = vpop.f32.mrf.mxu1  ;;  %v1951_v56 = vshll.u32 %v7254_v32, 16  ;;  %v1825_v20 = vrot.slane %v1820_v57, 1 }
 0x2dc   :  { %2117 = vrot.lane.b32.xlu0 %v2082_v37, %s4255_s23  ;;  %v3368_v0 = vmul.f32 %v6575_v50, %v3208_v47  ;;  %v3383_v5 = vmul.f32 %v6575_v50, %v3245_v52  ;;  %3675 = vst.msk [vmem:[%s7739_s4 + $0x78] sm:$0xf] %vm3644_vm0, %v3602_v6  ;;  %v7260_v50 = vld [vmem:[%s7738_s3] ss:$0 sm:$0xff]  ;;  %v1948_v37 = vshrl.u32 %v7254_v32, 16 }
 0x2dd   :  { %2228 = vrot.lane.b32.xlu1 %v2163_v24, %s4256_s28  ;;  %v4150_v42 = vld [vmem:[#allocation2 + $0xa8] sm:$0xff]  ;;  %3660 = vst.msk [vmem:[%s7739_s4 + $0x3c] sm:$0xf] %vm3644_vm0, %v3587_v60  ;;  %v1773_v24 = vsel %vm353_vm1, %v6916_v55, %v1772_v7  ;;  %v7291_v55 = vld [vmem:[%s7737_s2] ss:$0 sm:$0xff]  ;;  %v1826_v15 = vsel %vm353_vm1, %v1823_v35, %v1825_v20 }
 0x2de   :  { %2246 = vrot.lane.b32.xlu2 %v2204_v28, %s4256_s28  ;;  %4080 = vmatmul.msk.bf16.gmra.mxu2 %vm3043_vm15, %v4150_v42  ;;  %v1983_v19 = vpop.permute.xlu0 %1982  ;;  %v3444_v61 = vadd.f32 %v6587_v33, %v3368_v0  ;;  %v3459_v17 = vadd.f32 %v7260_v50, %v3383_v5  ;;  %v2269_v33 = vsel %vm873_vm5, %v2266_v30, %v2268_v43 }
 0x2df   :  { %v2041_v44 = vpop.permute.xlu1 %2040  ;;  %v2407_v28 = vsel %vm1021_vm8, %v6415_v49, %v1836_v8  ;;  %v1950_v49 = vrot.slane %v1948_v37, 1  ;;  %v1953_v8 = vrot.slane %v1951_v56, 2  ;;  %v2425_v0 = vsel %vm1021_vm8, %v6523_v59, %v7202_v54  ;;  %v3837_v59 = vld [vmem:[%s7735_s0 + $0x144] sm:$0x7] }
 0x2e0   :  { %v4159_v63 = vld [vmem:[#allocation2 + $0xf0] sm:$0xff]  ;;  %v7263_v9 = vpop.permute.xlu2 %1966  ;;  %v3516_v38 = vmax.f32 %v3444_v61, 0.0  ;;  %v3531_v11 = vmax.f32 %v3459_v17, 0.0  ;;  %v2443_v5 = vsel %vm1058_vm9, %v2407_v28, %v7086_v13  ;;  %v2461_v61 = vsel %vm1058_vm9, %v2425_v0, %v1983_v19 }
 0x2e1   :  { %4089 = vmatmul.msk.bf16.gmra.mxu3 %vm3043_vm15, %v4159_v63  ;;  %v2479_v7 = vsel %vm1095_vm10, %v2443_v5, %v2041_v44  ;;  %v1954_v54 = vor.u32 %v1953_v8, %v1950_v49  ;;  %v2497_v19 = vsel %vm1095_vm10, %v2461_v61, %v7126_v40 }
 0x2e2   :  { %v3588_v26 = vpack.c.bf16 %v3516_v38, %v3516_v38  ;;  %v3603_v3 = vpack.c.bf16 %v3531_v11, %v3531_v11  ;;  %v2122_v38 = vunpack.c.l.b16 %v3837_v59 }
 0x2e3   :  { %v3210_v2 = vpop.f32.mrf.mxu0  ;;  %v3248_v30 = vpop.f32.mrf.mxu1  ;;  %v1955_v56 = vsel %vm483_vm2, %v7120_v45, %v1954_v54  ;;  %v2167_v54 = vsel %vm743_vm4, %v7191_v27, %v6154_v29 }
 0x2e4   :  { %2304 = vrot.lane.b32.xlu0 %v2269_v33, %s4257_s17  ;;  %3661 = vst.msk [vmem:[%s7739_s4 + $0x40] sm:$0xf] %vm3644_vm0, %v3588_v26  ;;  %v3369_v12 = vmul.f32 %v7291_v55, %v3210_v2  ;;  %v3384_v60 = vmul.f32 %v7291_v55, %v3248_v30  ;;  %v2030_v26 = vrot.slane %v7254_v32, 2 }
 0x2e5   :  { %2322 = vrot.lane.b32.xlu1 %v2287_v22, %s4257_s17  ;;  %3676 = vst.msk [vmem:[%s7739_s4 + $0x7c] sm:$0xf] %vm3644_vm0, %v3603_v3  ;;  %v3836_v22 = vld [vmem:[%s7735_s0 + $0x144] sm:$0x3] }
 0x2e6   :  { %1808 = vrot.lane.b32.xlu2 %v1773_v24, %s4251_s6  ;;  %v2094_v42 = vpop.permute.xlu0 %2093  ;;  %v3445_v47 = vadd.f32 %v7260_v50, %v3369_v12  ;;  %v3460_v52 = vadd.f32 %v7260_v50, %v3384_v60  ;;  %v2075_v57 = vunpack.c.l.b16 %v3836_v22  ;;  %v2031_v45 = vsel %vm613_vm3, %v6996_v14, %v2030_v26 }
 0x2e7   :  { %v2112_v6 = vpop.permute.xlu1 %2111  ;;  %v2515_v13 = vsel %vm1132_vm11, %v2479_v7, %v2094_v42 }
 0x2e8   :  { %v7302_v62 = vpop.permute.xlu2 %2060  ;;  %v3517_v17 = vmax.f32 %v3445_v47, 0.0  ;;  %v3532_v63 = vmax.f32 %v3460_v52, 0.0  ;;  %v2533_v51 = vsel %vm1132_vm11, %v2497_v19, %v2112_v6  ;;  %v2551_v24 = vsel %vm1169_vm12, %v2515_v13, %v7172_v46 }
 0x2e9   :  { %v2078_v60 = vpack.c.b16 %v2075_v57, %v2075_v57  ;;  %v2123_v6 = vpack.c.b16 %v2122_v38, %v2122_v38 }
 0x2ea   :  { %v3589_v35 = vpack.c.bf16 %v3517_v17, %v3517_v17  ;;  %v3604_v44 = vpack.c.bf16 %v3532_v63, %v3532_v63 }
 0x2eb   :  { %v3250_v33 = vpop.f32.mrf.mxu1  ;;  %v2083_v0 = vrot.slane %v2078_v60, 2  ;;  %v2206_v5 = vshrl.u32 %v2123_v6, 16  ;;  %v2288_v57 = vrot.slane %v2123_v6, 3 }
 0x2ec   :  { %1843 = vrot.lane.b32.xlu0 %v5930_v21, %s4252_s10  ;;  %3662 = vst.msk [vmem:[%s7739_s4 + $0x44] sm:$0xf] %vm3644_vm0, %v3589_v35  ;;  %v3385_v36 = vmul.f32 %v7291_v55, %v3250_v33 }
 0x2ed   :  { %1861 = vrot.lane.b32.xlu1 %v1826_v15, %s4252_s10  ;;  %3677 = vst.msk [vmem:[%s7739_s4 + $0x80] sm:$0xf] %vm3644_vm0, %v3604_v44  ;;  %v2209_v15 = vshll.u32 %v2123_v6, 16  ;;  %v2084_v63 = vsel %vm613_vm3, %v2081_v18, %v2083_v0  ;;  %v2208_v22 = vrot.slane %v2206_v5, 2 }
 0x2ee   :  { %v2241_v21 = vpop.permute.xlu0 %2240  ;;  %1972 = vrot.lane.b32.xlu2 %v1909_v31, %s4253_s15  ;;  %v3461_v3 = vadd.f32 %v7260_v50, %v3385_v36  ;;  %v8181_v36 = vrot.slane %v8101_v34, 3 }
 0x2ef   :  { %v2299_v11 = vpop.permute.xlu1 %2298  ;;  %v2569_v37 = vsel %vm1169_vm12, %v2533_v51, %v2241_v21  ;;  %v2211_v59 = vrot.slane %v2209_v15, 3 }
 0x2f0   :  { %v2587_v40 = vsel %vm1206_vm13, %v2551_v24, %v2299_v11  ;;  %v2605_v30 = vsel %vm1206_vm13, %v2569_v37, %v7213_v58  ;;  %v7350_v20 = vpop.permute.xlu2 %2224  ;;  %v3533_v42 = vmax.f32 %v3461_v3, 0.0  ;;  %v2271_v11 = vsel %vm873_vm5, %v2268_v43, %v8181_v36 }
 0x2f1   :  { %v2640_v46 = vunpack.c.l.b16 %v2587_v40  ;;  %v2641_v2 = vunpack.c.h.b16 %v2587_v40  ;;  %v2658_v28 = vunpack.c.l.b16 %v2605_v30  ;;  %v2659_v12 = vunpack.c.h.b16 %v2605_v30 }
 0x2f2   :  { %v3605_v32 = vpack.c.bf16 %v3533_v42, %v3533_v42  ;;  %v2212_v19 = vor.u32 %v2211_v59, %v2208_v22  ;;  %v2289_v37 = vsel %vm873_vm5, %v2286_v1, %v2288_v57 }
 0x2f3   :  { %v2676_v49 = vpack.c.b16 %v2640_v46, %v2640_v46  ;;  %v2677_v8 = vpack.c.b16 %v2641_v2, %v2641_v2  ;;  %v2694_v47 = vpack.c.b16 %v2658_v28, %v2658_v28  ;;  %v2695_v52 = vpack.c.b16 %v2659_v12, %v2659_v12  ;;  %v3253_v58 = vpop.f32.mrf.mxu1 }
 0x2f4   :  { %1990 = vrot.lane.b32.xlu0 %v1955_v56, %s4253_s15  ;;  %3678 = vst.msk [vmem:[%s7739_s4 + $0x84] sm:$0xf] %vm3644_vm0, %v3605_v32  ;;  %v3386_v14 = vmul.f32 %v7291_v55, %v3253_v58  ;;  %v2213_v24 = vsel %vm743_vm4, %v7208_v53, %v2212_v19 }
 0x2f5   :  { %2748 = vst.msk [vmem:[#allocation2 + $0xb0] sm:$0xf] %vm1369_vm14, %v2676_v49  ;;  %2048 = vrot.lane.b32.xlu1 %v7181_v25, %s4254_s20 }
 0x2f6   :  { %2749 = vst.msk [vmem:[#allocation2 + $0xb4] sm:$0xf] %vm1369_vm14, %v2677_v8  ;;  %v1838_v61 = vpop.permute.xlu0 %1837  ;;  %2066 = vrot.lane.b32.xlu2 %v2031_v45, %s4254_s20  ;;  %v3462_v25 = vadd.f32 %v7260_v50, %v3386_v14 }
 0x2f7   :  { %v1856_v7 = vpop.permute.xlu1 %1855  ;;  %2766 = vst.msk [vmem:[#allocation2 + $0xf8] sm:$0xf] %vm1369_vm14, %v2694_v47  ;;  %v2409_v53 = vsel %vm1021_vm8, %v6320_v48, %v1838_v61 }
 0x2f8   :  { %2767 = vst.msk [vmem:[#allocation2 + $0xfc] sm:$0xf] %vm1369_vm14, %v2695_v52  ;;  %v7368_v17 = vpop.permute.xlu2 %2318  ;;  %v3534_v13 = vmax.f32 %v3462_v25, 0.0  ;;  %v2427_v2 = vsel %vm1021_vm8, %v6426_v4, %v1856_v7  ;;  %v2445_v30 = vsel %vm1058_vm9, %v2409_v53, %v7263_v9 }
 0x2fa   :  { %v3606_v31 = vpack.c.bf16 %v3534_v13, %v3534_v13 }
 0x2fb   :  { %v3255_v44 = vpop.f32.mrf.mxu1 }
 0x2fc   :  { %2101 = vrot.lane.b32.xlu0 %v6064_v41, %s4255_s23  ;;  %3679 = vst.msk [vmem:[%s7739_s4 + $0x88] sm:$0xf] %vm3644_vm0, %v3606_v31  ;;  %v3387_v18 = vmul.f32 %v7291_v55, %v3255_v44 }
 0x2fd   :  { %2119 = vrot.lane.b32.xlu1 %v2084_v63, %s4255_s23  ;;  %v4151_v35 = vld [vmem:[#allocation2 + $0xb0] sm:$0xff] }
 0x2fe   :  { %4081 = vmatmul.msk.bf16.gmra.mxu2 %vm3043_vm15, %v4151_v35  ;;  %v1985_v29 = vpop.permute.xlu0 %1984  ;;  %2230 = vrot.lane.b32.xlu2 %v2167_v54, %s4256_s28  ;;  %v3463_v41 = vadd.f32 %v7260_v50, %v3387_v18 }
 0x2ff   :  { %v2043_v33 = vpop.permute.xlu1 %2042  ;;  %v4160_v27 = vld [vmem:[#allocation2 + $0xf8] sm:$0xff]  ;;  %v2463_v6 = vsel %vm1058_vm9, %v2427_v2, %v1985_v29 }
 0x300   :  { %v7387_v38 = vpop.permute.xlu2 %1857  ;;  %4090 = vmatmul.msk.bf16.gmra.mxu3 %vm3043_vm15, %v4160_v27  ;;  %v3535_v21 = vmax.f32 %v3463_v41, 0.0  ;;  %v2481_v60 = vsel %vm1095_vm10, %v2445_v30, %v2043_v33  ;;  %v2499_v47 = vsel %vm1095_vm10, %v2463_v6, %v7302_v62 }
 0x301   :  { %v3258_v51 = vpop.f32.mrf.mxu2 }
 0x302   :  { %v3388_v40 = vmul.f32 %v7291_v55, %v3258_v51  ;;  %v3607_v56 = vpack.c.bf16 %v3535_v21, %v3535_v21 }
 0x304   :  { %v3464_v26 = vadd.f32 %v7260_v50, %v3388_v40  ;;  %v3303_v3 = vpop.f32.mrf.mxu3  ;;  %2248 = vrot.lane.b32.xlu0 %v2213_v24, %s4256_s28  ;;  %3680 = vst.msk [vmem:[%s7739_s4 + $0x8c] sm:$0xf] %vm3644_vm0, %v3607_v56 }
 0x305   :  { %2306 = vrot.lane.b32.xlu1 %v2271_v11, %s4257_s17  ;;  %v3406_v34 = vmul.f32 %v7291_v55, %v3303_v3 }
 0x306   :  { %v3536_v39 = vmax.f32 %v3464_v26, 0.0  ;;  %v2096_v10 = vpop.permute.xlu0 %2095  ;;  %2324 = vrot.lane.b32.xlu2 %v2289_v37, %s4257_s17 }
 0x307   :  { %v2114_v1 = vpop.permute.xlu1 %2113  ;;  %v3482_v43 = vadd.f32 %v7260_v50, %v3406_v34  ;;  %v2517_v4 = vsel %vm1132_vm11, %v2481_v60, %v2096_v10 }
 0x308   :  { %v3608_v46 = vpack.c.bf16 %v3536_v39, %v3536_v39  ;;  %v7417_v28 = vpop.permute.xlu2 %2044  ;;  %v2535_v32 = vsel %vm1132_vm11, %v2499_v47, %v2114_v1  ;;  %v2553_v0 = vsel %vm1169_vm12, %v2517_v4, %v7350_v20 }
 0x309   :  { %v3554_v48 = vmax.f32 %v3482_v43, 0.0  ;;  %v3260_v12 = vpop.f32.mrf.mxu2 }
 0x30a   :  { %3681 = vst.msk [vmem:[%s7739_s4 + $0x90] sm:$0xf] %vm3644_vm0, %v3608_v46  ;;  %v3389_v42 = vmul.f32 %v7291_v55, %v3260_v12  ;;  %v4247_v46 = vld [vmem:[%s7735_s0 + $0x11c] sm:$0xff] }
 0x30b   :  { %v3626_v49 = vpack.c.bf16 %v3554_v48, %v3554_v48  ;;  %v2357_v2 = vsel %vm947_vm6, %v4247_v46, %v6336_v23 }
 0x30c   :  { %v3465_v9 = vadd.f32 %v7260_v50, %v3389_v42  ;;  %v3305_v8 = vpop.f32.mrf.mxu3 }
 0x30d   :  { %3699 = vst.msk [vmem:[%s7739_s4 + $0xd8] sm:$0xf] %vm3644_vm0, %v3626_v49  ;;  %v3407_v45 = vmul.f32 %v7291_v55, %v3305_v8 }
 0x30e   :  { %v3537_v52 = vmax.f32 %v3465_v9, 0.0  ;;  %v2243_v5 = vpop.permute.xlu0 %2242 }
 0x30f   :  { %v2301_v58 = vpop.permute.xlu1 %2300  ;;  %v3483_v15 = vadd.f32 %v7260_v50, %v3407_v45  ;;  %v2571_v7 = vsel %vm1169_vm12, %v2535_v32, %v2243_v5 }
 0x310   :  { %v2589_v14 = vsel %vm1206_vm13, %v2553_v0, %v2301_v58  ;;  %v3609_v61 = vpack.c.bf16 %v3537_v52, %v3537_v52  ;;  %v2607_v62 = vsel %vm1206_vm13, %v2571_v7, %v7368_v17  ;;  %v2116_v44 = vpop.permute.xlu2 %2115 }
 0x311   :  { %v2642_v25 = vunpack.c.l.b16 %v2589_v14  ;;  %v2643_v63 = vunpack.c.h.b16 %v2589_v14  ;;  %v3555_v22 = vmax.f32 %v3483_v15, 0.0  ;;  %v2660_v59 = vunpack.c.l.b16 %v2607_v62 }
 0x312   :  { %v2661_v13 = vunpack.c.h.b16 %v2607_v62  ;;  %3682 = vst.msk [vmem:[%s7739_s4 + $0x94] sm:$0xf] %vm3644_vm0, %v3609_v61 }
 0x313   :  { %v2678_v20 = vpack.c.b16 %v2642_v25, %v2642_v25  ;;  %v2679_v54 = vpack.c.b16 %v2643_v63, %v2643_v63  ;;  %v3627_v31 = vpack.c.bf16 %v3555_v22, %v3555_v22  ;;  %v2696_v35 = vpack.c.b16 %v2660_v59, %v2660_v59 }
 0x314   :  { %v2697_v19 = vpack.c.b16 %v2661_v13, %v2661_v13 }
 0x315   :  { %2750 = vst.msk [vmem:[#allocation2 + $0xb8] sm:$0xf] %vm1369_vm14, %v2678_v20 }
 0x316   :  { %3700 = vst.msk [vmem:[%s7739_s4 + $0xdc] sm:$0xf] %vm3644_vm0, %v3627_v31  ;;  %v1805_v18 = vpop.permute.xlu0 %1804 }
 0x317   :  { %2751 = vst.msk [vmem:[#allocation2 + $0xbc] sm:$0xf] %vm1369_vm14, %v2679_v54  ;;  %v1840_v17 = vpop.permute.xlu1 %1839  ;;  %v2393_v48 = vsel %vm984_vm7, %v2357_v2, %v1805_v18 }
 0x318   :  { %2768 = vst.msk [vmem:[#allocation2 + $0x100] sm:$0xf] %vm1369_vm14, %v2696_v35  ;;  %v2303_v33 = vpop.permute.xlu2 %2302  ;;  %v2411_v53 = vsel %vm1021_vm8, %v6466_v16, %v1840_v17  ;;  %v2429_v8 = vsel %vm1021_vm8, %v2393_v48, %v7387_v38 }
 0x319   :  { %2769 = vst.msk [vmem:[#allocation2 + $0x104] sm:$0xf] %vm1369_vm14, %v2697_v19 }
 0x31e   :  { %v4152_v29 = vld [vmem:[#allocation2 + $0xb8] sm:$0xff]  ;;  %v1969_v57 = vpop.permute.xlu0 %1968 }
 0x31f   :  { %v1987_v27 = vpop.permute.xlu1 %1986  ;;  %4082 = vmatmul.msk.bf16.gmra.mxu2 %vm3043_vm15, %v4152_v29  ;;  %v2447_v1 = vsel %vm1058_vm9, %v2411_v53, %v1969_v57 }
 0x320   :  { %v4161_v41 = vld [vmem:[#allocation2 + $0x100] sm:$0xff]  ;;  %v7460_v26 = vpop.permute.xlu2 %1841  ;;  %v2483_v12 = vsel %vm1095_vm10, %v2447_v1, %v7417_v28  ;;  %v2465_v32 = vsel %vm1058_vm9, %v2429_v8, %v1987_v27 }
 0x321   :  { %4091 = vmatmul.msk.bf16.gmra.mxu3 %vm3043_vm15, %v4161_v41  ;;  %v3263_v51 = vpop.f32.mrf.mxu2 }
 0x322   :  { %v3390_v36 = vmul.f32 %v7291_v55, %v3263_v51 }
 0x324   :  { %v3466_v11 = vadd.f32 %v7260_v50, %v3390_v36  ;;  %v3308_v24 = vpop.f32.mrf.mxu3 }
 0x325   :  { %v3408_v40 = vmul.f32 %v7291_v55, %v3308_v24 }
 0x326   :  { %v3538_v21 = vmax.f32 %v3466_v11, 0.0  ;;  %v2063_v56 = vpop.permute.xlu0 %2062 }
 0x327   :  { %v2098_v37 = vpop.permute.xlu1 %2097  ;;  %v3484_v34 = vadd.f32 %v7260_v50, %v3408_v40  ;;  %v2501_v5 = vsel %vm1095_vm10, %v2465_v32, %v2063_v56 }
 0x328   :  { %v3610_v3 = vpack.c.bf16 %v3538_v21, %v3538_v21  ;;  %v2519_v6 = vsel %vm1132_vm11, %v2483_v12, %v2098_v37  ;;  %v7492_v52 = vpop.permute.xlu2 %1988  ;;  %v2537_v61 = vsel %vm1132_vm11, %v2501_v5, %v2116_v44 }
 0x329   :  { %v3265_v39 = vpop.f32.mrf.mxu2  ;;  %v3556_v10 = vmax.f32 %v3484_v34, 0.0  ;;  %v8182_v34 = vld [vmem:[#allocation30_spill] sm:$0xff] }
 0x32a   :  { %3683 = vst.msk [vmem:[%s7739_s4 + $0x98] sm:$0xf] %vm3644_vm0, %v3610_v3  ;;  %v3391_v43 = vmul.f32 %v7291_v55, %v3265_v39  ;;  %v4248_v3 = vld [vmem:[%s7735_s0 + $0x124] sm:$0xff] }
 0x32b   :  { %v3628_v30 = vpack.c.bf16 %v3556_v10, %v3556_v10  ;;  %v2359_v53 = vsel %vm947_vm6, %v4248_v3, %v8182_v34  ;;  %v8184_v3 = vld [vmem:[#allocation31_spill] sm:$0xff] }
 0x32c   :  { %v3467_v16 = vadd.f32 %v7260_v50, %v3391_v43  ;;  %v3310_v60 = vpop.f32.mrf.mxu3 }
 0x32d   :  { %3701 = vst.msk [vmem:[%s7739_s4 + $0xe0] sm:$0xf] %vm3644_vm0, %v3628_v30  ;;  %v3409_v49 = vmul.f32 %v7291_v55, %v3310_v60  ;;  %v8183_v60 = vld [vmem:[#allocation32_spill] sm:$0xff] }
 0x32e   :  { %v3539_v42 = vmax.f32 %v3467_v16, 0.0  ;;  %v2227_v4 = vpop.permute.xlu0 %2226 }
 0x32f   :  { %v2245_v23 = vpop.permute.xlu1 %2244  ;;  %v2555_v9 = vsel %vm1169_vm12, %v2519_v6, %v2227_v4  ;;  %v3485_v28 = vadd.f32 %v7260_v50, %v3409_v49  ;;  %v2413_v6 = vsel %vm1021_vm8, %v8183_v60, %v7460_v26 }
 0x330   :  { %v3611_v47 = vpack.c.bf16 %v3539_v42, %v3539_v42  ;;  %v2591_v45 = vsel %vm1206_vm13, %v2555_v9, %v2303_v33  ;;  %v2573_v25 = vsel %vm1169_vm12, %v2537_v61, %v2245_v23  ;;  %v2100_v31 = vpop.permute.xlu2 %2099 }
 0x331   :  { %v2644_v58 = vunpack.c.l.b16 %v2591_v45  ;;  %v2645_v0 = vunpack.c.h.b16 %v2591_v45  ;;  %v3557_v15 = vmax.f32 %v3485_v28, 0.0 }
 0x332   :  { %3684 = vst.msk [vmem:[%s7739_s4 + $0x9c] sm:$0xf] %vm3644_vm0, %v3611_v47 }
 0x333   :  { %v2680_v38 = vpack.c.b16 %v2644_v58, %v2644_v58  ;;  %v2681_v14 = vpack.c.b16 %v2645_v0, %v2645_v0  ;;  %v3629_v7 = vpack.c.bf16 %v3557_v15, %v3557_v15 }
 0x335   :  { %2752 = vst.msk [vmem:[#allocation2 + $0xc0] sm:$0xf] %vm1369_vm14, %v2680_v38 }
 0x336   :  { %3702 = vst.msk [vmem:[%s7739_s4 + $0xe4] sm:$0xf] %vm3644_vm0, %v3629_v7  ;;  %v2321_v62 = vpop.permute.xlu0 %2320 }
 0x337   :  { %v1807_v63 = vpop.permute.xlu1 %1806  ;;  %2753 = vst.msk [vmem:[#allocation2 + $0xc4] sm:$0xf] %vm1369_vm14, %v2681_v14  ;;  %v2609_v22 = vsel %vm1206_vm13, %v2573_v25, %v2321_v62 }
 0x338   :  { %v2662_v59 = vunpack.c.l.b16 %v2609_v22  ;;  %v2663_v13 = vunpack.c.h.b16 %v2609_v22  ;;  %v2247_v27 = vpop.permute.xlu2 %2246  ;;  %v2395_v10 = vsel %vm984_vm7, %v2359_v53, %v1807_v63 }
 0x33a   :  { %v2698_v20 = vpack.c.b16 %v2662_v59, %v2662_v59  ;;  %v2699_v54 = vpack.c.b16 %v2663_v13, %v2663_v13 }
 0x33c   :  { %2770 = vst.msk [vmem:[#allocation2 + $0x108] sm:$0xf] %vm1369_vm14, %v2698_v20 }
 0x33d   :  { %2771 = vst.msk [vmem:[#allocation2 + $0x10c] sm:$0xf] %vm1369_vm14, %v2699_v54 }
 0x33e   :  { %v1860_v44 = vpop.permute.xlu0 %1859  ;;  %v4153_v19 = vld [vmem:[#allocation2 + $0xc0] sm:$0xff] }
 0x33f   :  { %v1971_v35 = vpop.permute.xlu1 %1970  ;;  %4083 = vmatmul.msk.bf16.gmra.mxu2 %vm3043_vm15, %v4153_v19  ;;  %v2431_v46 = vsel %vm1021_vm8, %v2395_v10, %v1860_v44 }
 0x340   :  { %v7534_v12 = vpop.permute.xlu2 %1808  ;;  %v2449_v23 = vsel %vm1058_vm9, %v2413_v6, %v1971_v35  ;;  %v2467_v4 = vsel %vm1058_vm9, %v2431_v46, %v7492_v52  ;;  %v8185_v46 = vld [vmem:[#allocation29_spill] sm:$0xff] }
 0x341   :  { %v3268_v17 = vpop.f32.mrf.mxu2 }
 0x342   :  { %v3392_v18 = vmul.f32 %v7291_v55, %v3268_v17 }
 0x344   :  { %v3468_v33 = vadd.f32 %v7260_v50, %v3392_v18  ;;  %v4162_v29 = vld [vmem:[#allocation2 + $0x108] sm:$0xff]  ;;  %v3313_v57 = vpop.f32.mrf.mxu3 }
 0x345   :  { %v3410_v51 = vmul.f32 %v7291_v55, %v3313_v57  ;;  %4092 = vmatmul.msk.bf16.gmra.mxu3 %vm3043_vm15, %v4162_v29 }
 0x346   :  { %v3540_v41 = vmax.f32 %v3468_v33, 0.0  ;;  %v2047_v11 = vpop.permute.xlu0 %2046 }
 0x347   :  { %v2065_v36 = vpop.permute.xlu1 %2064  ;;  %v3486_v21 = vadd.f32 %v7260_v50, %v3410_v51  ;;  %v2485_v8 = vsel %vm1095_vm10, %v2449_v23, %v2047_v11 }
 0x348   :  { %v3612_v24 = vpack.c.bf16 %v3540_v41, %v3540_v41  ;;  %v2503_v9 = vsel %vm1095_vm10, %v2467_v4, %v2065_v36  ;;  %v2521_v45 = vsel %vm1132_vm11, %v2485_v8, %v2100_v31  ;;  %v1973_v38 = vpop.permute.xlu2 %1972 }
 0x349   :  { %v3270_v40 = vpop.f32.mrf.mxu2  ;;  %v3558_v37 = vmax.f32 %v3486_v21, 0.0 }
 0x34a   :  { %3685 = vst.msk [vmem:[%s7739_s4 + $0xa0] sm:$0xf] %vm3644_vm0, %v3612_v24  ;;  %v3393_v56 = vmul.f32 %v7291_v55, %v3270_v40 }
 0x34b   :  { %v3630_v39 = vpack.c.bf16 %v3558_v37, %v3558_v37 }
 0x34c   :  { %v3469_v1 = vadd.f32 %v7260_v50, %v3393_v56  ;;  %v3315_v43 = vpop.f32.mrf.mxu3 }
 0x34d   :  { %3703 = vst.msk [vmem:[%s7739_s4 + $0xe8] sm:$0xf] %vm3644_vm0, %v3630_v39  ;;  %v3411_v30 = vmul.f32 %v7291_v55, %v3315_v43  ;;  %v4249_v43 = vld [vmem:[%s7735_s0 + $0x12c] sm:$0xff] }
 0x34e   :  { %v3541_v2 = vmax.f32 %v3469_v1, 0.0  ;;  %v2118_v48 = vpop.permute.xlu0 %2117 }
 0x34f   :  { %v2229_v16 = vpop.permute.xlu1 %2228  ;;  %v3487_v49 = vadd.f32 %v7260_v50, %v3411_v30  ;;  %v2539_v26 = vsel %vm1132_vm11, %v2503_v9, %v2118_v48 }
 0x350   :  { %v3613_v42 = vpack.c.bf16 %v3541_v2, %v3541_v2  ;;  %v2557_v32 = vsel %vm1169_vm12, %v2521_v45, %v2229_v16  ;;  %v2575_v58 = vsel %vm1169_vm12, %v2539_v26, %v2247_v27  ;;  %v2067_v31 = vpop.permute.xlu2 %2066  ;;  %v2361_v2 = vsel %vm947_vm6, %v4249_v43, %v8185_v46 }
 0x351   :  { %v3559_v47 = vmax.f32 %v3487_v49, 0.0  ;;  %v2397_v30 = vsel %vm984_vm7, %v2361_v2, %v7534_v12 }
 0x352   :  { %3686 = vst.msk [vmem:[%s7739_s4 + $0xa4] sm:$0xf] %vm3644_vm0, %v3613_v42 }
 0x353   :  { %v3631_v28 = vpack.c.bf16 %v3559_v47, %v3559_v47 }
 0x355   :  { %3704 = vst.msk [vmem:[%s7739_s4 + $0xec] sm:$0xf] %vm3644_vm0, %v3631_v28 }
 0x356   :  { %v2305_v0 = vpop.permute.xlu0 %2304 }
 0x357   :  { %v2323_v52 = vpop.permute.xlu1 %2322  ;;  %v2593_v15 = vsel %vm1206_vm13, %v2557_v32, %v2305_v0 }
 0x358   :  { %v2611_v5 = vsel %vm1206_vm13, %v2575_v58, %v2323_v52  ;;  %v2646_v61 = vunpack.c.l.b16 %v2593_v15  ;;  %v2647_v25 = vunpack.c.h.b16 %v2593_v15  ;;  %v2231_v21 = vpop.permute.xlu2 %2230 }
 0x359   :  { %v2664_v14 = vunpack.c.l.b16 %v2611_v5  ;;  %v2665_v7 = vunpack.c.h.b16 %v2611_v5 }
 0x35a   :  { %v2682_v22 = vpack.c.b16 %v2646_v61, %v2646_v61  ;;  %v2683_v59 = vpack.c.b16 %v2647_v25, %v2647_v25 }
 0x35b   :  { %v2700_v63 = vpack.c.b16 %v2664_v14, %v2664_v14  ;;  %v2701_v62 = vpack.c.b16 %v2665_v7, %v2665_v7 }
 0x35c   :  { %2754 = vst.msk [vmem:[#allocation2 + $0xc8] sm:$0xf] %vm1369_vm14, %v2682_v22 }
 0x35d   :  { %2772 = vst.msk [vmem:[#allocation2 + $0x110] sm:$0xf] %vm1369_vm14, %v2700_v63 }
 0x35e   :  { %2773 = vst.msk [vmem:[#allocation2 + $0x114] sm:$0xf] %vm1369_vm14, %v2701_v62  ;;  %v1844_v20 = vpop.permute.xlu0 %1843 }
 0x35f   :  { %v1862_v13 = vpop.permute.xlu1 %1861  ;;  %2755 = vst.msk [vmem:[#allocation2 + $0xcc] sm:$0xf] %vm1369_vm14, %v2683_v59  ;;  %v2415_v34 = vsel %vm1021_vm8, %v8184_v3, %v1844_v20 }
 0x360   :  { %v2433_v60 = vsel %vm1021_vm8, %v2397_v30, %v1862_v13  ;;  %v2451_v6 = vsel %vm1058_vm9, %v2415_v34, %v1973_v38  ;;  %v2325_v8 = vpop.permute.xlu2 %2324 }
 0x361   :  { %v3273_v54 = vpop.f32.mrf.mxu2 }
 0x362   :  { %v3394_v35 = vmul.f32 %v7291_v55, %v3273_v54 }
 0x364   :  { %v3470_v44 = vadd.f32 %v7260_v50, %v3394_v35  ;;  %v3318_v17 = vpop.f32.mrf.mxu3 }
 0x365   :  { %v4163_v19 = vld [vmem:[#allocation2 + $0x110] sm:$0xff]  ;;  %v3412_v33 = vmul.f32 %v7291_v55, %v3318_v17 }
 0x366   :  { %v3542_v18 = vmax.f32 %v3470_v44, 0.0  ;;  %v4154_v27 = vld [vmem:[#allocation2 + $0xc8] sm:$0xff]  ;;  %4093 = vmatmul.msk.bf16.gmra.mxu3 %vm3043_vm15, %v4163_v19  ;;  %v1991_v57 = vpop.permute.xlu0 %1990 }
 0x367   :  { %v2049_v29 = vpop.permute.xlu1 %2048  ;;  %v3488_v51 = vadd.f32 %v7260_v50, %v3412_v33  ;;  %4084 = vmatmul.msk.bf16.gmra.mxu2 %vm3043_vm15, %v4154_v27  ;;  %v2469_v49 = vsel %vm1058_vm9, %v2433_v60, %v1991_v57 }
 0x368   :  { %v3614_v41 = vpack.c.bf16 %v3542_v18, %v3542_v18  ;;  %v2487_v42 = vsel %vm1095_vm10, %v2451_v6, %v2049_v29  ;;  %v2505_v9 = vsel %vm1095_vm10, %v2469_v49, %v2067_v31 }
 0x369   :  { %v3275_v36 = vpop.f32.mrf.mxu2  ;;  %v3560_v11 = vmax.f32 %v3488_v51, 0.0 }
 0x36a   :  { %3687 = vst.msk [vmem:[%s7739_s4 + $0xa8] sm:$0xf] %vm3644_vm0, %v3614_v41  ;;  %v3395_v24 = vmul.f32 %v7291_v55, %v3275_v36 }
 0x36b   :  { %v3632_v40 = vpack.c.bf16 %v3560_v11, %v3560_v11 }
 0x36c   :  { %v3471_v37 = vadd.f32 %v7260_v50, %v3395_v24  ;;  %v3320_v56 = vpop.f32.mrf.mxu3 }
 0x36d   :  { %3705 = vst.msk [vmem:[%s7739_s4 + $0xf0] sm:$0xf] %vm3644_vm0, %v3632_v40  ;;  %v3413_v39 = vmul.f32 %v7291_v55, %v3320_v56 }
 0x36e   :  { %v3543_v53 = vmax.f32 %v3471_v37, 0.0  ;;  %v2102_v10 = vpop.permute.xlu0 %2101 }
 0x36f   :  { %v2120_v1 = vpop.permute.xlu1 %2119  ;;  %v3489_v48 = vadd.f32 %v7260_v50, %v3413_v39  ;;  %v2523_v4 = vsel %vm1132_vm11, %v2487_v42, %v2102_v10 }
 0x370   :  { %v3615_v16 = vpack.c.bf16 %v3543_v53, %v3543_v53  ;;  %v2541_v47 = vsel %vm1132_vm11, %v2505_v9, %v2120_v1  ;;  %v2559_v26 = vsel %vm1169_vm12, %v2523_v4, %v2231_v21 }
 0x371   :  { %v3561_v23 = vmax.f32 %v3489_v48, 0.0 }
 0x372   :  { %3688 = vst.msk [vmem:[%s7739_s4 + $0xac] sm:$0xf] %vm3644_vm0, %v3615_v16 }
 0x373   :  { %v3633_v12 = vpack.c.bf16 %v3561_v23, %v3561_v23 }
 0x375   :  { %3706 = vst.msk [vmem:[%s7739_s4 + $0xf4] sm:$0xf] %vm3644_vm0, %v3633_v12 }
 0x376   :  { %v2249_v45 = vpop.permute.xlu0 %2248 }
 0x377   :  { %v2307_v28 = vpop.permute.xlu1 %2306  ;;  %v2577_v52 = vsel %vm1169_vm12, %v2541_v47, %v2249_v45 }
 0x378   :  { %v2595_v32 = vsel %vm1206_vm13, %v2559_v26, %v2307_v28  ;;  %v2613_v5 = vsel %vm1206_vm13, %v2577_v52, %v2325_v8 }
 0x379   :  { %v2648_v58 = vunpack.c.l.b16 %v2595_v32  ;;  %v2649_v0 = vunpack.c.h.b16 %v2595_v32  ;;  %v2666_v15 = vunpack.c.l.b16 %v2613_v5  ;;  %v2667_v38 = vunpack.c.h.b16 %v2613_v5 }
 0x37b   :  { %v2684_v14 = vpack.c.b16 %v2648_v58, %v2648_v58  ;;  %v2685_v7 = vpack.c.b16 %v2649_v0, %v2649_v0  ;;  %v2702_v61 = vpack.c.b16 %v2666_v15, %v2666_v15  ;;  %v2703_v25 = vpack.c.b16 %v2667_v38, %v2667_v38 }
 0x37d   :  { %2756 = vst.msk [vmem:[#allocation2 + $0xd0] sm:$0xf] %vm1369_vm14, %v2684_v14 }
 0x37e   :  { %2757 = vst.msk [vmem:[#allocation2 + $0xd4] sm:$0xf] %vm1369_vm14, %v2685_v7 }
 0x37f   :  { %2774 = vst.msk [vmem:[#allocation2 + $0x118] sm:$0xf] %vm1369_vm14, %v2702_v61 }
 0x380   :  { %2775 = vst.msk [vmem:[#allocation2 + $0x11c] sm:$0xf] %vm1369_vm14, %v2703_v25 }
 0x381   :  { %v3278_v63 = vpop.f32.mrf.mxu2 }
 0x382   :  { %v3396_v62 = vmul.f32 %v7291_v55, %v3278_v63 }
 0x383   :  { %v3323_v59 = vpop.f32.mrf.mxu3 }
 0x384   :  { %v3472_v22 = vadd.f32 %v7260_v50, %v3396_v62  ;;  %v3414_v20 = vmul.f32 %v7291_v55, %v3323_v59 }
 0x385   :  { %v4155_v13 = vld [vmem:[#allocation2 + $0xd0] sm:$0xff] }
 0x386   :  { %v3544_v54 = vmax.f32 %v3472_v22, 0.0  ;;  %4085 = vmatmul.msk.bf16.gmra.mxu2 %vm3043_vm15, %v4155_v13  ;;  %v3490_v35 = vadd.f32 %v7260_v50, %v3414_v20 }
 0x387   :  { %v4164_v31 = vld [vmem:[#allocation2 + $0x118] sm:$0xff] }
 0x388   :  { %v3616_v44 = vpack.c.bf16 %v3544_v54, %v3544_v54  ;;  %4094 = vmatmul.msk.bf16.gmra.mxu3 %vm3043_vm15, %v4164_v31  ;;  %v3562_v19 = vmax.f32 %v3490_v35, 0.0 }
 0x389   :  { %v3280_v17 = vpop.f32.mrf.mxu2 }
 0x38a   :  { %3689 = vst.msk [vmem:[%s7739_s4 + $0xb0] sm:$0xf] %vm3644_vm0, %v3616_v44  ;;  %v3397_v18 = vmul.f32 %v7291_v55, %v3280_v17  ;;  %v3634_v33 = vpack.c.bf16 %v3562_v19, %v3562_v19 }
 0x38b   :  { %v3325_v27 = vpop.f32.mrf.mxu3 }
 0x38c   :  { %v3473_v29 = vadd.f32 %v7260_v50, %v3397_v18  ;;  %3707 = vst.msk [vmem:[%s7739_s4 + $0xf8] sm:$0xf] %vm3644_vm0, %v3634_v33  ;;  %v3415_v57 = vmul.f32 %v7291_v55, %v3325_v27 }
 0x38e   :  { %v3545_v41 = vmax.f32 %v3473_v29, 0.0  ;;  %v3491_v51 = vadd.f32 %v7260_v50, %v3415_v57 }
 0x390   :  { %v3617_v36 = vpack.c.bf16 %v3545_v41, %v3545_v41  ;;  %v3563_v11 = vmax.f32 %v3491_v51, 0.0 }
 0x392   :  { %3690 = vst.msk [vmem:[%s7739_s4 + $0xb4] sm:$0xf] %vm3644_vm0, %v3617_v36  ;;  %v3635_v24 = vpack.c.bf16 %v3563_v11, %v3563_v11 }
 0x394   :  { %3708 = vst.msk [vmem:[%s7739_s4 + $0xfc] sm:$0xf] %vm3644_vm0, %v3635_v24 }
 0x3a2   :  { %v3283_v21 = vpop.f32.mrf.mxu2 }
 0x3a3   :  { %v3398_v40 = vmul.f32 %v7291_v55, %v3283_v21 }
 0x3a4   :  { %v3328_v37 = vpop.f32.mrf.mxu3 }
 0x3a5   :  { %v3474_v56 = vadd.f32 %v7260_v50, %v3398_v40  ;;  %v3416_v3 = vmul.f32 %v7291_v55, %v3328_v37 }
 0x3a7   :  { %v3546_v34 = vmax.f32 %v3474_v56, 0.0  ;;  %v3492_v53 = vadd.f32 %v7260_v50, %v3416_v3 }
 0x3a9   :  { %v3618_v39 = vpack.c.bf16 %v3546_v34, %v3546_v34  ;;  %v3564_v1 = vmax.f32 %v3492_v53, 0.0 }
 0x3aa   :  { %v3285_v10 = vpop.f32.mrf.mxu2 }
 0x3ab   :  { %3691 = vst.msk [vmem:[%s7739_s4 + $0xb8] sm:$0xf] %vm3644_vm0, %v3618_v39  ;;  %v3636_v43 = vpack.c.bf16 %v3564_v1, %v3564_v1  ;;  %v3399_v46 = vmul.f32 %v7291_v55, %v3285_v10 }
 0x3ac   :  { %v3330_v2 = vpop.f32.mrf.mxu3 }
 0x3ad   :  { %3709 = vst.msk [vmem:[%s7739_s4 + $0x100] sm:$0xf] %vm3644_vm0, %v3636_v43  ;;  %v3475_v30 = vadd.f32 %v7260_v50, %v3399_v46  ;;  %v3417_v16 = vmul.f32 %v7291_v55, %v3330_v2 }
 0x3af   :  { %v3547_v48 = vmax.f32 %v3475_v30, 0.0  ;;  %v3493_v60 = vadd.f32 %v7260_v50, %v3417_v16 }
 0x3b1   :  { %v3619_v6 = vpack.c.bf16 %v3547_v48, %v3547_v48  ;;  %v3565_v42 = vmax.f32 %v3493_v60, 0.0 }
 0x3b3   :  { %3692 = vst.msk [vmem:[%s7739_s4 + $0xbc] sm:$0xf] %vm3644_vm0, %v3619_v6  ;;  %v3637_v49 = vpack.c.bf16 %v3565_v42, %v3565_v42 }
 0x3b5   :  { %3710 = vst.msk [vmem:[%s7739_s4 + $0x104] sm:$0xf] %vm3644_vm0, %v3637_v49 }
 0x3c2   :  { %v3288_v23 = vpop.f32.mrf.mxu2 }
 0x3c3   :  { %v3400_v4 = vmul.f32 %v7291_v55, %v3288_v23 }
 0x3c5   :  { %v3476_v12 = vadd.f32 %v7260_v50, %v3400_v4 }
 0x3c7   :  { %v3548_v9 = vmax.f32 %v3476_v12, 0.0 }
 0x3c8   :  { %v3333_v8 = vpop.f32.mrf.mxu3 }
 0x3c9   :  { %v3620_v47 = vpack.c.bf16 %v3548_v9, %v3548_v9  ;;  %v3418_v26 = vmul.f32 %v7291_v55, %v3333_v8 }
 0x3ca   :  { %v3290_v28 = vpop.f32.mrf.mxu2 }
 0x3cb   :  { %3693 = vst.msk [vmem:[%s7739_s4 + $0xc0] sm:$0xf] %vm3644_vm0, %v3620_v47  ;;  %v3494_v45 = vadd.f32 %v7260_v50, %v3418_v26  ;;  %v3401_v32 = vmul.f32 %v7291_v55, %v3290_v28 }
 0x3cd   :  { %v3566_v52 = vmax.f32 %v3494_v45, 0.0  ;;  %v3477_v58 = vadd.f32 %v7260_v50, %v3401_v32 }
 0x3cf   :  { %v3638_v0 = vpack.c.bf16 %v3566_v52, %v3566_v52  ;;  %v3549_v5 = vmax.f32 %v3477_v58, 0.0 }
 0x3d0   :  { %v3335_v15 = vpop.f32.mrf.mxu3 }
 0x3d1   :  { %3711 = vst.msk [vmem:[%s7739_s4 + $0x108] sm:$0xf] %vm3644_vm0, %v3638_v0  ;;  %v3621_v38 = vpack.c.bf16 %v3549_v5, %v3549_v5  ;;  %v3419_v14 = vmul.f32 %v7291_v55, %v3335_v15 }
 0x3d3   :  { %3694 = vst.msk [vmem:[%s7739_s4 + $0xc4] sm:$0xf] %vm3644_vm0, %v3621_v38  ;;  %v3495_v7 = vadd.f32 %v7260_v50, %v3419_v14 }
 0x3d5   :  { %v3567_v61 = vmax.f32 %v3495_v7, 0.0 }
 0x3d7   :  { %v3639_v25 = vpack.c.bf16 %v3567_v61, %v3567_v61 }
 0x3d9   :  { %3712 = vst.msk [vmem:[%s7739_s4 + $0x10c] sm:$0xf] %vm3644_vm0, %v3639_v25 }
 0x3e9   :  { %v3338_v63 = vpop.f32.mrf.mxu3 }
 0x3ea   :  { %v3420_v62 = vmul.f32 %v7291_v55, %v3338_v63  ;;  %v3293_v22 = vpop.f32.mrf.mxu2 }
 0x3eb   :  { %v3402_v59 = vmul.f32 %v7291_v55, %v3293_v22 }
 0x3ec   :  { %v3496_v13 = vadd.f32 %v7260_v50, %v3420_v62 }
 0x3ed   :  { %v3478_v20 = vadd.f32 %v7260_v50, %v3402_v59 }
 0x3ee   :  { %v3568_v54 = vmax.f32 %v3496_v13, 0.0 }
 0x3ef   :  { %v3550_v31 = vmax.f32 %v3478_v20, 0.0 }
 0x3f0   :  { %v3640_v35 = vpack.c.bf16 %v3568_v54, %v3568_v54 }
 0x3f1   :  { %v3340_v44 = vpop.f32.mrf.mxu3  ;;  %v3622_v19 = vpack.c.bf16 %v3550_v31, %v3550_v31 }
 0x3f2   :  { %3713 = vst.msk [vmem:[%s7739_s4 + $0x110] sm:$0xf] %vm3644_vm0, %v3640_v35  ;;  %v3421_v17 = vmul.f32 %v7291_v55, %v3340_v44  ;;  %v3295_v18 = vpop.f32.mrf.mxu2 }
 0x3f3   :  { %3695 = vst.msk [vmem:[%s7739_s4 + $0xc8] sm:$0xf] %vm3644_vm0, %v3622_v19  ;;  %v3403_v33 = vmul.f32 %v7291_v55, %v3295_v18 }
 0x3f4   :  { %v3497_v29 = vadd.f32 %v7260_v50, %v3421_v17 }
 0x3f5   :  { %v3479_v27 = vadd.f32 %v7260_v50, %v3403_v33 }
 0x3f6   :  { %v3569_v57 = vmax.f32 %v3497_v29, 0.0 }
 0x3f7   :  { %v3551_v41 = vmax.f32 %v3479_v27, 0.0 }
 0x3f8   :  { %v3641_v51 = vpack.c.bf16 %v3569_v57, %v3569_v57 }
 0x3f9   :  { %v3623_v36 = vpack.c.bf16 %v3551_v41, %v3551_v41 }
 0x3fa   :  { %3714 = vst.msk [vmem:[%s7739_s4 + $0x114] sm:$0xf] %vm3644_vm0, %v3641_v51 }
 0x3fb   :  { %3696 = vst.msk [vmem:[%s7739_s4 + $0xcc] sm:$0xf] %vm3644_vm0, %v3623_v36 }
 0x409   :  { %v3298_v11 = vpop.f32.mrf.mxu2 }
 0x40a   :  { %v3404_v24 = vmul.f32 %v7291_v55, %v3298_v11 }
 0x40b   :  { %v3343_v21 = vpop.f32.mrf.mxu3 }
 0x40c   :  { %v3480_v40 = vadd.f32 %v7260_v50, %v3404_v24  ;;  %v3422_v37 = vmul.f32 %v7291_v55, %v3343_v21 }
 0x40e   :  { %v3552_v56 = vmax.f32 %v3480_v40, 0.0  ;;  %v3498_v3 = vadd.f32 %v7260_v50, %v3422_v37 }
 0x410   :  { %v3624_v34 = vpack.c.bf16 %v3552_v56, %v3552_v56  ;;  %v3570_v53 = vmax.f32 %v3498_v3, 0.0 }
 0x411   :  { %v3300_v39 = vpop.f32.mrf.mxu2 }
 0x412   :  { %3697 = vst.msk [vmem:[%s7739_s4 + $0xd0] sm:$0xf] %vm3644_vm0, %v3624_v34  ;;  %v3642_v1 = vpack.c.bf16 %v3570_v53, %v3570_v53  ;;  %v3405_v10 = vmul.f32 %v7291_v55, %v3300_v39 }
 0x413   :  { %v3345_v43 = vpop.f32.mrf.mxu3 }
 0x414   :  { %3715 = vst.msk [vmem:[%s7739_s4 + $0x118] sm:$0xf] %vm3644_vm0, %v3642_v1  ;;  %v3481_v46 = vadd.f32 %v7260_v50, %v3405_v10  ;;  %v3423_v2 = vmul.f32 %v7291_v55, %v3345_v43 }
 0x416   :  { %v3553_v30 = vmax.f32 %v3481_v46, 0.0  ;;  %v3499_v16 = vadd.f32 %v7260_v50, %v3423_v2 }
 0x418   :  { %v3625_v48 = vpack.c.bf16 %v3553_v30, %v3553_v30  ;;  %v3571_v60 = vmax.f32 %v3499_v16, 0.0 }
 0x41a   :  { %3698 = vst.msk [vmem:[%s7739_s4 + $0xd4] sm:$0xf] %vm3644_vm0, %v3625_v48  ;;  %v3643_v6 = vpack.c.bf16 %v3571_v60, %v3571_v60 }
 0x41c   :  { %3716 = vst.msk [vmem:[%s7739_s4 + $0x11c] sm:$0xf] %vm3644_vm0, %v3643_v6 }

</bundles_post_ra>
